<compile_context>
chip_gen: v6e
topology: v6e:2x2x1
jax: 0.10.0
libtpu: 0.0.40
codegen_flags: <defaults>
</compile_context>

<pallas_src>
import functools

import jax
import jax.numpy as jnp
from jax.experimental import pallas as pl
from jax.experimental.pallas import tpu as pltpu


def _round_up(n, m):
    return (n + m - 1) // m * m


def _choose_tile(B):
    # Prefer >= 2 grid steps (keeps both v7x TensorCores busy) with the largest
    # tile that evenly divides B; otherwise fall back to one big tile / padding.
    for t in (512, 256, 128):
        if B % t == 0 and B // t >= 2:
            return t
    for t in (512, 256, 128, 64, 32, 16, 8):
        if B % t == 0:
            return t
    return 128  # batch will be zero-padded up to a multiple of this


def vae_kernel(x_ref, eps_ref,
               w1_ref, b1_ref,
               wmv_ref, bmv_ref,
               w3_ref, b3_ref,
               w4_ref, b4_ref,
               recon_ref, mu_ref, logvar_ref):
    L = mu_ref.shape[-1]          # true latent width (20)
    Lp = w3_ref.shape[0]          # lane-padded latent width (128)

    # --- encoder: ReLU(x @ W1 + b1)  (bf16 MXU inputs, f32 accumulate) ---
    x = x_ref[...].astype(jnp.bfloat16)
    h = jnp.dot(x, w1_ref[...], preferred_element_type=jnp.float32) + b1_ref[...]
    h = jnp.maximum(h, 0.0)                          # (TB, Hp) f32

    # --- fused mu|logvar projection: one lane-dense (Hp x 2*Lp) matmul ---
    mv = jnp.dot(h.astype(jnp.bfloat16), wmv_ref[...],
                 preferred_element_type=jnp.float32) + bmv_ref[...]
    mu = mv[:, :Lp]                                  # 128-lane aligned slices
    logvar = mv[:, Lp:]

    # --- reparameterize: z = eps * exp(0.5*logvar) + mu ---
    # padded latent lanes of z are irrelevant: the matching rows of W3 are 0.
    z = eps_ref[...] * jnp.exp(0.5 * logvar) + mu

    # --- decoder: ReLU(z @ W3 + b3), sigmoid(h2 @ W4 + b4) ---
    h2 = jnp.dot(z.astype(jnp.bfloat16), w3_ref[...],
                 preferred_element_type=jnp.float32) + b3_ref[...]
    h2 = jnp.maximum(h2, 0.0)
    logits = jnp.dot(h2.astype(jnp.bfloat16), w4_ref[...],
                     preferred_element_type=jnp.float32) + b4_ref[...]

    # sigmoid(x) == 0.5*tanh(0.5*x) + 0.5 -> single EUP transcendental
    recon_ref[...] = (0.5 * jnp.tanh(0.5 * logits) + 0.5).astype(recon_ref.dtype)
    mu_ref[...] = mu[:, :L]
    logvar_ref[...] = logvar[:, :L]


def prepare_params(raw_params, lane=128):
    """Pad + fuse + cast the raw f32 params once (outside the hot path).

    Input: (w1, b1, wmu, bmu, wvar, bvar, w3, b3, w4, b4), weights stored
    [in, out], biases [1, out].  Only the hidden (400->512) and latent
    (20->128) dims are lane-padded; the 784 feature dim stays unpadded so x /
    recon need no wrapper pad/slice.  Weights -> bf16, biases stay f32.
    Zero padding keeps the math identical on the real lanes.
    """
    (w1, b1, wmu, bmu, wvar, bvar, w3, b3, w4, b4) = raw_params
    F, H = w1.shape
    L = wmu.shape[1]
    Hp, Lp = _round_up(H, lane), _round_up(L, lane)
    bf16 = jnp.bfloat16

    w1p = jnp.zeros((F, Hp), jnp.float32).at[:, :H].set(w1).astype(bf16)
    b1p = jnp.zeros((1, Hp), jnp.float32).at[:, :H].set(b1)

    wmvp = (jnp.zeros((Hp, 2 * Lp), jnp.float32)
            .at[:H, :L].set(wmu)
            .at[:H, Lp:Lp + L].set(wvar)).astype(bf16)
    bmvp = (jnp.zeros((1, 2 * Lp), jnp.float32)
            .at[:, :L].set(bmu)
            .at[:, Lp:Lp + L].set(bvar))

    w3p = jnp.zeros((Lp, Hp), jnp.float32).at[:L, :H].set(w3).astype(bf16)
    b3p = jnp.zeros((1, Hp), jnp.float32).at[:, :H].set(b3)

    w4p = jnp.zeros((Hp, F), jnp.float32).at[:H, :].set(w4).astype(bf16)
    b4p = b4.astype(jnp.float32)

    return (w1p, b1p, wmvp, bmvp, w3p, b3p, w4p, b4p)


@functools.partial(jax.jit, static_argnames=("batch_tile",))
def vae_forward(x, eps, pparams, batch_tile=None):
    """Full VAE forward pass in one Pallas kernel, tiled over batch.

    Returns (recon[B,F] bf16, mu[B,L] f32, logvar[B,L] f32).
    """
    B, F = x.shape
    L = eps.shape[1]
    (w1, b1, wmv, bmv, w3, b3, w4, b4) = pparams
    Hp = w1.shape[1]
    Lp = w3.shape[0]

    if batch_tile is None:
        batch_tile = _choose_tile(B)
    Bp = _round_up(B, batch_tile)

    # Tiny eps lane-pad (B x 20 -> Bp x 128); x stays unpadded unless the batch
    # itself needs rounding up to the tile.
    epsp = jnp.zeros((Bp, Lp), jnp.float32).at[:B, :L].set(eps)
    if Bp != B:
        xk = jnp.zeros((Bp, F), x.dtype).at[:B, :].set(x)
    else:
        xk = x

    grid = (Bp // batch_tile,)

    def resident(shape):
        # weight / bias blocks: same block every grid step -> fetched once
        return pl.BlockSpec(shape, lambda i: (0,) * len(shape))

    out_shapes = (
        jax.ShapeDtypeStruct((Bp, F), jnp.bfloat16),   # reconstruction
        jax.ShapeDtypeStruct((Bp, L), jnp.float32),    # means
        jax.ShapeDtypeStruct((Bp, L), jnp.float32),    # log variances
    )

    weight_bytes = (w1.size * 2 + b1.size * 4 + wmv.size * 2 + bmv.size * 4 +
                    w3.size * 2 + b3.size * 4 + w4.size * 2 + b4.size * 4)
    cost = pl.CostEstimate(
        flops=2 * Bp * (F * Hp + Hp * (2 * Lp) + Lp * Hp + Hp * F),
        transcendentals=Bp * (Lp + F),                 # exp(std) + tanh(sigmoid)
        bytes_accessed=(Bp * F * 4 + Bp * Lp * 4 + weight_bytes +
                        Bp * F * 2 + 2 * Bp * L * 4),
    )

    recon, mu, logvar = pl.pallas_call(
        vae_kernel,
        out_shape=out_shapes,
        grid_spec=pltpu.PrefetchScalarGridSpec(
            num_scalar_prefetch=0,
            grid=grid,
            in_specs=[
                pl.BlockSpec((batch_tile, F), lambda i: (i, 0)),    # x
                pl.BlockSpec((batch_tile, Lp), lambda i: (i, 0)),   # eps
                resident((F, Hp)), resident((1, Hp)),               # w1, b1
                resident((Hp, 2 * Lp)), resident((1, 2 * Lp)),      # w_mu|var
                resident((Lp, Hp)), resident((1, Hp)),              # w3, b3
                resident((Hp, F)), resident((1, F)),                # w4, b4
            ],
            out_specs=[
                pl.BlockSpec((batch_tile, F), lambda i: (i, 0)),
                pl.BlockSpec((batch_tile, L), lambda i: (i, 0)),
                pl.BlockSpec((batch_tile, L), lambda i: (i, 0)),
            ],
        ),
        compiler_params=pltpu.CompilerParams(
            dimension_semantics=("parallel",),
            vmem_limit_bytes=32 << 20,
        ),
        cost_estimate=cost,
    )(xk, epsp, w1, b1, wmv, bmv, w3, b3, w4, b4)

    if Bp != B:
        recon, mu, logvar = recon[:B], mu[:B], logvar[:B]
    return recon, mu, logvar


def init_linear(key, fan_in, fan_out):
    """PyTorch nn.Linear default init: U(-1/sqrt(fan_in), 1/sqrt(fan_in)).
    Weight returned as [fan_in, fan_out] (already transposed for x @ W)."""
    kw, kb = jax.random.split(key)
    bound = 1.0 / jnp.sqrt(fan_in)
    w = jax.random.uniform(kw, (fan_in, fan_out), jnp.float32, -bound, bound)
    b = jax.random.uniform(kb, (1, fan_out), jnp.float32, -bound, bound)
    return w, b


def reference_forward(x, eps, raw_params):
    """Pure-JAX reference using the same bf16-weight / f32-accumulate math."""
    (w1, b1, wmu, bmu, wvar, bvar, w3, b3, w4, b4) = raw_params
    bf = lambda a: a.astype(jnp.bfloat16)
    f32 = jnp.float32
    h = jnp.maximum(jnp.dot(bf(x), bf(w1), preferred_element_type=f32) + b1, 0.0)
    mu = jnp.dot(bf(h), bf(wmu), preferred_element_type=f32) + bmu
    logvar = jnp.dot(bf(h), bf(wvar), preferred_element_type=f32) + bvar
    z = eps * jnp.exp(0.5 * logvar) + mu
    h2 = jnp.maximum(jnp.dot(bf(z), bf(w3), preferred_element_type=f32) + b3, 0.0)
    logits = jnp.dot(bf(h2), bf(w4), preferred_element_type=f32) + b4
    return jax.nn.sigmoid(logits), mu, logvar


if __name__ == "__main__":
    FLATTEN_INPUT_SIZE = 784
    ENCODER_HIDDEN_SIZE = 400
    LATENT_SIZE = 20
    BATCH = 256   # -> auto tile 128, grid=(2,): both v7x TCs busy, big MXU tiles

    root = jax.random.PRNGKey(0)
    kx, keps, k1, k2, k3, k4, k5 = jax.random.split(root, 7)

    x = jax.random.uniform(kx, (BATCH, FLATTEN_INPUT_SIZE), jnp.float32)
    # TODO(synk): torch.randn_like draws eps inside forward(); here eps is an
    # explicit deterministic N(0,1) input for reproducibility.
    eps = jax.random.normal(keps, (BATCH, LATENT_SIZE), jnp.float32)

    w1, b1 = init_linear(k1, FLATTEN_INPUT_SIZE, ENCODER_HIDDEN_SIZE)
    wmu, bmu = init_linear(k2, ENCODER_HIDDEN_SIZE, LATENT_SIZE)
    wvar, bvar = init_linear(k3, ENCODER_HIDDEN_SIZE, LATENT_SIZE)
    w3, b3 = init_linear(k4, LATENT_SIZE, ENCODER_HIDDEN_SIZE)
    w4, b4 = init_linear(k5, ENCODER_HIDDEN_SIZE, FLATTEN_INPUT_SIZE)
    raw_params = (w1, b1, wmu, bmu, wvar, bvar, w3, b3, w4, b4)
    pparams = prepare_params(raw_params)

    recon, mu, logvar = vae_forward(x, eps, pparams)
    jax.block_until_ready((recon, mu, logvar))

    # sanity check against a pure-JAX reference with the same bf16 weights
    r_ref, mu_ref, lv_ref = reference_forward(x, eps, raw_params)
    assert recon.shape == (BATCH, FLATTEN_INPUT_SIZE)
    assert mu.shape == (BATCH, LATENT_SIZE) and logvar.shape == (BATCH, LATENT_SIZE)
    assert jnp.allclose(recon.astype(jnp.float32), r_ref, atol=2e-2, rtol=2e-2)
    assert jnp.allclose(mu, mu_ref, atol=5e-3, rtol=5e-3)
    assert jnp.allclose(logvar, lv_ref, atol=5e-3, rtol=5e-3)

    print("KERNEL_OK")
</pallas_src>

<mosaic_0001>
module attributes {stable_mosaic.version = 11 : i64} {
  func.func @vae_kernel(%arg0: i32, %arg1: memref<128x784xf32, #tpu.memory_space<vmem>>, %arg2: memref<128x128xf32, #tpu.memory_space<vmem>>, %arg3: memref<784x512xbf16, #tpu.memory_space<vmem>>, %arg4: memref<1x512xf32, #tpu.memory_space<vmem>>, %arg5: memref<512x256xbf16, #tpu.memory_space<vmem>>, %arg6: memref<1x256xf32, #tpu.memory_space<vmem>>, %arg7: memref<128x512xbf16, #tpu.memory_space<vmem>>, %arg8: memref<1x512xf32, #tpu.memory_space<vmem>>, %arg9: memref<512x784xbf16, #tpu.memory_space<vmem>>, %arg10: memref<1x784xf32, #tpu.memory_space<vmem>>, %arg11: memref<128x784xbf16, #tpu.memory_space<vmem>>, %arg12: memref<128x20xf32, #tpu.memory_space<vmem>>, %arg13: memref<128x20xf32, #tpu.memory_space<vmem>>) attributes {dimension_semantics = [#tpu.dimension_semantics<parallel>], iteration_bounds = array<i64: 2>, scalar_prefetch = 0 : i64, scratch_operands = 0 : i64, tpu.core_type = #tpu.core_type<tc>, window_params = [{transform_indices = @transform_0, window_bounds = array<i64: 128, 784>}, {transform_indices = @transform_1, window_bounds = array<i64: 128, 128>}, {pipeline_mode = #tpu.pipeline_mode<synchronous>, transform_indices = @transform_2, window_bounds = array<i64: 784, 512>}, {pipeline_mode = #tpu.pipeline_mode<synchronous>, transform_indices = @transform_3, window_bounds = array<i64: 1, 512>}, {pipeline_mode = #tpu.pipeline_mode<synchronous>, transform_indices = @transform_4, window_bounds = array<i64: 512, 256>}, {pipeline_mode = #tpu.pipeline_mode<synchronous>, transform_indices = @transform_5, window_bounds = array<i64: 1, 256>}, {pipeline_mode = #tpu.pipeline_mode<synchronous>, transform_indices = @transform_6, window_bounds = array<i64: 128, 512>}, {pipeline_mode = #tpu.pipeline_mode<synchronous>, transform_indices = @transform_7, window_bounds = array<i64: 1, 512>}, {pipeline_mode = #tpu.pipeline_mode<synchronous>, transform_indices = @transform_8, window_bounds = array<i64: 512, 784>}, {pipeline_mode = #tpu.pipeline_mode<synchronous>, transform_indices = @transform_9, window_bounds = array<i64: 1, 784>}, {transform_indices = @transform_10, window_bounds = array<i64: 128, 784>}, {transform_indices = @transform_11, window_bounds = array<i64: 128, 20>}, {transform_indices = @transform_12, window_bounds = array<i64: 128, 20>}]} {
    %c0 = arith.constant 0 : index
    %c0_0 = arith.constant 0 : index
    %0 = vector.load %arg1[%c0, %c0_0] : memref<128x784xf32, #tpu.memory_space<vmem>>, vector<128x784xf32>
    %1 = arith.truncf %0 : vector<128x784xf32> to vector<128x784xbf16>
    %c0_1 = arith.constant 0 : index
    %c0_2 = arith.constant 0 : index
    %2 = vector.load %arg3[%c0_1, %c0_2] : memref<784x512xbf16, #tpu.memory_space<vmem>>, vector<784x512xbf16>
    %cst = arith.constant dense<0.000000e+00> : vector<128x512xf32>
    %3 = tpu.matmul %1, %2, %cst {dimension_numbers = #tpu.dot_dimension_numbers<[1], [0], [0], [1], [0, 0, 1, 1], [], []>} : vector<128x784xbf16>, vector<784x512xbf16>, vector<128x512xf32> -> vector<128x512xf32>
    %c0_3 = arith.constant 0 : index
    %c0_4 = arith.constant 0 : index
    %4 = vector.load %arg4[%c0_3, %c0_4] : memref<1x512xf32, #tpu.memory_space<vmem>>, vector<1x512xf32>
    %5 = vector.broadcast %4 : vector<1x512xf32> to vector<128x512xf32>
    %6 = arith.addf %3, %5 : vector<128x512xf32>
    %cst_5 = arith.constant 0.000000e+00 : f32
    %7 = vector.broadcast %cst_5 : f32 to vector<128x512xf32>
    %8 = arith.maximumf %6, %7 : vector<128x512xf32>
    %9 = arith.truncf %8 : vector<128x512xf32> to vector<128x512xbf16>
    %c0_6 = arith.constant 0 : index
    %c0_7 = arith.constant 0 : index
    %10 = vector.load %arg5[%c0_6, %c0_7] : memref<512x256xbf16, #tpu.memory_space<vmem>>, vector<512x256xbf16>
    %cst_8 = arith.constant dense<0.000000e+00> : vector<128x256xf32>
    %11 = tpu.matmul %9, %10, %cst_8 {dimension_numbers = #tpu.dot_dimension_numbers<[1], [0], [0], [1], [0, 0, 1, 1], [], []>} : vector<128x512xbf16>, vector<512x256xbf16>, vector<128x256xf32> -> vector<128x256xf32>
    %c0_9 = arith.constant 0 : index
    %c0_10 = arith.constant 0 : index
    %12 = vector.load %arg6[%c0_9, %c0_10] : memref<1x256xf32, #tpu.memory_space<vmem>>, vector<1x256xf32>
    %13 = vector.broadcast %12 : vector<1x256xf32> to vector<128x256xf32>
    %14 = arith.addf %11, %13 : vector<128x256xf32>
    %15 = vector.extract_strided_slice %14 {offsets = [0, 0], sizes = [128, 128], strides = [1, 1]} : vector<128x256xf32> to vector<128x128xf32>
    %16 = vector.extract_strided_slice %14 {offsets = [0, 128], sizes = [128, 128], strides = [1, 1]} : vector<128x256xf32> to vector<128x128xf32>
    %c0_11 = arith.constant 0 : index
    %c0_12 = arith.constant 0 : index
    %17 = vector.load %arg2[%c0_11, %c0_12] : memref<128x128xf32, #tpu.memory_space<vmem>>, vector<128x128xf32>
    %cst_13 = arith.constant 5.000000e-01 : f32
    %18 = vector.broadcast %cst_13 : f32 to vector<128x128xf32>
    %19 = arith.mulf %18, %16 : vector<128x128xf32>
    %20 = math.exp %19 : vector<128x128xf32>
    %21 = arith.mulf %17, %20 : vector<128x128xf32>
    %22 = arith.addf %21, %15 : vector<128x128xf32>
    %23 = arith.truncf %22 : vector<128x128xf32> to vector<128x128xbf16>
    %c0_14 = arith.constant 0 : index
    %c0_15 = arith.constant 0 : index
    %24 = vector.load %arg7[%c0_14, %c0_15] : memref<128x512xbf16, #tpu.memory_space<vmem>>, vector<128x512xbf16>
    %cst_16 = arith.constant dense<0.000000e+00> : vector<128x512xf32>
    %25 = tpu.matmul %23, %24, %cst_16 {dimension_numbers = #tpu.dot_dimension_numbers<[1], [0], [0], [1], [0, 0, 1, 1], [], []>} : vector<128x128xbf16>, vector<128x512xbf16>, vector<128x512xf32> -> vector<128x512xf32>
    %c0_17 = arith.constant 0 : index
    %c0_18 = arith.constant 0 : index
    %26 = vector.load %arg8[%c0_17, %c0_18] : memref<1x512xf32, #tpu.memory_space<vmem>>, vector<1x512xf32>
    %27 = vector.broadcast %26 : vector<1x512xf32> to vector<128x512xf32>
    %28 = arith.addf %25, %27 : vector<128x512xf32>
    %cst_19 = arith.constant 0.000000e+00 : f32
    %29 = vector.broadcast %cst_19 : f32 to vector<128x512xf32>
    %30 = arith.maximumf %28, %29 : vector<128x512xf32>
    %31 = arith.truncf %30 : vector<128x512xf32> to vector<128x512xbf16>
    %c0_20 = arith.constant 0 : index
    %c0_21 = arith.constant 0 : index
    %32 = vector.load %arg9[%c0_20, %c0_21] : memref<512x784xbf16, #tpu.memory_space<vmem>>, vector<512x784xbf16>
    %cst_22 = arith.constant dense<0.000000e+00> : vector<128x784xf32>
    %33 = tpu.matmul %31, %32, %cst_22 {dimension_numbers = #tpu.dot_dimension_numbers<[1], [0], [0], [1], [0, 0, 1, 1], [], []>} : vector<128x512xbf16>, vector<512x784xbf16>, vector<128x784xf32> -> vector<128x784xf32>
    %c0_23 = arith.constant 0 : index
    %c0_24 = arith.constant 0 : index
    %34 = vector.load %arg10[%c0_23, %c0_24] : memref<1x784xf32, #tpu.memory_space<vmem>>, vector<1x784xf32>
    %35 = vector.broadcast %34 : vector<1x784xf32> to vector<128x784xf32>
    %36 = arith.addf %33, %35 : vector<128x784xf32>
    %cst_25 = arith.constant 5.000000e-01 : f32
    %37 = vector.broadcast %cst_25 : f32 to vector<128x784xf32>
    %38 = arith.mulf %37, %36 : vector<128x784xf32>
    %39 = math.tanh %38 : vector<128x784xf32>
    %cst_26 = arith.constant 5.000000e-01 : f32
    %40 = vector.broadcast %cst_26 : f32 to vector<128x784xf32>
    %41 = arith.mulf %40, %39 : vector<128x784xf32>
    %cst_27 = arith.constant 5.000000e-01 : f32
    %42 = vector.broadcast %cst_27 : f32 to vector<128x784xf32>
    %43 = arith.addf %41, %42 : vector<128x784xf32>
    %44 = arith.truncf %43 : vector<128x784xf32> to vector<128x784xbf16>
    %c0_28 = arith.constant 0 : index
    %c0_29 = arith.constant 0 : index
    %45 = vector.load %arg11[%c0_28, %c0_29] : memref<128x784xbf16, #tpu.memory_space<vmem>>, vector<128x784xbf16>
    tpu.vector_store %arg11[%c0_28, %c0_29], %44 {strides = array<i32>} : memref<128x784xbf16, #tpu.memory_space<vmem>>, vector<128x784xbf16>,
    %46 = vector.extract_strided_slice %15 {offsets = [0, 0], sizes = [128, 20], strides = [1, 1]} : vector<128x128xf32> to vector<128x20xf32>
    %c0_30 = arith.constant 0 : index
    %c0_31 = arith.constant 0 : index
    %47 = vector.load %arg12[%c0_30, %c0_31] : memref<128x20xf32, #tpu.memory_space<vmem>>, vector<128x20xf32>
    tpu.vector_store %arg12[%c0_30, %c0_31], %46 {strides = array<i32>} : memref<128x20xf32, #tpu.memory_space<vmem>>, vector<128x20xf32>,
    %48 = vector.extract_strided_slice %16 {offsets = [0, 0], sizes = [128, 20], strides = [1, 1]} : vector<128x128xf32> to vector<128x20xf32>
    %c0_32 = arith.constant 0 : index
    %c0_33 = arith.constant 0 : index
    %49 = vector.load %arg13[%c0_32, %c0_33] : memref<128x20xf32, #tpu.memory_space<vmem>>, vector<128x20xf32>
    tpu.vector_store %arg13[%c0_32, %c0_33], %48 {strides = array<i32>} : memref<128x20xf32, #tpu.memory_space<vmem>>, vector<128x20xf32>,
    return
  }
  func.func @transform_0(%arg0: i32) -> (i32, i32) {
    %c0_i32 = arith.constant 0 : i32
    %c0_i32_0 = arith.constant 0 : i32
    return %arg0, %c0_i32 : i32, i32
  }
  func.func @transform_1(%arg0: i32) -> (i32, i32) {
    %c0_i32 = arith.constant 0 : i32
    %c0_i32_0 = arith.constant 0 : i32
    return %arg0, %c0_i32 : i32, i32
  }
  func.func @transform_2(%arg0: i32) -> (i32, i32) {
    %c0_i32 = arith.constant 0 : i32
    %c0_i32_0 = arith.constant 0 : i32
    %c0_i32_1 = arith.constant 0 : i32
    return %c0_i32, %c0_i32_0 : i32, i32
  }
  func.func @transform_3(%arg0: i32) -> (i32, i32) {
    %c0_i32 = arith.constant 0 : i32
    %c0_i32_0 = arith.constant 0 : i32
    %c0_i32_1 = arith.constant 0 : i32
    return %c0_i32, %c0_i32_0 : i32, i32
  }
  func.func @transform_4(%arg0: i32) -> (i32, i32) {
    %c0_i32 = arith.constant 0 : i32
    %c0_i32_0 = arith.constant 0 : i32
    %c0_i32_1 = arith.constant 0 : i32
    return %c0_i32, %c0_i32_0 : i32, i32
  }
  func.func @transform_5(%arg0: i32) -> (i32, i32) {
    %c0_i32 = arith.constant 0 : i32
    %c0_i32_0 = arith.constant 0 : i32
    %c0_i32_1 = arith.constant 0 : i32
    return %c0_i32, %c0_i32_0 : i32, i32
  }
  func.func @transform_6(%arg0: i32) -> (i32, i32) {
    %c0_i32 = arith.constant 0 : i32
    %c0_i32_0 = arith.constant 0 : i32
    %c0_i32_1 = arith.constant 0 : i32
    return %c0_i32, %c0_i32_0 : i32, i32
  }
  func.func @transform_7(%arg0: i32) -> (i32, i32) {
    %c0_i32 = arith.constant 0 : i32
    %c0_i32_0 = arith.constant 0 : i32
    %c0_i32_1 = arith.constant 0 : i32
    return %c0_i32, %c0_i32_0 : i32, i32
  }
  func.func @transform_8(%arg0: i32) -> (i32, i32) {
    %c0_i32 = arith.constant 0 : i32
    %c0_i32_0 = arith.constant 0 : i32
    %c0_i32_1 = arith.constant 0 : i32
    return %c0_i32, %c0_i32_0 : i32, i32
  }
  func.func @transform_9(%arg0: i32) -> (i32, i32) {
    %c0_i32 = arith.constant 0 : i32
    %c0_i32_0 = arith.constant 0 : i32
    %c0_i32_1 = arith.constant 0 : i32
    return %c0_i32, %c0_i32_0 : i32, i32
  }
  func.func @transform_10(%arg0: i32) -> (i32, i32) {
    %c0_i32 = arith.constant 0 : i32
    %c0_i32_0 = arith.constant 0 : i32
    return %arg0, %c0_i32 : i32, i32
  }
  func.func @transform_11(%arg0: i32) -> (i32, i32) {
    %c0_i32 = arith.constant 0 : i32
    %c0_i32_0 = arith.constant 0 : i32
    return %arg0, %c0_i32 : i32, i32
  }
  func.func @transform_12(%arg0: i32) -> (i32, i32) {
    %c0_i32 = arith.constant 0 : i32
    %c0_i32_0 = arith.constant 0 : i32
    return %arg0, %c0_i32 : i32, i32
  }
}

</mosaic_0001>

<bundles_post_ra>
// kernel: vae_forward.1
= control target key start
LH: loop header
LB: loop body
LE: loop exit
PB: predicated region body
PF: predicated region fallthrough
CT: control target
= control target key end

     0   :  { %s9384_s21 = smov 0   ;;  %s12488_s0 = inlined_call_operand.vmem [shape: f32[256,784], index: 0, kind: input, shape index: {}]   ;;  %s12489_s1 = inlined_call_operand.vmem [shape: f32[256,128], index: 1, kind: input, shape index: {}]   ;;  %s12490_s2 = inlined_call_operand.vmem [shape: bf16[784,512], index: 2, kind: input, shape index: {}]   ;;  %s12491_s3 = inlined_call_operand.vmem [shape: f32[1,512], index: 3, kind: input, shape index: {}]   ;;  %s12492_s4 = inlined_call_operand.vmem [shape: bf16[512,256], index: 4, kind: input, shape index: {}]   ;;  %s12493_s5 = inlined_call_operand.vmem [shape: f32[1,256], index: 5, kind: input, shape index: {}]   ;;  %s12494_s6 = inlined_call_operand.vmem [shape: bf16[128,512], index: 6, kind: input, shape index: {}]   ;;  %s12495_s7 = inlined_call_operand.vmem [shape: f32[1,512], index: 7, kind: input, shape index: {}]   ;;  %s12496_s8 = inlined_call_operand.vmem [shape: bf16[512,784], index: 8, kind: input, shape index: {}]   ;;  %s12497_s9 = inlined_call_operand.vmem [shape: f32[1,784], index: 9, kind: input, shape index: {}]   ;;  %s12498_s10 = inlined_call_operand.vmem [shape: bf16[256,784], index: 10, kind: output, shape index: {0}]   ;;  %s12499_s11 = inlined_call_operand.vmem [shape: f32[256,20], index: 11, kind: output, shape index: {1}]   ;;  %s12500_s12 = inlined_call_operand.vmem [shape: f32[256,20], index: 12, kind: output, shape index: {2}]  }
   0x1 LB: > { %s7478_s22 = sadd.s32 4294967295, %s9316_s21   ;;  %p7482_p0 = scmp.ge.s32.totalorder %s9316_s21, 1  ;;  %s9316_s21 = sphi %s9384_s21, %s23_s21  }
   0x2   : > { %p380_p1 = scmp.lt.s32.totalorder %s9316_s21, 3 }
   0x4   : > { %p381_p2 = pnand %p7482_p0, %p380_p1 }
   0x6   : > { %384 = sbr.rel (%p381_p2) target bundleno = 1384 (0x568), region = 60 }
   0xb   : > { %v8294_v0 = vld [vmem:[%s12490_s2 + $0xe4] ss:$16 sps:$4 sm:$0xff]   ;;  %v8298_v2 = vld [vmem:[%s12490_s2 + $0xe0] ss:$16 sps:$4 sm:$0xff]   ;;  %s7483_s15 = sshll.u32 %s7478_s22, 4  ;;  %vm1838_vm0 = vcmask 130048  }
   0xc   : > { %v8296_v1 = vld [vmem:[%s12490_s2 + $0x2e4] ss:$16 sps:$4 sm:$0xff]   ;;  %1863 = vmatprep.subr.bf16.mxu0 %v8294_v0  ;;  %v8299_v3 = vld [vmem:[%s12490_s2 + $0x2e0] ss:$16 sps:$4 sm:$0xff]   ;;  %p440_p3 = scmp.lt.s32.totalorder %s7483_s15, 31  ;;  %vm7307_vm1 = vcmask 162816  }
   0xd   : > { %1976 = vmatprep.subr.bf16.mxu1 %v8296_v1  ;;  %v8300_v4 = vld [vmem:[%s12490_s2 + $0xc4] ss:$16 sps:$4 sm:$0xff]   ;;  %1864 = vmatpush1.bf16.msra.mxu0 %v8298_v2  ;;  %v8304_v6 = vld [vmem:[%s12490_s2 + $0xc0] ss:$16 sps:$4 sm:$0xff]   ;;  %vm7245_vm2 = vcmask 125952  }
   0xe   : > { %1977 = vmatpush1.bf16.msra.mxu1 %v8299_v3  ;;  %v8302_v5 = vld [vmem:[%s12490_s2 + $0x2c4] ss:$16 sps:$4 sm:$0xff]   ;;  %1865 = vmatprep.subr.bf16.mxu0 %v8300_v4  ;;  %v8305_v7 = vld [vmem:[%s12490_s2 + $0x2c0] ss:$16 sps:$4 sm:$0xff]   ;;  %s12566_s15 = smov (!%p440_p3, %s7483_s15), 31 }
   0xf   : > { %1978 = vmatprep.subr.bf16.mxu1 %v8302_v5  ;;  %v8306_v8 = vld [vmem:[%s12490_s2 + $0xa4] ss:$16 sps:$4 sm:$0xff]   ;;  %v8310_v10 = vld [vmem:[%s12490_s2 + $0xa0] ss:$16 sps:$4 sm:$0xff]   ;;  %s8283_s20 = smul.u32 56, %s12566_s15  ;;  %s11062_s27 = sshll.u32 %s12566_s15, 3 }
  0x10   : > { %v8308_v9 = vld [vmem:[%s12490_s2 + $0x2a4] ss:$16 sps:$4 sm:$0xff]   ;;  %v8311_v11 = vld [vmem:[%s12490_s2 + $0x2a0] ss:$16 sps:$4 sm:$0xff]   ;;  %s11069_s30 = scalar_lea.vmem %s12499_s11, %s11062_s27  ;;  %s11080_s16 = scalar_lea.vmem %s12500_s12, %s11062_s27 }
  0x11   : > { %1866 = vmatpush1.bf16.msra.mxu0 %v8304_v6  ;;  %v8312_v12 = vld [vmem:[%s12490_s2 + $0x84] ss:$16 sps:$4 sm:$0xff]   ;;  %v8316_v14 = vld [vmem:[%s12490_s2 + $0x80] ss:$16 sps:$4 sm:$0xff]   ;;  %s9532_s17 = scalar_lea.vmem %s12488_s0, %s8283_s20  ;;  %s11130_s19 = scalar_lea.vmem %s12489_s1, %s11062_s27 }
  0x12   : > { %1979 = vmatpush1.bf16.msra.mxu1 %v8305_v7  ;;  %1867 = vmatprep.subr.bf16.mxu0 %v8306_v8  ;;  %v8314_v13 = vld [vmem:[%s12490_s2 + $0x284] ss:$16 sps:$4 sm:$0xff]   ;;  %v8317_v15 = vld [vmem:[%s12490_s2 + $0x280] ss:$16 sps:$4 sm:$0xff]   ;;  %v473_v46 = vld [vmem:[%s9532_s17 + $0x8] sm:$0xff]  ;;  %s8284_s24 = smul.u32 28, %s12566_s15 }
  0x13   : > { %1980 = vmatprep.subr.bf16.mxu1 %v8308_v9  ;;  %v8318_v16 = vld [vmem:[%s12490_s2 + $0x64] ss:$16 sps:$4 sm:$0xff]   ;;  %v8322_v18 = vld [vmem:[%s12490_s2 + $0x60] ss:$16 sps:$4 sm:$0xff]   ;;  %v475_v48 = vld [vmem:[%s9532_s17 + $0x18] sm:$0xff] }
  0x14   : > { %v8320_v17 = vld [vmem:[%s12490_s2 + $0x264] ss:$16 sps:$4 sm:$0xff]   ;;  %v8323_v19 = vld [vmem:[%s12490_s2 + $0x260] ss:$16 sps:$4 sm:$0xff]   ;;  %v479_v7 = vld [vmem:[%s9532_s17 + $0x38] sm:$0xff]  ;;  %s12262_s25 = scalar_lea.vmem %s12498_s10, %s8284_s24 }
  0x15   : > { %1868 = vmatpush1.bf16.msra.mxu0 %v8310_v10  ;;  %v8324_v20 = vld [vmem:[%s12490_s2 + $0x44] ss:$16 sps:$4 sm:$0xff]   ;;  %v8328_v22 = vld [vmem:[%s12490_s2 + $0x40] ss:$16 sps:$4 sm:$0xff]   ;;  %v481_v9 = vld [vmem:[%s9532_s17 + $0x48] sm:$0xff] }
  0x16   : > { %1981 = vmatpush1.bf16.msra.mxu1 %v8311_v11  ;;  %1869 = vmatprep.subr.bf16.mxu0 %v8312_v12  ;;  %v8326_v21 = vld [vmem:[%s12490_s2 + $0x244] ss:$16 sps:$4 sm:$0xff]   ;;  %v8329_v23 = vld [vmem:[%s12490_s2 + $0x240] ss:$16 sps:$4 sm:$0xff]  }
  0x17   : > { %1982 = vmatprep.subr.bf16.mxu1 %v8314_v13  ;;  %v8330_v24 = vld [vmem:[%s12490_s2 + $0x24] ss:$16 sps:$4 sm:$0xff]   ;;  %v8334_v26 = vld [vmem:[%s12490_s2 + $0x20] ss:$16 sps:$4 sm:$0xff]   ;;  %v487_v13 = vld [vmem:[%s9532_s17 + $0x78] sm:$0xff] }
  0x18   : > { %v8332_v25 = vld [vmem:[%s12490_s2 + $0x224] ss:$16 sps:$4 sm:$0xff]   ;;  %v8335_v27 = vld [vmem:[%s12490_s2 + $0x220] ss:$16 sps:$4 sm:$0xff]  }
  0x19   : > { %1870 = vmatpush1.bf16.msra.mxu0 %v8316_v14  ;;  %v8336_v28 = vld [vmem:[%s12490_s2 + $0x4] ss:$16 sps:$4 sm:$0xff]   ;;  %v8340_v30 = vld [vmem:[%s12490_s2] ss:$16 sps:$4 sm:$0xff]  }
  0x1a   : > { %1983 = vmatpush1.bf16.msra.mxu1 %v8317_v15  ;;  %1871 = vmatprep.subr.bf16.mxu0 %v8318_v16  ;;  %v8338_v29 = vld [vmem:[%s12490_s2 + $0x204] ss:$16 sps:$4 sm:$0xff]   ;;  %v8341_v31 = vld [vmem:[%s12490_s2 + $0x200] ss:$16 sps:$4 sm:$0xff]  }
  0x1b   : > { %1984 = vmatprep.subr.bf16.mxu1 %v8320_v17  ;;  %v8342_v32 = vld [vmem:[%s12490_s2 + $0x1e4] ss:$16 sps:$4 sm:$0xff]   ;;  %v8346_v34 = vld [vmem:[%s12490_s2 + $0x1e0] ss:$16 sps:$4 sm:$0xff]   ;;  %v489_v17 = vld [vmem:[%s9532_s17 + $0x88] sm:$0xff] }
  0x1c   : > { %v8344_v33 = vld [vmem:[%s12490_s2 + $0x3e4] ss:$16 sps:$4 sm:$0xff]   ;;  %v8347_v35 = vld [vmem:[%s12490_s2 + $0x3e0] ss:$16 sps:$4 sm:$0xff]  }
  0x1d   : > { %1872 = vmatpush1.bf16.msra.mxu0 %v8322_v18  ;;  %v8348_v36 = vld [vmem:[%s12490_s2 + $0x1c4] ss:$16 sps:$4 sm:$0xff]   ;;  %v8352_v38 = vld [vmem:[%s12490_s2 + $0x1c0] ss:$16 sps:$4 sm:$0xff]  }
  0x1e   : > { %1985 = vmatpush1.bf16.msra.mxu1 %v8323_v19  ;;  %1873 = vmatprep.subr.bf16.mxu0 %v8324_v20  ;;  %v8350_v37 = vld [vmem:[%s12490_s2 + $0x3c4] ss:$16 sps:$4 sm:$0xff]   ;;  %v8353_v39 = vld [vmem:[%s12490_s2 + $0x3c0] ss:$16 sps:$4 sm:$0xff]  }
  0x1f   : > { %1986 = vmatprep.subr.bf16.mxu1 %v8326_v21  ;;  %v8354_v40 = vld [vmem:[%s12490_s2 + $0x1a4] ss:$16 sps:$4 sm:$0xff]   ;;  %v8358_v42 = vld [vmem:[%s12490_s2 + $0x1a0] ss:$16 sps:$4 sm:$0xff]  }
  0x20   : > { %v8356_v41 = vld [vmem:[%s12490_s2 + $0x3a4] ss:$16 sps:$4 sm:$0xff]   ;;  %v8359_v43 = vld [vmem:[%s12490_s2 + $0x3a0] ss:$16 sps:$4 sm:$0xff]  }
  0x21   : > { %1874 = vmatpush1.bf16.msra.mxu0 %v8328_v22  ;;  %v8360_v44 = vld [vmem:[%s12490_s2 + $0x184] ss:$16 sps:$4 sm:$0xff]   ;;  %v8364_v50 = vld [vmem:[%s12490_s2 + $0x180] ss:$16 sps:$4 sm:$0xff]  }
  0x22   : > { %1987 = vmatpush1.bf16.msra.mxu1 %v8329_v23  ;;  %1875 = vmatprep.subr.bf16.mxu0 %v8330_v24  ;;  %v8362_v45 = vld [vmem:[%s12490_s2 + $0x384] ss:$16 sps:$4 sm:$0xff]   ;;  %v8365_v51 = vld [vmem:[%s12490_s2 + $0x380] ss:$16 sps:$4 sm:$0xff]  }
  0x23   : > { %1988 = vmatprep.subr.bf16.mxu1 %v8332_v25  ;;  %v480_v47 = vld [vmem:[%s9532_s17 + $0x40] sm:$0xff]  ;;  %v482_v49 = vld [vmem:[%s9532_s17 + $0x50] sm:$0xff]  ;;  %v493_v25 = vld [vmem:[%s9532_s17 + $0xa8] sm:$0xff] }
  0x24   : > { %v8366_v52 = vld [vmem:[%s12490_s2 + $0x164] ss:$16 sps:$4 sm:$0xff]   ;;  %v9553_v53 = vpack.c.bf16 %v480_v47, %v473_v46  ;;  %v9555_v54 = vpack.c.bf16 %v482_v49, %v475_v48  ;;  %v8370_v56 = vld [vmem:[%s12490_s2 + $0x160] ss:$16 sps:$4 sm:$0xff]   ;;  %v517_v47 = vld [vmem:[%s9532_s17 + $0x168] sm:$0xff] }
  0x25   : > { %1876 = vmatpush1.bf16.msra.mxu0 %v8334_v26  ;;  %v8368_v55 = vld [vmem:[%s12490_s2 + $0x364] ss:$16 sps:$4 sm:$0xff]   ;;  %v8371_v57 = vld [vmem:[%s12490_s2 + $0x360] ss:$16 sps:$4 sm:$0xff]  }
  0x26   : > { %1989 = vmatpush1.bf16.msra.mxu1 %v8335_v27  ;;  %1877 = vmatprep.subr.bf16.mxu0 %v8336_v28  ;;  %v8372_v58 = vld [vmem:[%s12490_s2 + $0x144] ss:$16 sps:$4 sm:$0xff]   ;;  %v8376_v60 = vld [vmem:[%s12490_s2 + $0x140] ss:$16 sps:$4 sm:$0xff]   ;;  %v495_v27 = vld [vmem:[%s9532_s17 + $0xb8] sm:$0xff] }
  0x27   : > { %1990 = vmatprep.subr.bf16.mxu1 %v8338_v29  ;;  %1895 = vmatprep.mubr.bf16.mxu0 %v9553_v53  ;;  %v8374_v59 = vld [vmem:[%s12490_s2 + $0x344] ss:$16 sps:$4 sm:$0xff]   ;;  %v8377_v61 = vld [vmem:[%s12490_s2 + $0x340] ss:$16 sps:$4 sm:$0xff]   ;;  %v501_v29 = vld [vmem:[%s9532_s17 + $0xe8] sm:$0xff] }
  0x28   : > { %2008 = vmatprep.mubr.bf16.mxu1 %v9555_v54  ;;  %v8378_v62 = vld [vmem:[%s12490_s2 + $0x124] ss:$16 sps:$4 sm:$0xff]   ;;  %v8382_v0 = vld [vmem:[%s12490_s2 + $0x120] ss:$16 sps:$4 sm:$0xff]  }
  0x29   : > { %1878 = vmatpush1.bf16.msra.mxu0 %v8340_v30  ;;  %v8380_v63 = vld [vmem:[%s12490_s2 + $0x324] ss:$16 sps:$4 sm:$0xff]   ;;  %v8383_v1 = vld [vmem:[%s12490_s2 + $0x320] ss:$16 sps:$4 sm:$0xff]  }
  0x2a   : > { %1991 = vmatpush1.bf16.msra.mxu1 %v8341_v31  ;;  %1879 = vmatprep.subr.bf16.mxu0 %v8342_v32  ;;  %v8384_v2 = vld [vmem:[%s12490_s2 + $0x104] ss:$16 sps:$4 sm:$0xff]   ;;  %v8388_v4 = vld [vmem:[%s12490_s2 + $0x100] ss:$16 sps:$4 sm:$0xff]   ;;  %v503_v31 = vld [vmem:[%s9532_s17 + $0xf8] sm:$0xff] }
  0x2b   : > { %1992 = vmatprep.subr.bf16.mxu1 %v8344_v33  ;;  %v8386_v3 = vld [vmem:[%s12490_s2 + $0x304] ss:$16 sps:$4 sm:$0xff]   ;;  %v8389_v5 = vld [vmem:[%s12490_s2 + $0x300] ss:$16 sps:$4 sm:$0xff]  }
  0x2c   : > { %v472_v6 = vld [vmem:[%s9532_s17] sm:$0xff]  ;;  %v474_v8 = vld [vmem:[%s9532_s17 + $0x10] sm:$0xff] }
  0x2d   : > { %1880 = vmatpush2.bf16.msra.mxu0 %v8346_v34  ;;  %v8392_v10 = vld [vmem:[%s12490_s2 + $0x4e4] ss:$16 sps:$4 sm:$0xff]   ;;  %v8390_v12 = vld [vmem:[%s12490_s2 + $0x4e0] ss:$16 sps:$4 sm:$0xff]   ;;  %v9619_v15 = vpack.c.bf16 %v479_v7, %v472_v6  ;;  %v9621_v16 = vpack.c.bf16 %v481_v9, %v474_v8 }
  0x2e   : > { %1993 = vmatpush2.bf16.msra.mxu1 %v8347_v35  ;;  %1881 = vmatprep.subr.bf16.mxu0 %v8348_v36  ;;  %v8395_v11 = vld [vmem:[%s12490_s2 + $0x604] ss:$16 sps:$4 sm:$0xff]   ;;  %v8393_v19 = vld [vmem:[%s12490_s2 + $0x600] ss:$16 sps:$4 sm:$0xff]  }
  0x2f   : > { %1994 = vmatprep.subr.bf16.mxu1 %v8350_v37  ;;  %v494_v14 = vld [vmem:[%s9532_s17 + $0xb0] sm:$0xff]  ;;  %v496_v18 = vld [vmem:[%s9532_s17 + $0xc0] sm:$0xff] }
  0x30   : > { %v8398_v20 = vld [vmem:[%s12490_s2 + $0x4c4] ss:$16 sps:$4 sm:$0xff]   ;;  %v9631_v21 = vpack.c.bf16 %v494_v14, %v487_v13  ;;  %v8396_v22 = vld [vmem:[%s12490_s2 + $0x4c0] ss:$16 sps:$4 sm:$0xff]   ;;  %v9636_v23 = vpack.c.bf16 %v496_v18, %v489_v17  ;;  %v8446_v13 = vld [vmem:[%s12490_s2 + $0x2ec] ss:$16 sps:$4 sm:$0xff]  }
  0x31   : > { %1882 = vmatpush2.bf16.msra.mxu0 %v8352_v38  ;;  %v486_v24 = vld [vmem:[%s9532_s17 + $0x70] sm:$0xff]  ;;  %v488_v26 = vld [vmem:[%s9532_s17 + $0x80] sm:$0xff]  ;;  %v537_v14 = vld [vmem:[%s9532_s17 + $0x208] sm:$0xff] }
  0x32   : > { %1995 = vmatpush2.bf16.msra.mxu1 %v8353_v39  ;;  %1883 = vmatprep.subr.bf16.mxu0 %v8354_v40  ;;  %v8401_v28 = vld [vmem:[%s12490_s2 + $0x4a4] ss:$16 sps:$4 sm:$0xff]   ;;  %v9653_v33 = vpack.c.bf16 %v493_v25, %v486_v24  ;;  %v9655_v34 = vpack.c.bf16 %v495_v27, %v488_v26  ;;  %v8399_v35 = vld [vmem:[%s12490_s2 + $0x4a0] ss:$16 sps:$4 sm:$0xff]   ;;  %v543_v18 = vld [vmem:[%s9532_s17 + $0x238] sm:$0xff] }
  0x33   : > { %1996 = vmatprep.subr.bf16.mxu1 %v8356_v41  ;;  %v508_v30 = vld [vmem:[%s9532_s17 + $0x120] sm:$0xff]  ;;  %v510_v32 = vld [vmem:[%s9532_s17 + $0x130] sm:$0xff]  ;;  %v507_v41 = vld [vmem:[%s9532_s17 + $0x118] sm:$0xff] }
  0x34   : > { %v9660_v36 = vpack.c.bf16 %v508_v30, %v501_v29  ;;  %v8404_v37 = vld [vmem:[%s12490_s2 + $0x484] ss:$16 sps:$4 sm:$0xff]   ;;  %v9665_v38 = vpack.c.bf16 %v510_v32, %v503_v31  ;;  %v8402_v39 = vld [vmem:[%s12490_s2 + $0x480] ss:$16 sps:$4 sm:$0xff]   ;;  %v549_v32 = vld [vmem:[%s9532_s17 + $0x268] sm:$0xff] }
  0x35   : > { %1884 = vmatpush2.bf16.msra.mxu0 %v8358_v42  ;;  %v500_v40 = vld [vmem:[%s9532_s17 + $0xe0] sm:$0xff]  ;;  %v502_v42 = vld [vmem:[%s9532_s17 + $0xf0] sm:$0xff] }
  0x36   : > { %1997 = vmatpush2.bf16.msra.mxu1 %v8359_v43  ;;  %1885 = vmatprep.subr.bf16.mxu0 %v8360_v44  ;;  %v509_v43 = vld [vmem:[%s9532_s17 + $0x128] sm:$0xff]  ;;  %v8407_v44 = vld [vmem:[%s12490_s2 + $0x464] ss:$16 sps:$4 sm:$0xff]   ;;  %v9685_v49 = vpack.c.bf16 %v507_v41, %v500_v40  ;;  %v8414_v9 = vld [vmem:[%s12490_s2 + $0x400] ss:$16 sps:$4 sm:$0xff]  }
  0x37   : > { %1998 = vmatprep.subr.bf16.mxu1 %v8362_v45  ;;  %v515_v45 = vld [vmem:[%s9532_s17 + $0x158] sm:$0xff]  ;;  %v522_v46 = vld [vmem:[%s9532_s17 + $0x190] sm:$0xff]  ;;  %v524_v48 = vld [vmem:[%s9532_s17 + $0x1a0] sm:$0xff] }
  0x38   : > { %v8416_v7 = vld [vmem:[%s12490_s2 + $0x404] ss:$16 sps:$4 sm:$0xff]   ;;  %v8417_v26 = vld [vmem:[%s12490_s2 + $0x5e0] ss:$16 sps:$4 sm:$0xff]   ;;  %v557_v40 = vld [vmem:[%s9532_s17 + $0x2a8] sm:$0xff] }
  0x39   : > { %1886 = vmatpush2.bf16.msra.mxu0 %v8364_v50  ;;  %v9687_v50 = vpack.c.bf16 %v509_v43, %v502_v42  ;;  %v8419_v17 = vld [vmem:[%s12490_s2 + $0x5e4] ss:$16 sps:$4 sm:$0xff]   ;;  %v8420_v30 = vld [vmem:[%s12490_s2 + $0x5c0] ss:$16 sps:$4 sm:$0xff]   ;;  %v559_v42 = vld [vmem:[%s9532_s17 + $0x2b8] sm:$0xff] }
  0x3a   : > { %1999 = vmatpush2.bf16.msra.mxu1 %v8365_v51  ;;  %1887 = vmatprep.subr.bf16.mxu0 %v8366_v52  ;;  %v8405_v51 = vld [vmem:[%s12490_s2 + $0x460] ss:$16 sps:$4 sm:$0xff]   ;;  %v9692_v52 = vpack.c.bf16 %v522_v46, %v515_v45 }
  0x3b   : > { %2000 = vmatprep.subr.bf16.mxu1 %v8368_v55  ;;  %v8410_v55 = vld [vmem:[%s12490_s2 + $0x444] ss:$16 sps:$4 sm:$0xff]   ;;  %v8423_v46 = vld [vmem:[%s12490_s2 + $0x5a0] ss:$16 sps:$4 sm:$0xff]  }
  0x3c   : > { %v542_v31 = vld [vmem:[%s9532_s17 + $0x230] sm:$0xff]  ;;  %v564_v41 = vld [vmem:[%s9532_s17 + $0x2e0] sm:$0xff] }
  0x3d   : > { %1888 = vmatpush2.bf16.msra.mxu0 %v8370_v56  ;;  %v9697_v56 = vpack.c.bf16 %v524_v48, %v517_v47  ;;  %v566_v43 = vld [vmem:[%s9532_s17 + $0x2f0] sm:$0xff]  ;;  %v9791_v47 = vpack.c.bf16 %v564_v41, %v557_v40  ;;  %v485_v41 = vld [vmem:[%s9532_s17 + $0x68] sm:$0xff] }
  0x3e   : > { %2001 = vmatpush2.bf16.msra.mxu1 %v8371_v57  ;;  %1889 = vmatprep.subr.bf16.mxu0 %v8372_v58  ;;  %v8408_v57 = vld [vmem:[%s12490_s2 + $0x440] ss:$16 sps:$4 sm:$0xff]   ;;  %v8428_v48 = vld [vmem:[%s12490_s2 + $0x584] ss:$16 sps:$4 sm:$0xff]  }
  0x3f   : > { %2002 = vmatprep.subr.bf16.mxu1 %v8374_v59  ;;  %v514_v58 = vld [vmem:[%s9532_s17 + $0x150] sm:$0xff]  ;;  %v521_v59 = vld [vmem:[%s9532_s17 + $0x188] sm:$0xff] }
  0x40   : > { %v478_v40 = vld [vmem:[%s9532_s17 + $0x30] sm:$0xff] }
  0x41   : > { %1890 = vmatpush2.bf16.msra.mxu0 %v8376_v60  ;;  %v516_v60 = vld [vmem:[%s9532_s17 + $0x160] sm:$0xff] }
  0x42   : > { %2003 = vmatpush2.bf16.msra.mxu1 %v8377_v61  ;;  %1891 = vmatprep.subr.bf16.mxu0 %v8378_v62  ;;  %v523_v61 = vld [vmem:[%s9532_s17 + $0x198] sm:$0xff]  ;;  %v8413_v62 = vld [vmem:[%s12490_s2 + $0x424] ss:$16 sps:$4 sm:$0xff]  }
  0x43   : > { %2004 = vmatprep.subr.bf16.mxu1 %v8380_v63  ;;  %v529_v63 = vld [vmem:[%s9532_s17 + $0x1c8] sm:$0xff] }
  0x45   : > { %1892 = vmatpush2.bf16.msra.mxu0 %v8382_v0  ;;  %v536_v0 = vld [vmem:[%s9532_s17 + $0x200] sm:$0xff] }
  0x46   : > { %2005 = vmatpush2.bf16.msra.mxu1 %v8383_v1  ;;  %1893 = vmatprep.subr.bf16.mxu0 %v8384_v2  ;;  %v531_v1 = vld [vmem:[%s9532_s17 + $0x1d8] sm:$0xff]  ;;  %v538_v2 = vld [vmem:[%s9532_s17 + $0x210] sm:$0xff]  ;;  %v9724_v6 = vpack.c.bf16 %v536_v0, %v529_v63  ;;  %v573_v0 = vld [vmem:[%s9532_s17 + $0x328] sm:$0xff] }
  0x47   : > { %2006 = vmatprep.subr.bf16.mxu1 %v8386_v3  ;;  %v9717_v3 = vpack.c.bf16 %v521_v59, %v514_v58  ;;  %v9729_v8 = vpack.c.bf16 %v538_v2, %v531_v1  ;;  %v563_v58 = vld [vmem:[%s9532_s17 + $0x2d8] sm:$0xff]  ;;  %v558_v59 = vld [vmem:[%s9532_s17 + $0x2b0] sm:$0xff]  ;;  %v580_v1 = vld [vmem:[%s9532_s17 + $0x360] sm:$0xff] }
  0x48   : > { %v578_v63 = vld [vmem:[%s9532_s17 + $0x350] sm:$0xff] }
  0x49   : > { %1894 = vmatpush2.bf16.msra.mxu0 %v8388_v4  ;;  %v9719_v4 = vpack.c.bf16 %v523_v61, %v516_v60  ;;  %v565_v60 = vld [vmem:[%s9532_s17 + $0x2e8] sm:$0xff]  ;;  %v8431_v61 = vld [vmem:[%s12490_s2 + $0x564] ss:$16 sps:$4 sm:$0xff]  }
  0x4a   : > { %2007 = vmatpush2.bf16.msra.mxu1 %v8389_v5  ;;  %2089 = vmatprep.subr.bf16.mxu0 %v8392_v10  ;;  %v8411_v5 = vld [vmem:[%s12490_s2 + $0x420] ss:$16 sps:$4 sm:$0xff]  }
  0x4b   : > { %2216 = vmatprep.subr.bf16.mxu1 %v8395_v11  ;;  %v528_v10 = vld [vmem:[%s9532_s17 + $0x1c0] sm:$0xff]  ;;  %v535_v11 = vld [vmem:[%s9532_s17 + $0x1f8] sm:$0xff] }
  0x4c   : > { %1896 = vmatmul.mubr.bf16.vlgmr.msra.gmra.mxu0 %v9619_v15  ;;  %v9752_v24 = vpack.c.bf16 %v535_v11, %v528_v10  ;;  %v8434_v10 = vld [vmem:[%s12490_s2 + $0x544] ss:$16 sps:$4 sm:$0xff]   ;;  %v9828_v11 = vpack.c.bf16 %v580_v1, %v573_v0  ;;  %v8450_v0 = vld [vmem:[%s12490_s2 + $0x2c8] ss:$16 sps:$4 sm:$0xff]  }
  0x4d   : > { %2009 = vmatmul.mubr.bf16.vlgmr.msra.gmra.mxu1 %v9621_v16  ;;  %2090 = vmatpush1.bf16.msra.mxu0 %v8390_v12  ;;  %v530_v12 = vld [vmem:[%s9532_s17 + $0x1d0] sm:$0xff] }
  0x4e   : > { %2217 = vmatpush1.bf16.msra.mxu1 %v8393_v19  ;;  %2091 = vmatprep.subr.bf16.mxu0 %v8398_v20  ;;  %v550_v19 = vld [vmem:[%s9532_s17 + $0x270] sm:$0xff]  ;;  %v545_v20 = vld [vmem:[%s9532_s17 + $0x248] sm:$0xff]  ;;  %v9754_v25 = vpack.c.bf16 %v537_v14, %v530_v12 }
  0x4f   : > { %1905 = vmatprep.mubr.bf16.mxu0 %v9631_v21  ;;  %2018 = vmatprep.mubr.bf16.mxu1 %v9636_v23  ;;  %v9759_v27 = vpack.c.bf16 %v550_v19, %v543_v18  ;;  %v8432_v12 = vld [vmem:[%s12490_s2 + $0x540] ss:$16 sps:$4 sm:$0xff]   ;;  %v577_v14 = vld [vmem:[%s9532_s17 + $0x348] sm:$0xff]  ;;  %v579_v18 = vld [vmem:[%s9532_s17 + $0x358] sm:$0xff] }
  0x50   : > { %2428 = vmatprep.subr.bf16.mxu1 %v8446_v13  ;;  %v570_v13 = vld [vmem:[%s9532_s17 + $0x310] sm:$0xff] }
  0x51   : > { %2092 = vmatpush1.bf16.msra.mxu0 %v8396_v22  ;;  %v552_v22 = vld [vmem:[%s9532_s17 + $0x280] sm:$0xff]  ;;  %v490_v1 = vld [vmem:[%s9532_s17 + $0x90] sm:$0xff] }
  0x52   : > { %2093 = vmatprep.subr.bf16.mxu0 %v8401_v28  ;;  %v8422_v28 = vld [vmem:[%s12490_s2 + $0x5c4] ss:$16 sps:$4 sm:$0xff]   ;;  %v9764_v29 = vpack.c.bf16 %v552_v22, %v545_v20  ;;  %v477_v20 = vld [vmem:[%s9532_s17 + $0x28] sm:$0xff] }
  0x53   : > { %v8437_v19 = vld [vmem:[%s12490_s2 + $0x524] ss:$16 sps:$4 sm:$0xff]  }
  0x54   : > { %1906 = vmatmul.mubr.bf16.gmra.mxu0 %v9653_v33  ;;  %v484_v22 = vld [vmem:[%s9532_s17 + $0x60] sm:$0xff] }
  0x55   : > { %2019 = vmatmul.mubr.bf16.gmra.mxu1 %v9655_v34  ;;  %2094 = vmatpush1.bf16.msra.mxu0 %v8399_v35  ;;  %v544_v35 = vld [vmem:[%s9532_s17 + $0x240] sm:$0xff] }
  0x56   : > { %1915 = vmatprep.mubr.bf16.mxu0 %v9660_v36  ;;  %2095 = vmatprep.subr.bf16.mxu0 %v8404_v37  ;;  %v551_v37 = vld [vmem:[%s9532_s17 + $0x278] sm:$0xff] }
  0x57   : > { %2028 = vmatprep.mubr.bf16.mxu1 %v9665_v38  ;;  %v9786_v45 = vpack.c.bf16 %v551_v37, %v544_v35  ;;  %v8438_v35 = vld [vmem:[%s12490_s2 + $0x500] ss:$16 sps:$4 sm:$0xff]  }
  0x58   : > { %v476_v37 = vld [vmem:[%s9532_s17 + $0x20] sm:$0xff] }
  0x59   : > { %2096 = vmatpush1.bf16.msra.mxu0 %v8402_v39  ;;  %v8425_v39 = vld [vmem:[%s12490_s2 + $0x5a4] ss:$16 sps:$4 sm:$0xff]  }
  0x5a   : > { %2097 = vmatprep.subr.bf16.mxu0 %v8407_v44  ;;  %v9784_v44 = vpack.c.bf16 %v549_v32, %v542_v31  ;;  %v9853_v31 = vpack.c.bf16 %v484_v22, %v477_v20  ;;  %v8440_v32 = vld [vmem:[%s12490_s2 + $0x504] ss:$16 sps:$4 sm:$0xff]   ;;  %v8453_v22 = vld [vmem:[%s12490_s2 + $0xa8] ss:$16 sps:$4 sm:$0xff]  }
  0x5b   : > { %v512_v20 = vld [vmem:[%s9532_s17 + $0x140] sm:$0xff] }
  0x5c   : > { %1916 = vmatmul.mubr.bf16.gmra.mxu0 %v9685_v49 }
  0x5d   : > { %2029 = vmatmul.mubr.bf16.gmra.mxu1 %v9687_v50  ;;  %2098 = vmatpush1.bf16.msra.mxu0 %v8405_v51  ;;  %v9796_v51 = vpack.c.bf16 %v566_v43, %v559_v42  ;;  %v12502_v42 = vmov 0   ;;  %v8443_v43 = vld [vmem:[%s12490_s2 + $0xec] ss:$16 sps:$4 sm:$0xff]  }
  0x5e   : > { %1925 = vmatprep.mubr.bf16.mxu0 %v9692_v52  ;;  %2099 = vmatprep.subr.bf16.mxu0 %v8410_v55  ;;  %v8426_v55 = vld [vmem:[%s12490_s2 + $0x580] ss:$16 sps:$4 sm:$0xff]  }
  0x5f   : > { %2038 = vmatprep.mubr.bf16.mxu1 %v9697_v56 }
  0x61   : > { %2100 = vmatpush1.bf16.msra.mxu0 %v8408_v57  ;;  %v556_v57 = vld [vmem:[%s9532_s17 + $0x2a0] sm:$0xff] }
  0x62   : > { %2101 = vmatprep.subr.bf16.mxu0 %v8413_v62  ;;  %v571_v62 = vld [vmem:[%s9532_s17 + $0x318] sm:$0xff]  ;;  %v9816_v2 = vpack.c.bf16 %v563_v58, %v556_v57  ;;  %v9880_v57 = vpack.c.bf16 %v485_v41, %v478_v40  ;;  %v504_v41 = vld [vmem:[%s9532_s17 + $0x100] sm:$0xff] }
  0x63   : > { %v491_v58 = vld [vmem:[%s9532_s17 + $0x98] sm:$0xff] }
  0x64   : > { %1926 = vmatmul.mubr.bf16.gmra.mxu0 %v9717_v3 }
  0x65   : > { %2039 = vmatmul.mubr.bf16.gmra.mxu1 %v9719_v4  ;;  %2102 = vmatpush1.bf16.msra.mxu0 %v8411_v5  ;;  %v9818_v5 = vpack.c.bf16 %v565_v60, %v558_v59  ;;  %v498_v59 = vld [vmem:[%s9532_s17 + $0xd0] sm:$0xff]  ;;  %v8449_v60 = vld [vmem:[%s12490_s2 + $0xcc] ss:$16 sps:$4 sm:$0xff]  }
  0x66   : > { %1935 = vmatprep.mubr.bf16.mxu0 %v9724_v6  ;;  %2103 = vmatprep.subr.bf16.mxu0 %v8416_v7  ;;  %v8429_v7 = vld [vmem:[%s12490_s2 + $0x560] ss:$16 sps:$4 sm:$0xff]  }
  0x67   : > { %2048 = vmatprep.mubr.bf16.mxu1 %v9729_v8 }
  0x69   : > { %2104 = vmatpush1.bf16.msra.mxu0 %v8414_v9  ;;  %v9823_v9 = vpack.c.bf16 %v578_v63, %v571_v62  ;;  %v8447_v62 = vld [vmem:[%s12490_s2 + $0xc8] ss:$16 sps:$4 sm:$0xff]   ;;  %v9893_v63 = vpack.c.bf16 %v498_v59, %v491_v58  ;;  %v8467_v58 = vld [vmem:[%s12490_s2 + $0x6c] ss:$16 sps:$4 sm:$0xff]  }
  0x6a   : > { %2105 = vmatprep.subr.bf16.mxu0 %v8419_v17  ;;  %v572_v17 = vld [vmem:[%s9532_s17 + $0x320] sm:$0xff]  ;;  %v8470_v59 = vld [vmem:[%s12490_s2 + $0x26c] ss:$16 sps:$4 sm:$0xff]  }
  0x6c   : > { %1936 = vmatmul.mubr.bf16.gmra.mxu0 %v9752_v24 }
  0x6d   : > { %2049 = vmatmul.mubr.bf16.gmra.mxu1 %v9754_v25  ;;  %2106 = vmatpush2.bf16.msra.mxu0 %v8417_v26  ;;  %v9846_v26 = vpack.c.bf16 %v577_v14, %v570_v13  ;;  %v8455_v13 = vld [vmem:[%s12490_s2 + $0xac] ss:$16 sps:$4 sm:$0xff]  }
  0x6e   : > { %1945 = vmatprep.mubr.bf16.mxu0 %v9759_v27  ;;  %2107 = vmatprep.subr.bf16.mxu0 %v8422_v28  ;;  %v9848_v28 = vpack.c.bf16 %v579_v18, %v572_v17  ;;  %v8458_v14 = vld [vmem:[%s12490_s2 + $0x2ac] ss:$16 sps:$4 sm:$0xff]  }
  0x6f   : > { %2058 = vmatprep.mubr.bf16.mxu1 %v9764_v29  ;;  %v505_v17 = vld [vmem:[%s9532_s17 + $0x108] sm:$0xff] }
  0x70   : > { %v9937_v40 = vpack.c.bf16 %v512_v20, %v505_v17  ;;  %v518_v20 = vld [vmem:[%s9532_s17 + $0x170] sm:$0xff] }
  0x71   : > { %2108 = vmatpush2.bf16.msra.mxu0 %v8420_v30  ;;  %v8435_v30 = vld [vmem:[%s12490_s2 + $0x520] ss:$16 sps:$4 sm:$0xff]  }
  0x72   : > { %2109 = vmatprep.subr.bf16.mxu0 %v8425_v39  ;;  %v483_v39 = vld [vmem:[%s9532_s17 + $0x58] sm:$0xff] }
  0x74   : > { %1946 = vmatmul.mubr.bf16.gmra.mxu0 %v9784_v44 }
  0x75   : > { %2059 = vmatmul.mubr.bf16.gmra.mxu1 %v9786_v45  ;;  %2110 = vmatpush2.bf16.msra.mxu0 %v8423_v46  ;;  %v8441_v46 = vld [vmem:[%s12490_s2 + $0xe8] ss:$16 sps:$4 sm:$0xff]  }
  0x76   : > { %1955 = vmatprep.mubr.bf16.mxu0 %v9791_v47  ;;  %2111 = vmatprep.subr.bf16.mxu0 %v8428_v48  ;;  %v8444_v48 = vld [vmem:[%s12490_s2 + $0x2e8] ss:$16 sps:$4 sm:$0xff]  }
  0x77   : > { %2068 = vmatprep.mubr.bf16.mxu1 %v9796_v51 }
  0x79   : > { %2112 = vmatpush2.bf16.msra.mxu0 %v8426_v55  ;;  %v9878_v55 = vpack.c.bf16 %v483_v39, %v476_v37  ;;  %v8459_v37 = vld [vmem:[%s12490_s2 + $0x88] ss:$16 sps:$4 sm:$0xff]  }
  0x7a   : > { %2113 = vmatprep.subr.bf16.mxu0 %v8431_v61  ;;  %v8452_v61 = vld [vmem:[%s12490_s2 + $0x2cc] ss:$16 sps:$4 sm:$0xff]   ;;  %v8462_v39 = vld [vmem:[%s12490_s2 + $0x288] ss:$16 sps:$4 sm:$0xff]  }
  0x7c   : > { %1956 = vmatmul.mubr.bf16.gmra.mxu0 %v9816_v2 }
  0x7d   : > { %2069 = vmatmul.mubr.bf16.gmra.mxu1 %v9818_v5  ;;  %2114 = vmatpush2.bf16.msra.mxu0 %v8429_v7  ;;  %v497_v7 = vld [vmem:[%s9532_s17 + $0xc8] sm:$0xff] }
  0x7e   : > { %1965 = vmatprep.mubr.bf16.mxu0 %v9823_v9  ;;  %2115 = vmatprep.subr.bf16.mxu0 %v8434_v10  ;;  %v492_v10 = vld [vmem:[%s9532_s17 + $0xa0] sm:$0xff]  ;;  %v9914_v18 = vpack.c.bf16 %v497_v7, %v490_v1  ;;  %v519_v1 = vld [vmem:[%s9532_s17 + $0x178] sm:$0xff]  ;;  %v526_v7 = vld [vmem:[%s9532_s17 + $0x1b0] sm:$0xff] }
  0x7f   : > { %2078 = vmatprep.mubr.bf16.mxu1 %v9828_v11  ;;  %v9978_v17 = vpack.c.bf16 %v526_v7, %v519_v1  ;;  %v8486_v1 = vld [vmem:[%s12490_s2 + $0x208] ss:$16 sps:$4 sm:$0xff]  }
  0x81   : > { %2116 = vmatpush2.bf16.msra.mxu0 %v8432_v12  ;;  %v499_v12 = vld [vmem:[%s9532_s17 + $0xd8] sm:$0xff] }
  0x82   : > { %2117 = vmatprep.subr.bf16.mxu0 %v8437_v19  ;;  %v9916_v19 = vpack.c.bf16 %v499_v12, %v492_v10  ;;  %v8473_v10 = vld [vmem:[%s12490_s2 + $0x4c] ss:$16 sps:$4 sm:$0xff]  }
  0x83   : > { %v8476_v12 = vld [vmem:[%s12490_s2 + $0x24c] ss:$16 sps:$4 sm:$0xff]  }
  0x84   : > { %1966 = vmatmul.mubr.bf16.gmra.mxu0 %v9846_v26 }
  0x85   : > { %2079 = vmatmul.mubr.bf16.gmra.mxu1 %v9848_v28  ;;  %2118 = vmatpush2.bf16.msra.mxu0 %v8435_v30  ;;  %v8456_v30 = vld [vmem:[%s12490_s2 + $0x2a8] ss:$16 sps:$4 sm:$0xff]  }
  0x86   : > { %2121 = vmatprep.mubr.bf16.mxu0 %v9853_v31  ;;  %2119 = vmatprep.subr.bf16.mxu0 %v8440_v32  ;;  %v8461_v32 = vld [vmem:[%s12490_s2 + $0x8c] ss:$16 sps:$4 sm:$0xff]  }
  0x87   : > { %2234 = vmatprep.mubr.bf16.mxu1 %v12502_v42 }
  0x89   : > { %2120 = vmatpush2.bf16.msra.mxu0 %v8438_v35  ;;  %v8464_v35 = vld [vmem:[%s12490_s2 + $0x28c] ss:$16 sps:$4 sm:$0xff]  }
  0x8a   : > { %2315 = vmatprep.subr.bf16.mxu0 %v8443_v43  ;;  %v511_v43 = vld [vmem:[%s9532_s17 + $0x138] sm:$0xff] }
  0x8c   : > { %2122 = vmatmul.mubr.bf16.vlgmr.msra.gmra.mxu0 %v9878_v55 }
  0x8d   : > { %7689 = vmatmul.mubr.msk.bf16.vlgmr.msra.gmra.mxu1 %vm1838_vm0, %v9880_v57  ;;  %2316 = vmatpush1.bf16.msra.mxu0 %v8441_v46  ;;  %v506_v46 = vld [vmem:[%s9532_s17 + $0x110] sm:$0xff] }
  0x8e   : > { %2429 = vmatpush1.bf16.msra.mxu1 %v8444_v48  ;;  %2317 = vmatprep.subr.bf16.mxu0 %v8449_v60  ;;  %v513_v48 = vld [vmem:[%s9532_s17 + $0x148] sm:$0xff] }
  0x8f   : > { %2430 = vmatprep.subr.bf16.mxu1 %v8452_v61  ;;  %2131 = vmatprep.mubr.bf16.mxu0 %v9893_v63  ;;  %v8465_v60 = vld [vmem:[%s12490_s2 + $0x68] ss:$16 sps:$4 sm:$0xff]  }
  0x90   : > { %2244 = vmatprep.mubr.bf16.mxu1 %v12502_v42  ;;  %v8468_v61 = vld [vmem:[%s12490_s2 + $0x268] ss:$16 sps:$4 sm:$0xff]  }
  0x91   : > { %2318 = vmatpush1.bf16.msra.mxu0 %v8447_v62  ;;  %v9960_v62 = vpack.c.bf16 %v511_v43, %v504_v41  ;;  %v8480_v41 = vld [vmem:[%s12490_s2 + $0x228] ss:$16 sps:$4 sm:$0xff]  }
  0x92   : > { %2431 = vmatpush1.bf16.msra.mxu1 %v8450_v0  ;;  %2319 = vmatprep.subr.bf16.mxu0 %v8455_v13  ;;  %v9962_v0 = vpack.c.bf16 %v513_v48, %v506_v46  ;;  %v8471_v13 = vld [vmem:[%s12490_s2 + $0x48] ss:$16 sps:$4 sm:$0xff]  }
  0x93   : > { %2432 = vmatprep.subr.bf16.mxu1 %v8458_v14  ;;  %v8474_v14 = vld [vmem:[%s12490_s2 + $0x248] ss:$16 sps:$4 sm:$0xff]  }
  0x94   : > { %2132 = vmatmul.mubr.bf16.gmra.mxu0 %v9914_v18  ;;  %v533_v48 = vld [vmem:[%s9532_s17 + $0x1e8] sm:$0xff] }
  0x95   : > { %7690 = vmatmul.mubr.msk.bf16.gmra.mxu1 %vm1838_vm0, %v9916_v19  ;;  %2320 = vmatpush1.bf16.msra.mxu0 %v8453_v22  ;;  %v525_v22 = vld [vmem:[%s9532_s17 + $0x1a8] sm:$0xff] }
  0x96   : > { %2433 = vmatpush1.bf16.msra.mxu1 %v8456_v30  ;;  %2321 = vmatprep.subr.bf16.mxu0 %v8461_v32  ;;  %v520_v30 = vld [vmem:[%s9532_s17 + $0x180] sm:$0xff]  ;;  %v527_v32 = vld [vmem:[%s9532_s17 + $0x1b8] sm:$0xff]  ;;  %v10001_v43 = vpack.c.bf16 %v525_v22, %v518_v20 }
  0x97   : > { %2434 = vmatprep.subr.bf16.mxu1 %v8464_v35  ;;  %2141 = vmatprep.mubr.bf16.mxu0 %v9937_v40  ;;  %v8479_v35 = vld [vmem:[%s12490_s2 + $0x2c] ss:$16 sps:$4 sm:$0xff]   ;;  %v10003_v46 = vpack.c.bf16 %v527_v32, %v520_v30  ;;  %v8489_v30 = vld [vmem:[%s12490_s2 + $0x1e8] ss:$16 sps:$4 sm:$0xff]  }
  0x98   : > { %2254 = vmatprep.mubr.bf16.mxu1 %v12502_v42  ;;  %v8491_v20 = vld [vmem:[%s12490_s2 + $0x1ec] ss:$16 sps:$4 sm:$0xff]   ;;  %v8492_v32 = vld [vmem:[%s12490_s2 + $0x3e8] ss:$16 sps:$4 sm:$0xff]  }
  0x99   : > { %2322 = vmatpush1.bf16.msra.mxu0 %v8459_v37  ;;  %v8482_v37 = vld [vmem:[%s12490_s2 + $0x22c] ss:$16 sps:$4 sm:$0xff]  }
  0x9a   : > { %2435 = vmatpush1.bf16.msra.mxu1 %v8462_v39  ;;  %2323 = vmatprep.subr.bf16.mxu0 %v8467_v58  ;;  %v8477_v39 = vld [vmem:[%s12490_s2 + $0x28] ss:$16 sps:$4 sm:$0xff]   ;;  %v540_v58 = vld [vmem:[%s9532_s17 + $0x220] sm:$0xff]  ;;  %v8494_v22 = vld [vmem:[%s12490_s2 + $0x3ec] ss:$16 sps:$4 sm:$0xff]  }
  0x9b   : > { %2436 = vmatprep.subr.bf16.mxu1 %v8470_v59  ;;  %v8485_v59 = vld [vmem:[%s12490_s2 + $0xc] ss:$16 sps:$4 sm:$0xff]   ;;  %v10019_v7 = vpack.c.bf16 %v540_v58, %v533_v48 }
  0x9c   : > { %2142 = vmatmul.mubr.bf16.gmra.mxu0 %v9960_v62  ;;  %v8497_v48 = vld [vmem:[%s12490_s2 + $0x1cc] ss:$16 sps:$4 sm:$0xff]  }
  0x9d   : > { %7691 = vmatmul.mubr.msk.bf16.gmra.mxu1 %vm1838_vm0, %v9962_v0  ;;  %2324 = vmatpush1.bf16.msra.mxu0 %v8465_v60  ;;  %v8488_v60 = vld [vmem:[%s12490_s2 + $0x20c] ss:$16 sps:$4 sm:$0xff]  }
  0x9e   : > { %2437 = vmatpush1.bf16.msra.mxu1 %v8468_v61  ;;  %2325 = vmatprep.subr.bf16.mxu0 %v8473_v10  ;;  %v8483_v61 = vld [vmem:[%s12490_s2 + $0x8] ss:$16 sps:$4 sm:$0xff]   ;;  %v532_v10 = vld [vmem:[%s9532_s17 + $0x1e0] sm:$0xff]  ;;  %v8500_v58 = vld [vmem:[%s12490_s2 + $0x3cc] ss:$16 sps:$4 sm:$0xff]  }
  0x9f   : > { %2438 = vmatprep.subr.bf16.mxu1 %v8476_v12  ;;  %2151 = vmatprep.mubr.bf16.mxu0 %v9978_v17  ;;  %v539_v12 = vld [vmem:[%s9532_s17 + $0x218] sm:$0xff] }
  0xa0   : > { %2264 = vmatprep.mubr.bf16.mxu1 %v12502_v42 }
  0xa1   : > { %2326 = vmatpush1.bf16.msra.mxu0 %v8471_v13  ;;  %v534_v13 = vld [vmem:[%s9532_s17 + $0x1f0] sm:$0xff] }
  0xa2   : > { %2439 = vmatpush1.bf16.msra.mxu1 %v8474_v14  ;;  %2327 = vmatprep.subr.bf16.mxu0 %v8479_v35  ;;  %v541_v14 = vld [vmem:[%s9532_s17 + $0x228] sm:$0xff]  ;;  %v10042_v35 = vpack.c.bf16 %v539_v12, %v532_v10  ;;  %v548_v12 = vld [vmem:[%s9532_s17 + $0x260] sm:$0xff] }
  0xa3   : > { %2440 = vmatprep.subr.bf16.mxu1 %v8482_v37  ;;  %v10044_v37 = vpack.c.bf16 %v541_v14, %v534_v13  ;;  %v553_v10 = vld [vmem:[%s9532_s17 + $0x288] sm:$0xff]  ;;  %v555_v13 = vld [vmem:[%s9532_s17 + $0x298] sm:$0xff] }
  0xa4   : > { %2152 = vmatmul.mubr.bf16.gmra.mxu0 %v10001_v43  ;;  %v8503_v14 = vld [vmem:[%s12490_s2 + $0x1ac] ss:$16 sps:$4 sm:$0xff]  }
  0xa5   : > { %7692 = vmatmul.mubr.msk.bf16.gmra.mxu1 %vm1838_vm0, %v10003_v46  ;;  %2328 = vmatpush1.bf16.msra.mxu0 %v8477_v39  ;;  %v547_v39 = vld [vmem:[%s9532_s17 + $0x258] sm:$0xff] }
  0xa6   : > { %2441 = vmatpush1.bf16.msra.mxu1 %v8480_v41  ;;  %2329 = vmatprep.subr.bf16.mxu0 %v8485_v59  ;;  %v554_v41 = vld [vmem:[%s9532_s17 + $0x290] sm:$0xff]  ;;  %v8495_v59 = vld [vmem:[%s12490_s2 + $0x1c8] ss:$16 sps:$4 sm:$0xff]  }
  0xa7   : > { %2442 = vmatprep.subr.bf16.mxu1 %v8488_v60  ;;  %2161 = vmatprep.mubr.bf16.mxu0 %v10019_v7  ;;  %v8498_v60 = vld [vmem:[%s12490_s2 + $0x3c8] ss:$16 sps:$4 sm:$0xff]  }
  0xa8   : > { %2274 = vmatprep.mubr.bf16.mxu1 %v12502_v42 }
  0xa9   : > { %2330 = vmatpush1.bf16.msra.mxu0 %v8483_v61  ;;  %v10060_v61 = vpack.c.bf16 %v554_v41, %v547_v39  ;;  %v561_v39 = vld [vmem:[%s9532_s17 + $0x2c8] sm:$0xff]  ;;  %v568_v41 = vld [vmem:[%s9532_s17 + $0x300] sm:$0xff] }
  0xaa   : > { %2443 = vmatpush1.bf16.msra.mxu1 %v8486_v1  ;;  %2331 = vmatprep.subr.bf16.mxu0 %v8491_v20  ;;  %v546_v1 = vld [vmem:[%s9532_s17 + $0x250] sm:$0xff]  ;;  %v8506_v20 = vld [vmem:[%s12490_s2 + $0x3ac] ss:$16 sps:$4 sm:$0xff]  }
  0xab   : > { %2444 = vmatprep.subr.bf16.mxu1 %v8494_v22  ;;  %v8501_v22 = vld [vmem:[%s12490_s2 + $0x1a8] ss:$16 sps:$4 sm:$0xff]  }
  0xac   : > { %2162 = vmatmul.mubr.bf16.gmra.mxu0 %v10042_v35 }
  0xad   : > { %7693 = vmatmul.mubr.msk.bf16.gmra.mxu1 %vm1838_vm0, %v10044_v37  ;;  %2332 = vmatpush2.bf16.msra.mxu0 %v8489_v30  ;;  %v10080_v30 = vpack.c.bf16 %v553_v10, %v546_v1  ;;  %v8512_v1 = vld [vmem:[%s12490_s2 + $0x38c] ss:$16 sps:$4 sm:$0xff]   ;;  %v10101_v10 = vpack.c.bf16 %v568_v41, %v561_v39 }
  0xae   : > { %2445 = vmatpush2.bf16.msra.mxu1 %v8492_v32  ;;  %2333 = vmatprep.subr.bf16.mxu0 %v8497_v48  ;;  %v10082_v32 = vpack.c.bf16 %v555_v13, %v548_v12  ;;  %v8504_v48 = vld [vmem:[%s12490_s2 + $0x3a8] ss:$16 sps:$4 sm:$0xff]   ;;  %v560_v12 = vld [vmem:[%s9532_s17 + $0x2c0] sm:$0xff]  ;;  %v8515_v39 = vld [vmem:[%s12490_s2 + $0x16c] ss:$16 sps:$4 sm:$0xff]  }
  0xaf   : > { %2446 = vmatprep.subr.bf16.mxu1 %v8500_v58  ;;  %2171 = vmatprep.mubr.bf16.mxu0 %v10060_v61  ;;  %12521 = vst [vmem:[#allocation2_spill] sm:$0xff] %v10080_v30  ;;  %v8509_v58 = vld [vmem:[%s12490_s2 + $0x18c] ss:$16 sps:$4 sm:$0xff]   ;;  %12523 = vst [vmem:[#allocation4_spill] sm:$0xff] %v10101_v10 }
  0xb0   : > { %2284 = vmatprep.mubr.bf16.mxu1 %v12502_v42  ;;  %12522 = vst [vmem:[#allocation3_spill] sm:$0xff] %v10082_v32  ;;  %v567_v13 = vld [vmem:[%s9532_s17 + $0x2f8] sm:$0xff] }
  0xb1   : > { %2334 = vmatpush2.bf16.msra.mxu0 %v8495_v59  ;;  %v8507_v59 = vld [vmem:[%s12490_s2 + $0x188] ss:$16 sps:$4 sm:$0xff]   ;;  %v8518_v41 = vld [vmem:[%s12490_s2 + $0x36c] ss:$16 sps:$4 sm:$0xff]  }
  0xb2   : > { %2447 = vmatpush2.bf16.msra.mxu1 %v8498_v60  ;;  %2335 = vmatprep.subr.bf16.mxu0 %v8503_v14  ;;  %v8510_v60 = vld [vmem:[%s12490_s2 + $0x388] ss:$16 sps:$4 sm:$0xff]   ;;  %v562_v14 = vld [vmem:[%s9532_s17 + $0x2d0] sm:$0xff] }
  0xb3   : > { %2448 = vmatprep.subr.bf16.mxu1 %v8506_v20  ;;  %v569_v20 = vld [vmem:[%s9532_s17 + $0x308] sm:$0xff] }
  0xb4   : > { %2172 = vmatmul.mubr.bf16.gmra.mxu0 %v10080_v30  ;;  %v8527_v30 = vld [vmem:[%s12490_s2 + $0x12c] ss:$16 sps:$4 sm:$0xff]  }
  0xb5   : > { %7694 = vmatmul.mubr.msk.bf16.gmra.mxu1 %vm1838_vm0, %v10082_v32  ;;  %2336 = vmatpush2.bf16.msra.mxu0 %v8501_v22  ;;  %v8513_v22 = vld [vmem:[%s12490_s2 + $0x168] ss:$16 sps:$4 sm:$0xff]   ;;  %v582_v32 = vld [vmem:[%s9532_s17 + $0x370] sm:$0xff] }
  0xb6   : > { %2449 = vmatpush2.bf16.msra.mxu1 %v8504_v48  ;;  %2337 = vmatprep.subr.bf16.mxu0 %v8509_v58  ;;  %v575_v48 = vld [vmem:[%s9532_s17 + $0x338] sm:$0xff]  ;;  %v10122_v58 = vpack.c.bf16 %v567_v13, %v560_v12 }
  0xb7   : > { %2450 = vmatprep.subr.bf16.mxu1 %v8512_v1  ;;  %2181 = vmatprep.mubr.bf16.mxu0 %v10101_v10  ;;  %v10124_v1 = vpack.c.bf16 %v569_v20, %v562_v14  ;;  %v8521_v10 = vld [vmem:[%s12490_s2 + $0x14c] ss:$16 sps:$4 sm:$0xff]   ;;  %v8519_v13 = vld [vmem:[%s12490_s2 + $0x148] ss:$16 sps:$4 sm:$0xff]   ;;  %v574_v14 = vld [vmem:[%s9532_s17 + $0x330] sm:$0xff] }
  0xb8   : > { %2294 = vmatprep.mubr.bf16.mxu1 %v12502_v42  ;;  %12524 = vst [vmem:[#allocation5_spill] sm:$0xff] %v10122_v58  ;;  %v8516_v42 = vld [vmem:[%s12490_s2 + $0x368] ss:$16 sps:$4 sm:$0xff]   ;;  %v8524_v12 = vld [vmem:[%s12490_s2 + $0x34c] ss:$16 sps:$4 sm:$0xff]  }
  0xb9   : > { %12525 = vst [vmem:[#allocation6_spill] sm:$0xff] %v10124_v1  ;;  %2338 = vmatpush2.bf16.msra.mxu0 %v8507_v59  ;;  %v8522_v59 = vld [vmem:[%s12490_s2 + $0x348] ss:$16 sps:$4 sm:$0xff]  }
  0xba   : > { %2451 = vmatpush2.bf16.msra.mxu1 %v8510_v60  ;;  %2339 = vmatprep.subr.bf16.mxu0 %v8515_v39  ;;  %v10142_v60 = vpack.c.bf16 %v582_v32, %v575_v48  ;;  %v581_v20 = vld [vmem:[%s9532_s17 + $0x368] sm:$0xff]  ;;  %v576_v39 = vld [vmem:[%s9532_s17 + $0x340] sm:$0xff]  ;;  %v12527_v48 = vmov 0  }
  0xbb   : > { %2452 = vmatprep.subr.bf16.mxu1 %v8518_v41  ;;  %v583_v41 = vld [vmem:[%s9532_s17 + $0x378] sm:$0xff] }
  0xbc   : > { %12526 = vst [vmem:[#allocation7_spill] sm:$0xff] %v10142_v60  ;;  %2182 = vmatmul.mubr.bf16.gmra.mxu0 %v10122_v58  ;;  %v8530_v32 = vld [vmem:[%s12490_s2 + $0x32c] ss:$16 sps:$4 sm:$0xff]   ;;  %v8531_v58 = vld [vmem:[%s12490_s2 + $0x108] ss:$16 sps:$4 sm:$0xff]  }
  0xbd   : > { %7695 = vmatmul.mubr.msk.bf16.gmra.mxu1 %vm1838_vm0, %v10124_v1  ;;  %2340 = vmatpush2.bf16.msra.mxu0 %v8513_v22  ;;  %v8525_v1 = vld [vmem:[%s12490_s2 + $0x128] ss:$16 sps:$4 sm:$0xff]   ;;  %v10165_v22 = vpack.c.bf16 %v581_v20, %v574_v14 }
  0xbe   : > { %2453 = vmatpush2.bf16.msra.mxu1 %v8516_v42  ;;  %2341 = vmatprep.subr.bf16.mxu0 %v8521_v10  ;;  %v8528_v42 = vld [vmem:[%s12490_s2 + $0x328] ss:$16 sps:$4 sm:$0xff]   ;;  %v10167_v10 = vpack.c.bf16 %v583_v41, %v576_v39  ;;  %v8590_v39 = vld [vmem:[%s12492_s4 + $0x74] ss:$8 sps:$4 sm:$0xff]  }
  0xbf   : > { %2454 = vmatprep.subr.bf16.mxu1 %v8524_v12  ;;  %2191 = vmatprep.mubr.bf16.mxu0 %v10142_v60  ;;  %v8533_v12 = vld [vmem:[%s12490_s2 + $0x10c] ss:$16 sps:$4 sm:$0xff]   ;;  %v8534_v14 = vld [vmem:[%s12490_s2 + $0x308] ss:$16 sps:$4 sm:$0xff]  }
  0xc0   : > { %2304 = vmatprep.mubr.bf16.mxu1 %v12527_v48  ;;  %v8536_v60 = vld [vmem:[%s12490_s2 + $0x30c] ss:$16 sps:$4 sm:$0xff]   ;;  %v8540_v20 = vld [vmem:[%s12490_s2 + $0x608] ss:$16 sps:$4 sm:$0xff]  }
  0xc1   : > { %2342 = vmatpush2.bf16.msra.mxu0 %v8519_v13  ;;  %v8542_v13 = vld [vmem:[%s12490_s2 + $0x60c] ss:$16 sps:$4 sm:$0xff]  }
  0xc2   : > { %2455 = vmatpush2.bf16.msra.mxu1 %v8522_v59  ;;  %2343 = vmatprep.subr.bf16.mxu0 %v8527_v30  ;;  %v8539_v30 = vld [vmem:[%s12490_s2 + $0x4ec] ss:$16 sps:$4 sm:$0xff]   ;;  %v8537_v59 = vld [vmem:[%s12490_s2 + $0x4e8] ss:$16 sps:$4 sm:$0xff]  }
  0xc3   : > { %2456 = vmatprep.subr.bf16.mxu1 %v8530_v32 }
  0xc4   : > { %2192 = vmatmul.mubr.bf16.gmra.mxu0 %v10165_v22 }
  0xc5   : > { %7696 = vmatmul.mubr.msk.bf16.gmra.mxu1 %vm1838_vm0, %v10167_v10  ;;  %2344 = vmatpush2.bf16.msra.mxu0 %v8525_v1  ;;  %v8545_v1 = vld [vmem:[%s12490_s2 + $0x4cc] ss:$16 sps:$4 sm:$0xff]  }
  0xc6   : > { %2457 = vmatpush2.bf16.msra.mxu1 %v8528_v42  ;;  %2345 = vmatprep.subr.bf16.mxu0 %v8533_v12 }
  0xc7   : > { %2458 = vmatprep.subr.bf16.mxu1 %v8536_v60  ;;  %2347 = vmatprep.mubr.bf16.mxu0 %v9553_v53  ;;  %v8543_v53 = vld [vmem:[%s12490_s2 + $0x4c8] ss:$16 sps:$4 sm:$0xff]  }
  0xc8   : > { %2460 = vmatprep.mubr.bf16.mxu1 %v9555_v54  ;;  %v8548_v54 = vld [vmem:[%s12490_s2 + $0x4ac] ss:$16 sps:$4 sm:$0xff]   ;;  %v8582_v60 = vld [vmem:[%s12490_s2 + $0x528] ss:$16 sps:$4 sm:$0xff]  }
  0xc9   : > { %2346 = vmatpush2.bf16.msra.mxu0 %v8531_v58  ;;  %v8546_v58 = vld [vmem:[%s12490_s2 + $0x4a8] ss:$16 sps:$4 sm:$0xff]  }
  0xca   : > { %2459 = vmatpush2.bf16.msra.mxu1 %v8534_v14  ;;  %2541 = vmatprep.subr.bf16.mxu0 %v8539_v30  ;;  %v8591_v30 = vld [vmem:[%s12492_s4 + $0x60] ss:$8 sps:$4 sm:$0xff]  }
  0xcb   : > { %2668 = vmatprep.subr.bf16.mxu1 %v8542_v13 }
  0xcc   : > { %2348 = vmatmul.mubr.bf16.vlgmr.msra.gmra.mxu0 %v9619_v15  ;;  %v8551_v15 = vld [vmem:[%s12490_s2 + $0x48c] ss:$16 sps:$4 sm:$0xff]  }
  0xcd   : > { %2461 = vmatmul.mubr.bf16.vlgmr.msra.gmra.mxu1 %v9621_v16  ;;  %2542 = vmatpush1.bf16.msra.mxu0 %v8537_v59  ;;  %v8549_v16 = vld [vmem:[%s12490_s2 + $0x488] ss:$16 sps:$4 sm:$0xff]   ;;  %v8596_v59 = vld [vmem:[%s12492_s4 + $0x54] ss:$8 sps:$4 sm:$0xff]  }
  0xce   : > { %2669 = vmatpush1.bf16.msra.mxu1 %v8540_v20  ;;  %2543 = vmatprep.subr.bf16.mxu0 %v8545_v1 }
  0xcf   : > { %2357 = vmatprep.mubr.bf16.mxu0 %v9631_v21  ;;  %2470 = vmatprep.mubr.bf16.mxu1 %v9636_v23  ;;  %v8554_v21 = vld [vmem:[%s12490_s2 + $0x46c] ss:$16 sps:$4 sm:$0xff]   ;;  %v8552_v23 = vld [vmem:[%s12490_s2 + $0x468] ss:$16 sps:$4 sm:$0xff]  }
  0xd1   : > { %2544 = vmatpush1.bf16.msra.mxu0 %v8543_v53 }
  0xd2   : > { %2545 = vmatprep.subr.bf16.mxu0 %v8548_v54 }
  0xd4   : > { %2358 = vmatmul.mubr.bf16.gmra.mxu0 %v9653_v33  ;;  %v8557_v33 = vld [vmem:[%s12490_s2 + $0x44c] ss:$16 sps:$4 sm:$0xff]  }
  0xd5   : > { %2471 = vmatmul.mubr.bf16.gmra.mxu1 %v9655_v34  ;;  %2546 = vmatpush1.bf16.msra.mxu0 %v8546_v58  ;;  %v8555_v34 = vld [vmem:[%s12490_s2 + $0x448] ss:$16 sps:$4 sm:$0xff]  }
  0xd6   : > { %2367 = vmatprep.mubr.bf16.mxu0 %v9660_v36  ;;  %2547 = vmatprep.subr.bf16.mxu0 %v8551_v15  ;;  %v8560_v36 = vld [vmem:[%s12490_s2 + $0x42c] ss:$16 sps:$4 sm:$0xff]  }
  0xd7   : > { %2480 = vmatprep.mubr.bf16.mxu1 %v9665_v38  ;;  %v8558_v38 = vld [vmem:[%s12490_s2 + $0x428] ss:$16 sps:$4 sm:$0xff]   ;;  %v8599_v15 = vld [vmem:[%s12492_s4 + $0x44] ss:$8 sps:$4 sm:$0xff]  }
  0xd9   : > { %2548 = vmatpush1.bf16.msra.mxu0 %v8549_v16 }
  0xda   : > { %2549 = vmatprep.subr.bf16.mxu0 %v8554_v21 }
  0xdc   : > { %2368 = vmatmul.mubr.bf16.gmra.mxu0 %v9685_v49  ;;  %v8563_v49 = vld [vmem:[%s12490_s2 + $0x40c] ss:$16 sps:$4 sm:$0xff]  }
  0xdd   : > { %2481 = vmatmul.mubr.bf16.gmra.mxu1 %v9687_v50  ;;  %2550 = vmatpush1.bf16.msra.mxu0 %v8552_v23  ;;  %v8561_v50 = vld [vmem:[%s12490_s2 + $0x408] ss:$16 sps:$4 sm:$0xff]  }
  0xde   : > { %2377 = vmatprep.mubr.bf16.mxu0 %v9692_v52  ;;  %2551 = vmatprep.subr.bf16.mxu0 %v8557_v33  ;;  %v8566_v52 = vld [vmem:[%s12490_s2 + $0x5ec] ss:$16 sps:$4 sm:$0xff]  }
  0xdf   : > { %2490 = vmatprep.mubr.bf16.mxu1 %v9697_v56  ;;  %v8564_v56 = vld [vmem:[%s12490_s2 + $0x5e8] ss:$16 sps:$4 sm:$0xff]  }
  0xe1   : > { %2552 = vmatpush1.bf16.msra.mxu0 %v8555_v34  ;;  %v8597_v34 = vld [vmem:[%s12492_s4 + $0x40] ss:$8 sps:$4 sm:$0xff]  }
  0xe2   : > { %2553 = vmatprep.subr.bf16.mxu0 %v8560_v36 }
  0xe4   : > { %2378 = vmatmul.mubr.bf16.gmra.mxu0 %v9717_v3  ;;  %v8569_v3 = vld [vmem:[%s12490_s2 + $0x5cc] ss:$16 sps:$4 sm:$0xff]  }
  0xe5   : > { %2491 = vmatmul.mubr.bf16.gmra.mxu1 %v9719_v4  ;;  %2554 = vmatpush1.bf16.msra.mxu0 %v8558_v38  ;;  %v8567_v4 = vld [vmem:[%s12490_s2 + $0x5c8] ss:$16 sps:$4 sm:$0xff]   ;;  %v8602_v38 = vld [vmem:[%s12492_s4 + $0x34] ss:$8 sps:$4 sm:$0xff]  }
  0xe6   : > { %2387 = vmatprep.mubr.bf16.mxu0 %v9724_v6  ;;  %2555 = vmatprep.subr.bf16.mxu0 %v8563_v49  ;;  %v8572_v6 = vld [vmem:[%s12490_s2 + $0x5ac] ss:$16 sps:$4 sm:$0xff]  }
  0xe7   : > { %2500 = vmatprep.mubr.bf16.mxu1 %v9729_v8  ;;  %v8570_v8 = vld [vmem:[%s12490_s2 + $0x5a8] ss:$16 sps:$4 sm:$0xff]  }
  0xe9   : > { %2556 = vmatpush1.bf16.msra.mxu0 %v8561_v50 }
  0xea   : > { %2557 = vmatprep.subr.bf16.mxu0 %v8566_v52 }
  0xec   : > { %2388 = vmatmul.mubr.bf16.gmra.mxu0 %v9752_v24  ;;  %v8575_v24 = vld [vmem:[%s12490_s2 + $0x58c] ss:$16 sps:$4 sm:$0xff]  }
  0xed   : > { %2501 = vmatmul.mubr.bf16.gmra.mxu1 %v9754_v25  ;;  %2558 = vmatpush2.bf16.msra.mxu0 %v8564_v56  ;;  %v8573_v25 = vld [vmem:[%s12490_s2 + $0x588] ss:$16 sps:$4 sm:$0xff]  }
  0xee   : > { %2397 = vmatprep.mubr.bf16.mxu0 %v9759_v27  ;;  %2559 = vmatprep.subr.bf16.mxu0 %v8569_v3  ;;  %v8578_v27 = vld [vmem:[%s12490_s2 + $0x56c] ss:$16 sps:$4 sm:$0xff]  }
  0xef   : > { %2510 = vmatprep.mubr.bf16.mxu1 %v9764_v29  ;;  %v8576_v29 = vld [vmem:[%s12490_s2 + $0x568] ss:$16 sps:$4 sm:$0xff]  }
  0xf1   : > { %2560 = vmatpush2.bf16.msra.mxu0 %v8567_v4  ;;  %v8605_v4 = vld [vmem:[%s12492_s4 + $0x24] ss:$8 sps:$4 sm:$0xff]  }
  0xf2   : > { %2561 = vmatprep.subr.bf16.mxu0 %v8572_v6 }
  0xf4   : > { %2398 = vmatmul.mubr.bf16.gmra.mxu0 %v9784_v44  ;;  %v8581_v44 = vld [vmem:[%s12490_s2 + $0x54c] ss:$16 sps:$4 sm:$0xff]  }
  0xf5   : > { %2511 = vmatmul.mubr.bf16.gmra.mxu1 %v9786_v45  ;;  %2562 = vmatpush2.bf16.msra.mxu0 %v8570_v8  ;;  %v8579_v45 = vld [vmem:[%s12490_s2 + $0x548] ss:$16 sps:$4 sm:$0xff]  }
  0xf6   : > { %2407 = vmatprep.mubr.bf16.mxu0 %v9791_v47  ;;  %2563 = vmatprep.subr.bf16.mxu0 %v8575_v24  ;;  %v8584_v47 = vld [vmem:[%s12490_s2 + $0x52c] ss:$16 sps:$4 sm:$0xff]  }
  0xf7   : > { %2520 = vmatprep.mubr.bf16.mxu1 %v9796_v51  ;;  %v838_v51 = vlaneseq  ;;  %v8638_v24 = vld [vmem:[%s12492_s4 + $0x174] ss:$8 sps:$4 sm:$0xff]  }
  0xf8   : > { %3372 = vmatprep.subr.bf16.mxu1 %v8638_v24  ;;  %v8648_v24 = vld [vmem:[%s12492_s4 + $0x130] ss:$8 sps:$4 sm:$0xff]  }
  0xf9   : > { %2564 = vmatpush2.bf16.msra.mxu0 %v8573_v25  ;;  %v8636_v25 = vld [vmem:[%s12492_s4 + $0x170] ss:$8 sps:$4 sm:$0xff]  }
  0xfa   : > { %2565 = vmatprep.subr.bf16.mxu0 %v8578_v27 }
  0xfc   : > { %2408 = vmatmul.mubr.bf16.gmra.mxu0 %v9816_v2  ;;  %v8587_v2 = vld [vmem:[%s12490_s2 + $0x50c] ss:$16 sps:$4 sm:$0xff]  }
  0xfd   : > { %2521 = vmatmul.mubr.bf16.gmra.mxu1 %v9818_v5  ;;  %2566 = vmatpush2.bf16.msra.mxu0 %v8576_v29  ;;  %v10313_v5 = vshrl.u32 %v838_v51, 7 }
  0xfe   : > { %2417 = vmatprep.mubr.bf16.mxu0 %v9823_v9  ;;  %2567 = vmatprep.subr.bf16.mxu0 %v8581_v44  ;;  %v8585_v9 = vld [vmem:[%s12490_s2 + $0x508] ss:$16 sps:$4 sm:$0xff]  }
  0xff   : > { %2530 = vmatprep.mubr.bf16.mxu1 %v9828_v11  ;;  %12528 = vst [vmem:[#allocation8_spill] sm:$0xff] %v10313_v5  ;;  %v836_v11 = vld [vmem:[%s12491_s3] sm:$0xf]  ;;  %v10328_v41 = vsub.s32 0, %v10313_v5 }
 0x100   : > { %v8603_v44 = vld [vmem:[%s12492_s4 + $0x20] ss:$8 sps:$4 sm:$0xff]  }
 0x101   : > { %2568 = vmatpush2.bf16.msra.mxu0 %v8579_v45  ;;  %12529 = vst [vmem:[#allocation9_spill] sm:$0xff] %v10328_v41  ;;  %v10338_v32 = vrot.slane %v836_v11, %v10328_v41 }
 0x102   : > { %2569 = vmatprep.subr.bf16.mxu0 %v8584_v47  ;;  %v8608_v47 = vld [vmem:[%s12492_s4 + $0x14] ss:$8 sps:$4 sm:$0xff]  }
 0x104   : > { %2418 = vmatmul.mubr.bf16.gmra.mxu0 %v9846_v26  ;;  %v10332_v26 = vsub.s32 1, %v10313_v5 }
 0x105   : > { %2531 = vmatmul.mubr.bf16.gmra.mxu1 %v9848_v28  ;;  %2570 = vmatpush2.bf16.msra.mxu0 %v8582_v60  ;;  %v8588_v28 = vld [vmem:[%s12492_s4 + $0x70] ss:$8 sps:$4 sm:$0xff]  }
 0x106   : > { %2573 = vmatprep.mubr.bf16.mxu0 %v9853_v31  ;;  %2571 = vmatprep.subr.bf16.mxu0 %v8587_v2  ;;  %12530 = vst [vmem:[#allocation10_spill] sm:$0xff] %v10332_v26  ;;  %v8593_v31 = vld [vmem:[%s12492_s4 + $0x64] ss:$8 sps:$4 sm:$0xff]   ;;  %v10344_v42 = vrot.slane %v836_v11, %v10332_v26 }
 0x107   : > { %2686 = vmatprep.mubr.bf16.mxu1 %v12527_v48 }
 0x109   : > { %2572 = vmatpush2.bf16.msra.mxu0 %v8585_v9 }
 0x10a   : > { %3259 = vmatprep.subr.bf16.mxu0 %v8590_v39  ;;  %v8606_v39 = vld [vmem:[%s12492_s4 + $0x10] ss:$8 sps:$4 sm:$0xff]  }
 0x10c   : > { %v1897_v12 = vpop.f32.mrf.mxu0  ;;  %2574 = vmatmul.mubr.bf16.vlgmr.msra.gmra.mxu0 %v9878_v55 }
 0x10d   : > { %v2010_v14 = vpop.f32.mrf.mxu1  ;;  %7697 = vmatmul.mubr.msk.bf16.vlgmr.msra.gmra.mxu1 %vm1838_vm0, %v9880_v57  ;;  %v1898_v13 = vadd.f32 %v1897_v12, %v10338_v32  ;;  %2583 = vmatprep.mubr.bf16.mxu0 %v9893_v63  ;;  %v8594_v63 = vld [vmem:[%s12492_s4 + $0x50] ss:$8 sps:$4 sm:$0xff]  }
 0x10e   : > { %2696 = vmatprep.mubr.bf16.mxu1 %v12527_v48  ;;  %v1899_v20 = vpop.f32.mrf.mxu0  ;;  %3260 = vmatpush1.bf16.msra.mxu0 %v8588_v28 }
 0x10f   : > { %v2012_v1 = vpop.f32.mrf.mxu1  ;;  %v10358_v55 = vadd.f32 %v2010_v14, %v1898_v13  ;;  %v1900_v57 = vadd.f32 %v1899_v20, %v10344_v42  ;;  %3261 = vmatprep.subr.bf16.mxu0 %v8593_v31  ;;  %3373 = vmatpush1.bf16.msra.mxu1 %v8636_v25  ;;  %v8611_v31 = vld [vmem:[%s12492_s4 + $0x4] ss:$8 sps:$4 sm:$0xff]   ;;  %v8642_v13 = vld [vmem:[%s12492_s4 + $0x150] ss:$8 sps:$4 sm:$0xff]  }
 0x110   : > { %v10361_v53 = vpop.f32.mrf.mxu0 }
 0x111   : > { %v10363_v54 = vpop.f32.mrf.mxu1  ;;  %v10368_v58 = vadd.f32 %v2012_v1, %v1900_v57  ;;  %v8609_v1 = vld [vmem:[%s12492_s4] ss:$8 sps:$4 sm:$0xff]  }
 0x112   : > { %v10373_v16 = vpop.f32.mrf.mxu0  ;;  %3262 = vmatpush1.bf16.msra.mxu0 %v8591_v30  ;;  %v8644_v30 = vld [vmem:[%s12492_s4 + $0x154] ss:$8 sps:$4 sm:$0xff]  }
 0x113   : > { %v10375_v21 = vpop.f32.mrf.mxu1  ;;  %3263 = vmatprep.subr.bf16.mxu0 %v8596_v59 }
 0x114   : > { %v1907_v23 = vpop.f32.mrf.mxu0  ;;  %2584 = vmatmul.mubr.bf16.gmra.mxu0 %v9914_v18 }
 0x115   : > { %v2020_v33 = vpop.f32.mrf.mxu1  ;;  %7698 = vmatmul.mubr.msk.bf16.gmra.mxu1 %vm1838_vm0, %v9916_v19  ;;  %v1908_v36 = vadd.f32 %v1907_v23, %v10338_v32  ;;  %2593 = vmatprep.mubr.bf16.mxu0 %v9937_v40  ;;  %v8600_v40 = vld [vmem:[%s12492_s4 + $0x30] ss:$8 sps:$4 sm:$0xff]  }
 0x116   : > { %2706 = vmatprep.mubr.bf16.mxu1 %v12527_v48  ;;  %v1909_v49 = vpop.f32.mrf.mxu0  ;;  %3264 = vmatpush1.bf16.msra.mxu0 %v8594_v63  ;;  %v8614_v63 = vld [vmem:[%s12492_s4 + $0xf4] ss:$8 sps:$4 sm:$0xff]  }
 0x117   : > { %v2022_v50 = vpop.f32.mrf.mxu1  ;;  %v10389_v18 = vadd.f32 %v2020_v33, %v1908_v36  ;;  %v1910_v19 = vadd.f32 %v1909_v49, %v10344_v42  ;;  %3265 = vmatprep.subr.bf16.mxu0 %v8599_v15 }
 0x118   : > { %v10392_v52 = vpop.f32.mrf.mxu0 }
 0x119   : > { %v10394_v56 = vpop.f32.mrf.mxu1  ;;  %v10399_v3 = vadd.f32 %v2022_v50, %v1910_v19  ;;  %v8617_v50 = vld [vmem:[%s12492_s4 + $0xe4] ss:$8 sps:$4 sm:$0xff]  }
 0x11a   : > { %v10404_v6 = vpop.f32.mrf.mxu0  ;;  %3266 = vmatpush1.bf16.msra.mxu0 %v8597_v34 }
 0x11b   : > { %v10406_v8 = vpop.f32.mrf.mxu1  ;;  %3267 = vmatprep.subr.bf16.mxu0 %v8602_v38  ;;  %v8612_v38 = vld [vmem:[%s12492_s4 + $0xf0] ss:$8 sps:$4 sm:$0xff]  }
 0x11c   : > { %v1917_v27 = vpop.f32.mrf.mxu0  ;;  %2594 = vmatmul.mubr.bf16.gmra.mxu0 %v9960_v62  ;;  %v8641_v62 = vld [vmem:[%s12492_s4 + $0x164] ss:$8 sps:$4 sm:$0xff]  }
 0x11d   : > { %v2030_v29 = vpop.f32.mrf.mxu1  ;;  %7699 = vmatmul.mubr.msk.bf16.gmra.mxu1 %vm1838_vm0, %v9962_v0  ;;  %v1918_v45 = vadd.f32 %v1917_v27, %v10338_v32  ;;  %2603 = vmatprep.mubr.bf16.mxu0 %v9978_v17  ;;  %v8639_v17 = vld [vmem:[%s12492_s4 + $0x160] ss:$8 sps:$4 sm:$0xff]  }
 0x11e   : > { %2716 = vmatprep.mubr.bf16.mxu1 %v12527_v48  ;;  %v1919_v51 = vpop.f32.mrf.mxu0  ;;  %3268 = vmatpush1.bf16.msra.mxu0 %v8600_v40 }
 0x11f   : > { %v2032_v60 = vpop.f32.mrf.mxu1  ;;  %v10429_v0 = vadd.f32 %v2030_v29, %v1918_v45  ;;  %v1920_v2 = vadd.f32 %v1919_v51, %v10344_v42  ;;  %3269 = vmatprep.subr.bf16.mxu0 %v8605_v4  ;;  %3374 = vmatprep.subr.bf16.mxu1 %v8641_v62  ;;  %v8650_v4 = vld [vmem:[%s12492_s4 + $0x134] ss:$8 sps:$4 sm:$0xff]   ;;  %v8615_v29 = vld [vmem:[%s12492_s4 + $0xe0] ss:$8 sps:$4 sm:$0xff]  }
 0x120   : > { %v10435_v9 = vpop.f32.mrf.mxu0  ;;  %3375 = vmatpush1.bf16.msra.mxu1 %v8639_v17  ;;  %v8620_v45 = vld [vmem:[%s12492_s4 + $0xd4] ss:$8 sps:$4 sm:$0xff]   ;;  %v8618_v17 = vld [vmem:[%s12492_s4 + $0xd0] ss:$8 sps:$4 sm:$0xff]  }
 0x121   : > { %v10437_v11 = vpop.f32.mrf.mxu1  ;;  %v10442_v28 = vadd.f32 %v2032_v60, %v1920_v2  ;;  %3376 = vmatprep.subr.bf16.mxu1 %v8644_v30 }
 0x122   : > { %v10447_v12 = vpop.f32.mrf.mxu0  ;;  %3270 = vmatpush1.bf16.msra.mxu0 %v8603_v44 }
 0x123   : > { %v10449_v14 = vpop.f32.mrf.mxu1  ;;  %3271 = vmatprep.subr.bf16.mxu0 %v8608_v47 }
 0x124   : > { %v1927_v59 = vpop.f32.mrf.mxu0  ;;  %2604 = vmatmul.mubr.bf16.gmra.mxu0 %v10001_v43  ;;  %v8647_v43 = vld [vmem:[%s12492_s4 + $0x144] ss:$8 sps:$4 sm:$0xff]   ;;  %3377 = vmatpush1.bf16.msra.mxu1 %v8642_v13 }
 0x125   : > { %v2040_v20 = vpop.f32.mrf.mxu1  ;;  %7700 = vmatmul.mubr.msk.bf16.gmra.mxu1 %vm1838_vm0, %v10003_v46  ;;  %v1928_v57 = vadd.f32 %v1927_v59, %v10338_v32  ;;  %2613 = vmatprep.mubr.bf16.mxu0 %v10019_v7  ;;  %v8645_v7 = vld [vmem:[%s12492_s4 + $0x140] ss:$8 sps:$4 sm:$0xff]   ;;  %v8656_v59 = vld [vmem:[%s12492_s4 + $0x114] ss:$8 sps:$4 sm:$0xff]  }
 0x126   : > { %2726 = vmatprep.mubr.bf16.mxu1 %v12527_v48  ;;  %v1929_v15 = vpop.f32.mrf.mxu0  ;;  %3272 = vmatpush1.bf16.msra.mxu0 %v8606_v39 }
 0x127   : > { %v2042_v23 = vpop.f32.mrf.mxu1  ;;  %v10472_v46 = vadd.f32 %v2040_v20, %v1928_v57  ;;  %v1930_v33 = vadd.f32 %v1929_v15, %v10344_v42  ;;  %3273 = vmatprep.subr.bf16.mxu0 %v8611_v31  ;;  %3378 = vmatprep.subr.bf16.mxu1 %v8647_v43  ;;  %v8623_v31 = vld [vmem:[%s12492_s4 + $0xc4] ss:$8 sps:$4 sm:$0xff]   ;;  %v8654_v20 = vld [vmem:[%s12492_s4 + $0x110] ss:$8 sps:$4 sm:$0xff]  }
 0x128   : > { %v10478_v34 = vpop.f32.mrf.mxu0  ;;  %3379 = vmatpush1.bf16.msra.mxu1 %v8645_v7  ;;  %v12532_v15 = vld [vmem:[#allocation3_spill] sm:$0xff]  ;;  %v12533_v43 = vld [vmem:[#allocation4_spill] sm:$0xff] }
 0x129   : > { %v10480_v36 = vpop.f32.mrf.mxu1  ;;  %v10485_v49 = vadd.f32 %v2042_v23, %v1930_v33  ;;  %3380 = vmatprep.subr.bf16.mxu1 %v8650_v4 }
 0x12a   : > { %v10490_v19 = vpop.f32.mrf.mxu0  ;;  %3274 = vmatpush1.bf16.msra.mxu0 %v8609_v1 }
 0x12b   : > { %v10492_v40 = vpop.f32.mrf.mxu1  ;;  %3275 = vmatprep.subr.bf16.mxu0 %v8614_v63  ;;  %v12531_v63 = vld [vmem:[#allocation2_spill] sm:$0xff] }
 0x12c   : > { %v1937_v25 = vpop.f32.mrf.mxu0  ;;  %2614 = vmatmul.mubr.bf16.gmra.mxu0 %v10042_v35  ;;  %v8653_v35 = vld [vmem:[%s12492_s4 + $0x124] ss:$8 sps:$4 sm:$0xff]   ;;  %3381 = vmatpush1.bf16.msra.mxu1 %v8648_v24 }
 0x12d   : > { %v2050_v27 = vpop.f32.mrf.mxu1  ;;  %7701 = vmatmul.mubr.msk.bf16.gmra.mxu1 %vm1838_vm0, %v10044_v37  ;;  %v1938_v44 = vadd.f32 %v1937_v25, %v10338_v32  ;;  %2623 = vmatprep.mubr.bf16.mxu0 %v10060_v61  ;;  %v8651_v61 = vld [vmem:[%s12492_s4 + $0x120] ss:$8 sps:$4 sm:$0xff]   ;;  %v8626_v25 = vld [vmem:[%s12492_s4 + $0xb4] ss:$8 sps:$4 sm:$0xff]  }
 0x12e   : > { %2736 = vmatprep.mubr.bf16.mxu1 %v12527_v48  ;;  %v1939_v47 = vpop.f32.mrf.mxu0  ;;  %3276 = vmatpush2.bf16.msra.mxu0 %v8612_v38  ;;  %v8621_v38 = vld [vmem:[%s12492_s4 + $0xc0] ss:$8 sps:$4 sm:$0xff]  }
 0x12f   : > { %v2052_v51 = vpop.f32.mrf.mxu1  ;;  %v10515_v37 = vadd.f32 %v2050_v27, %v1938_v44  ;;  %v1940_v60 = vadd.f32 %v1939_v47, %v10344_v42  ;;  %3277 = vmatprep.subr.bf16.mxu0 %v8617_v50  ;;  %3382 = vmatprep.subr.bf16.mxu1 %v8653_v35  ;;  %v8659_v50 = vld [vmem:[%s12492_s4 + $0x104] ss:$8 sps:$4 sm:$0xff]   ;;  %v8657_v27 = vld [vmem:[%s12492_s4 + $0x100] ss:$8 sps:$4 sm:$0xff]   ;;  %v8624_v35 = vld [vmem:[%s12492_s4 + $0xb0] ss:$8 sps:$4 sm:$0xff]  }
 0x130   : > { %v10521_v62 = vpop.f32.mrf.mxu0  ;;  %3383 = vmatpush1.bf16.msra.mxu1 %v8651_v61  ;;  %v8629_v61 = vld [vmem:[%s12492_s4 + $0xa4] ss:$8 sps:$4 sm:$0xff]  }
 0x131   : > { %v10523_v2 = vpop.f32.mrf.mxu1  ;;  %v10528_v39 = vadd.f32 %v2052_v51, %v1940_v60  ;;  %3384 = vmatprep.subr.bf16.mxu1 %v8656_v59  ;;  %v8662_v60 = vld [vmem:[%s12492_s4 + $0x1f4] ss:$8 sps:$4 sm:$0xff]  }
 0x132   : > { %v10533_v30 = vpop.f32.mrf.mxu0  ;;  %3278 = vmatpush2.bf16.msra.mxu0 %v8615_v29 }
 0x133   : > { %v10535_v13 = vpop.f32.mrf.mxu1  ;;  %3279 = vmatprep.subr.bf16.mxu0 %v8620_v45 }
 0x134   : > { %v1947_v1 = vpop.f32.mrf.mxu0  ;;  %2624 = vmatmul.mubr.bf16.gmra.mxu0 %v12531_v63  ;;  %3385 = vmatpush1.bf16.msra.mxu1 %v8654_v20  ;;  %v12534_v20 = vld [vmem:[#allocation5_spill] sm:$0xff]  ;;  %v12536_v63 = vld [vmem:[#allocation7_spill] sm:$0xff] }
 0x135   : > { %v2060_v57 = vpop.f32.mrf.mxu1  ;;  %7702 = vmatmul.mubr.msk.bf16.gmra.mxu1 %vm1838_vm0, %v12532_v15  ;;  %v1948_v23 = vadd.f32 %v1947_v1, %v10338_v32  ;;  %2633 = vmatprep.mubr.bf16.mxu0 %v12533_v43  ;;  %v12535_v1 = vld [vmem:[#allocation6_spill] sm:$0xff] }
 0x136   : > { %2746 = vmatprep.mubr.bf16.mxu1 %v12527_v48  ;;  %v1949_v33 = vpop.f32.mrf.mxu0  ;;  %3280 = vmatpush2.bf16.msra.mxu0 %v8618_v17  ;;  %v8660_v17 = vld [vmem:[%s12492_s4 + $0x1f0] ss:$8 sps:$4 sm:$0xff]   ;;  %v8627_v43 = vld [vmem:[%s12492_s4 + $0xa0] ss:$8 sps:$4 sm:$0xff]  }
 0x137   : > { %v2062_v7 = vpop.f32.mrf.mxu1  ;;  %v10555_v4 = vadd.f32 %v2060_v57, %v1948_v23  ;;  %v1950_v24 = vadd.f32 %v1949_v33, %v10344_v42  ;;  %3281 = vmatprep.subr.bf16.mxu0 %v8623_v31  ;;  %3386 = vmatprep.subr.bf16.mxu1 %v8659_v50  ;;  %v8665_v33 = vld [vmem:[%s12492_s4 + $0x1e4] ss:$8 sps:$4 sm:$0xff]   ;;  %v8632_v50 = vld [vmem:[%s12492_s4 + $0x94] ss:$8 sps:$4 sm:$0xff]  }
 0x138   : > { %v10564_v29 = vpop.f32.mrf.mxu0  ;;  %3387 = vmatpush1.bf16.msra.mxu1 %v8657_v27 }
 0x139   : > { %v10566_v44 = vpop.f32.mrf.mxu1  ;;  %v10568_v45 = vadd.f32 %v2062_v7, %v1950_v24  ;;  %3388 = vmatprep.subr.bf16.mxu1 %v8662_v60  ;;  %v8663_v24 = vld [vmem:[%s12492_s4 + $0x1e0] ss:$8 sps:$4 sm:$0xff]  }
 0x13a   : > { %v10570_v47 = vpop.f32.mrf.mxu0  ;;  %3282 = vmatpush2.bf16.msra.mxu0 %v8621_v38 }
 0x13b   : > { %v10572_v51 = vpop.f32.mrf.mxu1  ;;  %3283 = vmatprep.subr.bf16.mxu0 %v8626_v25 }
 0x13c   : > { %v1957_v31 = vpop.f32.mrf.mxu0  ;;  %2634 = vmatmul.mubr.bf16.gmra.mxu0 %v12534_v20  ;;  %3389 = vmatpush2.bf16.msra.mxu1 %v8660_v17  ;;  %v8668_v17 = vld [vmem:[%s12492_s4 + $0x1d4] ss:$8 sps:$4 sm:$0xff]   ;;  %v8666_v20 = vld [vmem:[%s12492_s4 + $0x1d0] ss:$8 sps:$4 sm:$0xff]  }
 0x13d   : > { %v2070_v59 = vpop.f32.mrf.mxu1  ;;  %7703 = vmatmul.mubr.msk.bf16.gmra.mxu1 %vm1838_vm0, %v12535_v1  ;;  %v1958_v57 = vadd.f32 %v1957_v31, %v10338_v32  ;;  %2643 = vmatprep.mubr.bf16.mxu0 %v12536_v63 }
 0x13e   : > { %2756 = vmatprep.mubr.bf16.mxu1 %v12527_v48  ;;  %v1959_v15 = vpop.f32.mrf.mxu0  ;;  %3284 = vmatpush2.bf16.msra.mxu0 %v8624_v35 }
 0x13f   : > { %v2072_v23 = vpop.f32.mrf.mxu1  ;;  %v10598_v7 = vadd.f32 %v2070_v59, %v1958_v57  ;;  %v1960_v38 = vadd.f32 %v1959_v15, %v10344_v42  ;;  %3285 = vmatprep.subr.bf16.mxu0 %v8629_v61  ;;  %3390 = vmatprep.subr.bf16.mxu1 %v8665_v33  ;;  %v8630_v61 = vld [vmem:[%s12492_s4 + $0x90] ss:$8 sps:$4 sm:$0xff]   ;;  %v8635_v59 = vld [vmem:[%s12492_s4 + $0x84] ss:$8 sps:$4 sm:$0xff]  }
 0x140   : > { %v10607_v25 = vpop.f32.mrf.mxu0  ;;  %3391 = vmatpush2.bf16.msra.mxu1 %v8663_v24  ;;  %v8671_v33 = vld [vmem:[%s12492_s4 + $0x1c4] ss:$8 sps:$4 sm:$0xff]  }
 0x141   : > { %v10609_v27 = vpop.f32.mrf.mxu1  ;;  %v10611_v35 = vadd.f32 %v2072_v23, %v1960_v38  ;;  %3392 = vmatprep.subr.bf16.mxu1 %v8668_v17 }
 0x142   : > { %v10613_v60 = vpop.f32.mrf.mxu0  ;;  %3286 = vmatpush2.bf16.msra.mxu0 %v8627_v43  ;;  %v8633_v43 = vld [vmem:[%s12492_s4 + $0x80] ss:$8 sps:$4 sm:$0xff]  }
 0x143   : > { %v10615_v31 = vpop.f32.mrf.mxu1  ;;  %3287 = vmatprep.subr.bf16.mxu0 %v8632_v50 }
 0x144   : > { %v1967_v1 = vpop.f32.mrf.mxu0  ;;  %2644 = vmatmul.mubr.bf16.gmra.mxu0 %v10165_v22  ;;  %3393 = vmatpush2.bf16.msra.mxu1 %v8666_v20  ;;  %v1902_v20 = vadd.f32 %v10361_v53, %v10338_v32 }
 0x145   : > { %v2080_v57 = vpop.f32.mrf.mxu1  ;;  %7704 = vmatmul.mubr.msk.bf16.gmra.mxu1 %vm1838_vm0, %v10167_v10  ;;  %v1968_v63 = vadd.f32 %v1967_v1, %v10338_v32  ;;  %v8669_v10 = vld [vmem:[%s12492_s4 + $0x1c0] ss:$8 sps:$4 sm:$0xff]   ;;  %3394 = vmatprep.subr.bf16.mxu1 %v8671_v33 }
 0x146   : > { %v1969_v15 = vpop.f32.mrf.mxu0  ;;  %3288 = vmatpush2.bf16.msra.mxu0 %v8630_v61  ;;  %v2015_v26 = vadd.f32 %v10363_v54, %v1902_v20  ;;  %v8680_v54 = vld [vmem:[%s12492_s4 + $0x194] ss:$8 sps:$4 sm:$0xff]  }
 0x147   : > { %v2082_v23 = vpop.f32.mrf.mxu1  ;;  %v10639_v38 = vadd.f32 %v2080_v57, %v1968_v63  ;;  %v1970_v22 = vadd.f32 %v1969_v15, %v10344_v42  ;;  %3289 = vmatprep.subr.bf16.mxu0 %v8635_v59  ;;  %v8674_v59 = vld [vmem:[%s12492_s4 + $0x1b4] ss:$8 sps:$4 sm:$0xff]   ;;  %v8672_v57 = vld [vmem:[%s12492_s4 + $0x1b0] ss:$8 sps:$4 sm:$0xff]  }
 0x148   : > { %v10645_v50 = vpop.f32.mrf.mxu0  ;;  %3395 = vmatpush2.bf16.msra.mxu1 %v8669_v10  ;;  %v8675_v10 = vld [vmem:[%s12492_s4 + $0x1a0] ss:$8 sps:$4 sm:$0xff]  }
 0x149   : > { %12537 = vst [vmem:[#allocation2_spill] sm:$0xff] %v10639_v38  ;;  %v10647_v24 = vpop.f32.mrf.mxu1  ;;  %v10649_v61 = vadd.f32 %v2082_v23, %v1970_v22  ;;  %3396 = vmatprep.subr.bf16.mxu1 %v8674_v59  ;;  %v1904_v23 = vadd.f32 %v10373_v16, %v10344_v42  ;;  %v8677_v22 = vld [vmem:[%s12492_s4 + $0x1a4] ss:$8 sps:$4 sm:$0xff]  }
 0x14a   : > { %12538 = vst [vmem:[#allocation3_spill] sm:$0xff] %v10647_v24  ;;  %v10651_v17 = vpop.f32.mrf.mxu0  ;;  %3290 = vmatpush2.bf16.msra.mxu0 %v8633_v43 }
 0x14b   : > { %12539 = vst [vmem:[#allocation4_spill] sm:$0xff] %v10649_v61  ;;  %v10653_v1 = vpop.f32.mrf.mxu1  ;;  %v2017_v16 = vadd.f32 %v10375_v21, %v1904_v23 }
 0x14c   : > { %12540 = vst [vmem:[#allocation5_spill] sm:$0xff] %v10653_v1  ;;  %v2123_v63 = vpop.f32.mrf.mxu0  ;;  %3397 = vmatpush2.bf16.msra.mxu1 %v8672_v57 }
 0x14d   : > { %v2236_v15 = vpop.f32.mrf.mxu1  ;;  %v2124_v59 = vadd.f32 %v2123_v63, %v10358_v55  ;;  %3398 = vmatprep.subr.bf16.mxu1 %v8677_v22  ;;  %v8678_v55 = vld [vmem:[%s12492_s4 + $0x190] ss:$8 sps:$4 sm:$0xff]  }
 0x14e   : > { %v2125_v33 = vpop.f32.mrf.mxu0 }
 0x14f   : > { %v2238_v43 = vpop.f32.mrf.mxu1  ;;  %v2126_v53 = vadd.f32 %v2125_v33, %v10368_v58  ;;  %v1912_v58 = vadd.f32 %v10392_v52, %v10338_v32  ;;  %v2237_v63 = vadd.f32 %v2236_v15, %v2124_v59 }
 0x150   : > { %v2127_v41 = vpop.f32.mrf.mxu0  ;;  %3399 = vmatpush2.bf16.msra.mxu1 %v8675_v10 }
 0x151   : > { %v2240_v48 = vpop.f32.mrf.mxu1  ;;  %v2128_v1 = vadd.f32 %v2127_v41, %v2015_v26  ;;  %v2239_v20 = vadd.f32 %v2238_v43, %v2126_v53  ;;  %3400 = vmatprep.subr.bf16.mxu1 %v8680_v54  ;;  %v1914_v26 = vadd.f32 %v10404_v6, %v10344_v42  ;;  %v2025_v52 = vadd.f32 %v10394_v56, %v1912_v58  ;;  %v8681_v43 = vld [vmem:[%s12492_s4 + $0x180] ss:$8 sps:$4 sm:$0xff]  }
 0x152   : > { %v2129_v38 = vpop.f32.mrf.mxu0  ;;  %v2767_v6 = vmax.f32 %v2237_v63, 0.0  ;;  %v1922_v56 = vadd.f32 %v10435_v9, %v10338_v32 }
 0x153   : > { %v2242_v61 = vpop.f32.mrf.mxu1  ;;  %v2241_v57 = vadd.f32 %v2240_v48, %v2128_v1  ;;  %v2130_v33 = vadd.f32 %v2129_v38, %v2017_v16  ;;  %v8683_v48 = vld [vmem:[%s12492_s4 + $0x184] ss:$8 sps:$4 sm:$0xff]   ;;  %v2768_v38 = vmax.f32 %v2239_v20, 0.0  ;;  %v2027_v59 = vadd.f32 %v10406_v8, %v1914_v26 }
 0x154   : > { %v2133_v21 = vpop.f32.mrf.mxu0  ;;  %3401 = vmatpush2.bf16.msra.mxu1 %v8678_v55  ;;  %v1924_v8 = vadd.f32 %v10447_v12, %v10344_v42  ;;  %v2035_v9 = vadd.f32 %v10437_v11, %v1922_v56 }
 0x155   : > { %v2246_v41 = vpop.f32.mrf.mxu1  ;;  %v2243_v23 = vadd.f32 %v2242_v61, %v2130_v33  ;;  %v2771_v22 = vmax.f32 %v2241_v57, 0.0  ;;  %v2134_v61 = vadd.f32 %v2133_v21, %v10389_v18  ;;  %3402 = vmatprep.subr.bf16.mxu1 %v8683_v48 }
 0x156   : > { %v2135_v24 = vpop.f32.mrf.mxu0 }
 0x157   : > { %v2248_v5 = vpop.f32.mrf.mxu1  ;;  %v2772_v1 = vmax.f32 %v2243_v23, 0.0  ;;  %v2136_v15 = vadd.f32 %v2135_v24, %v10399_v3  ;;  %v2831_v58 = vpack.c.bf16 %v2771_v22, %v2767_v6  ;;  %v2247_v55 = vadd.f32 %v2246_v41, %v2134_v61 }
 0x158   : > { %v2137_v53 = vpop.f32.mrf.mxu0  ;;  %3403 = vmatpush2.bf16.msra.mxu1 %v8681_v43  ;;  %v2037_v43 = vadd.f32 %v10449_v14, %v1924_v8 }
 0x159   : > { %v2250_v10 = vpop.f32.mrf.mxu1  ;;  %v2138_v16 = vadd.f32 %v2137_v53, %v2025_v52  ;;  %v2832_v54 = vpack.c.bf16 %v2772_v1, %v2768_v38  ;;  %v2249_v20 = vadd.f32 %v2248_v5, %v2136_v15  ;;  %v2775_v38 = vmax.f32 %v2247_v55, 0.0 }
 0x15a   : > { %v2139_v3 = vpop.f32.mrf.mxu0 }
 0x15b   : > { %v2252_v24 = vpop.f32.mrf.mxu1  ;;  %v2251_v57 = vadd.f32 %v2250_v10, %v2138_v16  ;;  %v2140_v33 = vadd.f32 %v2139_v3, %v2027_v59  ;;  %3291 = vmatprep.mubr.bf16.mxu0 %v2832_v54  ;;  %v2776_v22 = vmax.f32 %v2249_v20, 0.0  ;;  %v1932_v59 = vadd.f32 %v10478_v34, %v10338_v32 }
 0x15c   : > { %v2143_v18 = vpop.f32.mrf.mxu0  ;;  %3292 = vmatmul.mubr.bf16.vlgmr.msra.gmra.mxu0 %v2831_v58 }
 0x15d   : > { %v2256_v63 = vpop.f32.mrf.mxu1  ;;  %v2253_v21 = vadd.f32 %v2252_v24, %v2140_v33  ;;  %v2779_v26 = vmax.f32 %v2251_v57, 0.0  ;;  %v2144_v1 = vadd.f32 %v2143_v18, %v10429_v0  ;;  %v1934_v0 = vadd.f32 %v10490_v19, %v10344_v42 }
 0x15e   : > { %v2145_v23 = vpop.f32.mrf.mxu0  ;;  %v2045_v57 = vadd.f32 %v10480_v36, %v1932_v59 }
 0x15f   : > { %v2258_v48 = vpop.f32.mrf.mxu1  ;;  %v2780_v52 = vmax.f32 %v2253_v21, 0.0  ;;  %v2146_v5 = vadd.f32 %v2145_v23, %v10442_v28  ;;  %v2835_v12 = vpack.c.bf16 %v2779_v26, %v2775_v38  ;;  %v2257_v28 = vadd.f32 %v2256_v63, %v2144_v1 }
 0x160   : > { %v2147_v41 = vpop.f32.mrf.mxu0  ;;  %v2047_v26 = vadd.f32 %v10492_v40, %v1934_v0 }
 0x161   : > { %v2260_v15 = vpop.f32.mrf.mxu1  ;;  %v2148_v6 = vadd.f32 %v2147_v41, %v2035_v9  ;;  %v2836_v61 = vpack.c.bf16 %v2780_v52, %v2776_v22  ;;  %v2259_v11 = vadd.f32 %v2258_v48, %v2146_v5  ;;  %v2783_v18 = vmax.f32 %v2257_v28, 0.0 }
 0x162   : > { %v2149_v53 = vpop.f32.mrf.mxu0  ;;  %v1942_v52 = vadd.f32 %v10521_v62, %v10338_v32 }
 0x163   : > { %v2262_v10 = vpop.f32.mrf.mxu1  ;;  %v2261_v16 = vadd.f32 %v2260_v15, %v2148_v6  ;;  %v2150_v54 = vadd.f32 %v2149_v53, %v2037_v43  ;;  %3301 = vmatprep.mubr.bf16.mxu0 %v2836_v61  ;;  %v2784_v33 = vmax.f32 %v2259_v11, 0.0 }
 0x164   : > { %v2153_v56 = vpop.f32.mrf.mxu0  ;;  %3302 = vmatmul.mubr.bf16.gmra.mxu0 %v2835_v12  ;;  %v2055_v61 = vadd.f32 %v10523_v2, %v1942_v52 }
 0x165   : > { %v2266_v58 = vpop.f32.mrf.mxu1  ;;  %v2263_v14 = vadd.f32 %v2262_v10, %v2150_v54  ;;  %v2787_v3 = vmax.f32 %v2261_v16, 0.0  ;;  %v2154_v8 = vadd.f32 %v2153_v56, %v10472_v46  ;;  %v1944_v46 = vadd.f32 %v10533_v30, %v10344_v42 }
 0x166   : > { %v2155_v24 = vpop.f32.mrf.mxu0 }
 0x167   : > { %v2268_v20 = vpop.f32.mrf.mxu1  ;;  %v2788_v55 = vmax.f32 %v2263_v14, 0.0  ;;  %v2156_v34 = vadd.f32 %v2155_v24, %v10485_v49  ;;  %v2839_v19 = vpack.c.bf16 %v2787_v3, %v2783_v18  ;;  %v2267_v49 = vadd.f32 %v2266_v58, %v2154_v8 }
 0x168   : > { %v2157_v63 = vpop.f32.mrf.mxu0  ;;  %v2057_v54 = vadd.f32 %v10535_v13, %v1944_v46  ;;  %v1952_v14 = vadd.f32 %v10564_v29, %v10338_v32 }
 0x169   : > { %v2270_v21 = vpop.f32.mrf.mxu1  ;;  %v2158_v23 = vadd.f32 %v2157_v63, %v2045_v57  ;;  %v2840_v48 = vpack.c.bf16 %v2788_v55, %v2784_v33  ;;  %v2269_v36 = vadd.f32 %v2268_v20, %v2156_v34  ;;  %v2791_v10 = vmax.f32 %v2267_v49, 0.0 }
 0x16a   : > { %v2159_v9 = vpop.f32.mrf.mxu0  ;;  %v2065_v18 = vadd.f32 %v10566_v44, %v1952_v14 }
 0x16b   : > { %v2272_v22 = vpop.f32.mrf.mxu1  ;;  %v2271_v5 = vadd.f32 %v2270_v21, %v2158_v23  ;;  %v2160_v38 = vadd.f32 %v2159_v9, %v2047_v26  ;;  %3311 = vmatprep.mubr.bf16.mxu0 %v2840_v48  ;;  %v2792_v12 = vmax.f32 %v2269_v36, 0.0 }
 0x16c   : > { %v2163_v1 = vpop.f32.mrf.mxu0  ;;  %3312 = vmatmul.mubr.bf16.gmra.mxu0 %v2839_v19 }
 0x16d   : > { %v2276_v41 = vpop.f32.mrf.mxu1  ;;  %v2273_v40 = vadd.f32 %v2272_v22, %v2160_v38  ;;  %v2795_v15 = vmax.f32 %v2271_v5, 0.0  ;;  %v2164_v59 = vadd.f32 %v2163_v1, %v10515_v37  ;;  %v1954_v37 = vadd.f32 %v10570_v47, %v10344_v42 }
 0x16e   : > { %v2165_v43 = vpop.f32.mrf.mxu0  ;;  %v1962_v5 = vadd.f32 %v10607_v25, %v10338_v32 }
 0x16f   : > { %v2278_v6 = vpop.f32.mrf.mxu1  ;;  %v2796_v53 = vmax.f32 %v2273_v40, 0.0  ;;  %v2166_v62 = vadd.f32 %v2165_v43, %v10528_v39  ;;  %v2843_v30 = vpack.c.bf16 %v2795_v15, %v2791_v10  ;;  %v2277_v39 = vadd.f32 %v2276_v41, %v2164_v59 }
 0x170   : > { %v2167_v11 = vpop.f32.mrf.mxu0  ;;  %v2067_v19 = vadd.f32 %v10572_v51, %v1954_v37  ;;  %v2075_v43 = vadd.f32 %v10609_v27, %v1962_v5 }
 0x171   : > { %v2280_v16 = vpop.f32.mrf.mxu1  ;;  %v2168_v28 = vadd.f32 %v2167_v11, %v2055_v61  ;;  %v2844_v56 = vpack.c.bf16 %v2796_v53, %v2792_v12  ;;  %v2279_v2 = vadd.f32 %v2278_v6, %v2166_v62  ;;  %v2799_v21 = vmax.f32 %v2277_v39, 0.0 }
 0x172   : > { %v2169_v58 = vpop.f32.mrf.mxu0 }
 0x173   : > { %v2282_v0 = vpop.f32.mrf.mxu1  ;;  %v2281_v3 = vadd.f32 %v2280_v16, %v2168_v28  ;;  %v2170_v24 = vadd.f32 %v2169_v58, %v2057_v54  ;;  %3321 = vmatprep.mubr.bf16.mxu0 %v2844_v56  ;;  %v2800_v8 = vmax.f32 %v2279_v2, 0.0  ;;  %v1972_v56 = vadd.f32 %v10645_v50, %v10338_v32  ;;  %v12541_v2 = vld [vmem:[#allocation8_spill] sm:$0xff]  ;;  %v12544_v50 = vld [vmem:[#allocation3_spill] sm:$0xff] }
 0x174   : > { %v2173_v20 = vpop.f32.mrf.mxu0  ;;  %3322 = vmatmul.mubr.bf16.gmra.mxu0 %v2843_v30  ;;  %v10743_v32 = vsub.s32 3, %v12541_v2 }
 0x175   : > { %v2286_v57 = vpop.f32.mrf.mxu1  ;;  %v2283_v13 = vadd.f32 %v2282_v0, %v2170_v24  ;;  %v2803_v33 = vmax.f32 %v2281_v3, 0.0  ;;  %v2174_v26 = vadd.f32 %v2173_v20, %v10555_v4  ;;  %v1964_v4 = vadd.f32 %v10613_v60, %v10344_v42 }
 0x176   : > { %v2175_v55 = vpop.f32.mrf.mxu0  ;;  %v10740_v3 = vsub.s32 2, %v12541_v2  ;;  %12543 = vst [vmem:[#allocation7_spill] sm:$0xff] %v10743_v32 }
 0x177   : > { %v2288_v34 = vpop.f32.mrf.mxu1  ;;  %v2804_v63 = vmax.f32 %v2283_v13, 0.0  ;;  %v2176_v29 = vadd.f32 %v2175_v55, %v10568_v45  ;;  %v2847_v47 = vpack.c.bf16 %v2803_v33, %v2799_v21  ;;  %v2287_v45 = vadd.f32 %v2286_v57, %v2174_v26  ;;  %v12545_v33 = vld [vmem:[#allocation4_spill] sm:$0xff] }
 0x178   : > { %v2177_v23 = vpop.f32.mrf.mxu0  ;;  %v2077_v59 = vadd.f32 %v10615_v31, %v1964_v4  ;;  %12542 = vst [vmem:[#allocation6_spill] sm:$0xff] %v10740_v3  ;;  %v2085_v57 = vadd.f32 %v12544_v50, %v1972_v56 }
 0x179   : > { %v2290_v48 = vpop.f32.mrf.mxu1  ;;  %v2178_v9 = vadd.f32 %v2177_v23, %v2065_v18  ;;  %v2848_v22 = vpack.c.bf16 %v2804_v63, %v2800_v8  ;;  %v2289_v44 = vadd.f32 %v2288_v34, %v2176_v29  ;;  %v2807_v12 = vmax.f32 %v2287_v45, 0.0  ;;  %v12546_v18 = vld [vmem:[#allocation2_spill] sm:$0xff]  ;;  %v12547_v63 = vld [vmem:[#allocation5_spill] sm:$0xff] }
 0x17a   : > { %v2179_v52 = vpop.f32.mrf.mxu0  ;;  %v9308_v23 = vld [vmem:[%s12491_s3] sm:$0xf] }
 0x17b   : > { %v2292_v36 = vpop.f32.mrf.mxu1  ;;  %v2291_v38 = vadd.f32 %v2290_v48, %v2178_v9  ;;  %v2180_v49 = vadd.f32 %v2179_v52, %v2067_v19  ;;  %3331 = vmatprep.mubr.bf16.mxu0 %v2848_v22  ;;  %v2808_v6 = vmax.f32 %v2289_v44, 0.0  ;;  %v10753_v48 = vrot.slane %v9308_v23, %v10740_v3 }
 0x17c   : > { %v2183_v1 = vpop.f32.mrf.mxu0  ;;  %3332 = vmatmul.mubr.bf16.gmra.mxu0 %v2847_v47  ;;  %v10756_v5 = vrot.slane %v9308_v23, %v10743_v32 }
 0x17d   : > { %v2296_v41 = vpop.f32.mrf.mxu1  ;;  %v2293_v51 = vadd.f32 %v2292_v36, %v2180_v49  ;;  %v2811_v46 = vmax.f32 %v2291_v38, 0.0  ;;  %v2184_v53 = vadd.f32 %v2183_v1, %v10598_v7  ;;  %v1974_v7 = vadd.f32 %v10651_v17, %v10344_v42 }
 0x17e   : > { %v2185_v40 = vpop.f32.mrf.mxu0 }
 0x17f   : > { %v2298_v15 = vpop.f32.mrf.mxu1  ;;  %v2812_v61 = vmax.f32 %v2293_v51, 0.0  ;;  %v2186_v25 = vadd.f32 %v2185_v40, %v10611_v35  ;;  %v2851_v60 = vpack.c.bf16 %v2811_v46, %v2807_v12  ;;  %v2297_v35 = vadd.f32 %v2296_v41, %v2184_v53 }
 0x180   : > { %v2187_v62 = vpop.f32.mrf.mxu0  ;;  %v2087_v29 = vadd.f32 %v12547_v63, %v1974_v7 }
 0x181   : > { %v2300_v10 = vpop.f32.mrf.mxu1  ;;  %v2188_v11 = vadd.f32 %v2187_v62, %v2075_v43  ;;  %v2852_v16 = vpack.c.bf16 %v2812_v61, %v2808_v6  ;;  %v2299_v27 = vadd.f32 %v2298_v15, %v2186_v25  ;;  %v2815_v34 = vmax.f32 %v2297_v35, 0.0 }
 0x182   : > { %v2189_v54 = vpop.f32.mrf.mxu0 }
 0x183   : > { %v2302_v28 = vpop.f32.mrf.mxu1  ;;  %v2301_v30 = vadd.f32 %v2300_v10, %v2188_v11  ;;  %v2190_v58 = vadd.f32 %v2189_v54, %v2077_v59  ;;  %3341 = vmatprep.mubr.bf16.mxu0 %v2852_v16  ;;  %v2816_v37 = vmax.f32 %v2299_v27, 0.0  ;;  %v12548_v54 = vmov 0  }
 0x184   : > { %v2193_v0 = vpop.f32.mrf.mxu0  ;;  %3342 = vmatmul.mubr.bf16.gmra.mxu0 %v2851_v60 }
 0x185   : > { %v2306_v14 = vpop.f32.mrf.mxu1  ;;  %v2303_v31 = vadd.f32 %v2302_v28, %v2190_v58  ;;  %v2819_v24 = vmax.f32 %v2301_v30, 0.0  ;;  %v2194_v8 = vadd.f32 %v2193_v0, %v12546_v18 }
 0x186   : > { %v2195_v39 = vpop.f32.mrf.mxu0 }
 0x187   : > { %v2308_v20 = vpop.f32.mrf.mxu1  ;;  %v2820_v13 = vmax.f32 %v2303_v31, 0.0  ;;  %v2196_v55 = vadd.f32 %v2195_v39, %v12545_v33  ;;  %v2855_v19 = vpack.c.bf16 %v2819_v24, %v2815_v34  ;;  %v2307_v44 = vadd.f32 %v2306_v14, %v2194_v8 }
 0x188   : > { %v2197_v42 = vpop.f32.mrf.mxu0 }
 0x189   : > { %v2310_v17 = vpop.f32.mrf.mxu1  ;;  %v2198_v21 = vadd.f32 %v2197_v42, %v2085_v57  ;;  %v2856_v26 = vpack.c.bf16 %v2820_v13, %v2816_v37  ;;  %v2309_v47 = vadd.f32 %v2308_v20, %v2196_v55  ;;  %v2823_v6 = vmax.f32 %v2307_v44, 0.0 }
 0x18a   : > { %v2199_v9 = vpop.f32.mrf.mxu0 }
 0x18b   : > { %v2312_v22 = vpop.f32.mrf.mxu1  ;;  %v2311_v52 = vadd.f32 %v2310_v17, %v2198_v21  ;;  %v2200_v36 = vadd.f32 %v2199_v9, %v2087_v29  ;;  %3351 = vmatprep.mubr.bf16.mxu0 %v2856_v26  ;;  %v2824_v46 = vmax.f32 %v2309_v47, 0.0 }
 0x18c   : > { %v2349_v38 = vpop.f32.mrf.mxu0  ;;  %3352 = vmatmul.mubr.bf16.gmra.mxu0 %v2855_v19 }
 0x18d   : > { %v2462_v49 = vpop.f32.mrf.mxu1  ;;  %v2313_v45 = vadd.f32 %v2312_v22, %v2200_v36  ;;  %v2350_v1 = vadd.f32 %v2349_v38, %v10753_v48  ;;  %v2827_v41 = vmax.f32 %v2311_v52, 0.0 }
 0x18e   : > { %v2351_v4 = vpop.f32.mrf.mxu0 }
 0x18f   : > { %v2464_v51 = vpop.f32.mrf.mxu1  ;;  %v2828_v40 = vmax.f32 %v2313_v45, 0.0  ;;  %v10759_v15 = vadd.f32 %v2462_v49, %v2350_v1  ;;  %v2352_v43 = vadd.f32 %v2351_v4, %v10756_v5  ;;  %v2859_v62 = vpack.c.bf16 %v2827_v41, %v2823_v6 }
 0x190   : > { %v10762_v61 = vpop.f32.mrf.mxu0 }
 0x191   : > { %v10764_v25 = vpop.f32.mrf.mxu1  ;;  %v10766_v12 = vadd.f32 %v2464_v51, %v2352_v43  ;;  %v2860_v53 = vpack.c.bf16 %v2828_v40, %v2824_v46 }
 0x192   : > { %v10768_v10 = vpop.f32.mrf.mxu0 }
 0x193   : > { %v10770_v59 = vpop.f32.mrf.mxu1  ;;  %3361 = vmatprep.mubr.bf16.mxu0 %v2860_v53 }
 0x194   : > { %v2359_v11 = vpop.f32.mrf.mxu0  ;;  %3362 = vmatmul.mubr.bf16.gmra.mxu0 %v2859_v62 }
 0x195   : > { %v2472_v16 = vpop.f32.mrf.mxu1  ;;  %v2360_v60 = vadd.f32 %v2359_v11, %v10753_v48  ;;  %3835 = vmatprep.mubr.bf16.mxu0 %v12548_v54 }
 0x196   : > { %v2361_v28 = vpop.f32.mrf.mxu0 }
 0x197   : > { %v2474_v56 = vpop.f32.mrf.mxu1  ;;  %v10774_v27 = vadd.f32 %v2472_v16, %v2360_v60  ;;  %v2362_v30 = vadd.f32 %v2361_v28, %v10756_v5 }
 0x198   : > { %v10777_v58 = vpop.f32.mrf.mxu0 }
 0x199   : > { %v10779_v35 = vpop.f32.mrf.mxu1  ;;  %v10781_v0 = vadd.f32 %v2474_v56, %v2362_v30 }
 0x19a   : > { %v10783_v14 = vpop.f32.mrf.mxu0 }
 0x19b   : > { %v10785_v7 = vpop.f32.mrf.mxu1 }
 0x19c   : > { %v2369_v31 = vpop.f32.mrf.mxu0 }
 0x19d   : > { %v2482_v24 = vpop.f32.mrf.mxu1  ;;  %v2370_v39 = vadd.f32 %v2369_v31, %v10753_v48 }
 0x19e   : > { %v2371_v20 = vpop.f32.mrf.mxu0 }
 0x19f   : > { %v2484_v50 = vpop.f32.mrf.mxu1  ;;  %v10788_v57 = vadd.f32 %v2482_v24, %v2370_v39  ;;  %v2372_v37 = vadd.f32 %v2371_v20, %v10756_v5 }
 0x1a0   : > { %v10791_v13 = vpop.f32.mrf.mxu0 }
 0x1a1   : > { %v10793_v33 = vpop.f32.mrf.mxu1  ;;  %v10795_v55 = vadd.f32 %v2484_v50, %v2372_v37 }
 0x1a2   : > { %v10797_v34 = vpop.f32.mrf.mxu0 }
 0x1a3   : > { %v10799_v18 = vpop.f32.mrf.mxu1 }
 0x1a4   : > { %v2379_v8 = vpop.f32.mrf.mxu0 }
 0x1a5   : > { %v2492_v42 = vpop.f32.mrf.mxu1  ;;  %v2380_v17 = vadd.f32 %v2379_v8, %v10753_v48 }
 0x1a6   : > { %v2381_v63 = vpop.f32.mrf.mxu0 }
 0x1a7   : > { %v2494_v29 = vpop.f32.mrf.mxu1  ;;  %v10802_v21 = vadd.f32 %v2492_v42, %v2380_v17  ;;  %v2382_v26 = vadd.f32 %v2381_v63, %v10756_v5 }
 0x1a8   : > { %v10805_v23 = vpop.f32.mrf.mxu0 }
 0x1a9   : > { %v10807_v19 = vpop.f32.mrf.mxu1  ;;  %v10809_v9 = vadd.f32 %v2494_v29, %v2382_v26 }
 0x1aa   : > { %v10811_v22 = vpop.f32.mrf.mxu0 }
 0x1ab   : > { %v10813_v47 = vpop.f32.mrf.mxu1 }
 0x1ac   : > { %v2389_v52 = vpop.f32.mrf.mxu0 }
 0x1ad   : > { %v2502_v36 = vpop.f32.mrf.mxu1  ;;  %v2390_v44 = vadd.f32 %v2389_v52, %v10753_v48 }
 0x1ae   : > { %v2391_v38 = vpop.f32.mrf.mxu0 }
 0x1af   : > { %v2504_v49 = vpop.f32.mrf.mxu1  ;;  %v10816_v45 = vadd.f32 %v2502_v36, %v2390_v44  ;;  %v2392_v1 = vadd.f32 %v2391_v38, %v10756_v5 }
 0x1b0   : > { %v10819_v41 = vpop.f32.mrf.mxu0 }
 0x1b1   : > { %v10821_v4 = vpop.f32.mrf.mxu1  ;;  %v10823_v51 = vadd.f32 %v2504_v49, %v2392_v1 }
 0x1b2   : > { %v10825_v46 = vpop.f32.mrf.mxu0 }
 0x1b3   : > { %v10827_v40 = vpop.f32.mrf.mxu1 }
 0x1b4   : > { %v2399_v43 = vpop.f32.mrf.mxu0 }
 0x1b5   : > { %v2512_v6 = vpop.f32.mrf.mxu1  ;;  %v2400_v53 = vadd.f32 %v2399_v43, %v10753_v48 }
 0x1b6   : > { %v2401_v62 = vpop.f32.mrf.mxu0 }
 0x1b7   : > { %v2514_v11 = vpop.f32.mrf.mxu1  ;;  %v10830_v16 = vadd.f32 %v2512_v6, %v2400_v53  ;;  %v2402_v60 = vadd.f32 %v2401_v62, %v10756_v5 }
 0x1b8   : > { %v10833_v28 = vpop.f32.mrf.mxu0 }
 0x1b9   : > { %v10835_v56 = vpop.f32.mrf.mxu1  ;;  %v10837_v30 = vadd.f32 %v2514_v11, %v2402_v60 }
 0x1ba   : > { %v10839_v31 = vpop.f32.mrf.mxu0 }
 0x1bb   : > { %v10841_v24 = vpop.f32.mrf.mxu1 }
 0x1bc   : > { %v2409_v39 = vpop.f32.mrf.mxu0 }
 0x1bd   : > { %v2522_v20 = vpop.f32.mrf.mxu1  ;;  %v2410_v50 = vadd.f32 %v2409_v39, %v10753_v48 }
 0x1be   : > { %v2411_v37 = vpop.f32.mrf.mxu0 }
 0x1bf   : > { %v2524_v8 = vpop.f32.mrf.mxu1  ;;  %v10844_v42 = vadd.f32 %v2522_v20, %v2410_v50  ;;  %v2412_v17 = vadd.f32 %v2411_v37, %v10756_v5  ;;  %v2354_v50 = vadd.f32 %v10762_v61, %v10753_v48 }
 0x1c0   : > { %v10847_v63 = vpop.f32.mrf.mxu0 }
 0x1c1   : > { %v10849_v29 = vpop.f32.mrf.mxu1  ;;  %v10851_v26 = vadd.f32 %v2524_v8, %v2412_v17  ;;  %v2356_v17 = vadd.f32 %v10768_v10, %v10756_v5 }
 0x1c2   : > { %v10853_v52 = vpop.f32.mrf.mxu0 }
 0x1c3   : > { %v10855_v36 = vpop.f32.mrf.mxu1  ;;  %v2469_v3 = vadd.f32 %v10770_v59, %v2356_v17 }
 0x1c4   : > { %v2419_v44 = vpop.f32.mrf.mxu0 }
 0x1c5   : > { %v2532_v38 = vpop.f32.mrf.mxu1  ;;  %v2420_v49 = vadd.f32 %v2419_v44, %v10753_v48 }
 0x1c6   : > { %v2421_v1 = vpop.f32.mrf.mxu0 }
 0x1c7   : > { %v2534_v43 = vpop.f32.mrf.mxu1  ;;  %v10858_v6 = vadd.f32 %v2532_v38, %v2420_v49  ;;  %v2422_v53 = vadd.f32 %v2421_v1, %v10756_v5  ;;  %v2467_v49 = vadd.f32 %v10764_v25, %v2354_v50 }
 0x1c8   : > { %v10861_v62 = vpop.f32.mrf.mxu0 }
 0x1c9   : > { %12549 = vst [vmem:[#allocation3_spill] sm:$0xff] %v10858_v6  ;;  %v10863_v11 = vpop.f32.mrf.mxu1  ;;  %v10865_v60 = vadd.f32 %v2534_v43, %v2422_v53 }
 0x1ca   : > { %12550 = vst [vmem:[#allocation4_spill] sm:$0xff] %v10863_v11  ;;  %v10867_v39 = vpop.f32.mrf.mxu0 }
 0x1cb   : > { %12551 = vst [vmem:[#allocation2_spill] sm:$0xff] %v10865_v60  ;;  %12552 = vst [vmem:[#allocation5_spill] sm:$0xff] %v10867_v39  ;;  %v10869_v20 = vpop.f32.mrf.mxu1 }
 0x1cc   : > { %12553 = vst [vmem:[#allocation11_spill] sm:$0xff] %v10869_v20  ;;  %v2575_v37 = vpop.f32.mrf.mxu0  ;;  %v2364_v20 = vadd.f32 %v10777_v58, %v10753_v48 }
 0x1cd   : > { %v2688_v8 = vpop.f32.mrf.mxu1  ;;  %v2576_v43 = vadd.f32 %v2575_v37, %v10759_v15 }
 0x1ce   : > { %v2577_v44 = vpop.f32.mrf.mxu0  ;;  %v2477_v59 = vadd.f32 %v10779_v35, %v2364_v20 }
 0x1cf   : > { %v2690_v38 = vpop.f32.mrf.mxu1  ;;  %v2578_v1 = vadd.f32 %v2577_v44, %v10766_v12  ;;  %v2689_v11 = vadd.f32 %v2688_v8, %v2576_v43  ;;  %v2366_v12 = vadd.f32 %v10783_v14, %v10756_v5  ;;  %v2374_v43 = vadd.f32 %v10791_v13, %v10753_v48  ;;  %v8687_v13 = vld [vmem:[%s12494_s6 + $0xe8] ss:$16 sps:$4 sm:$0xff]  }
 0x1d0   : > { %v2579_v53 = vpop.f32.mrf.mxu0 }
 0x1d1   : > { %v2692_v2 = vpop.f32.mrf.mxu1  ;;  %v2580_v32 = vadd.f32 %v2579_v53, %v2467_v49  ;;  %v2691_v6 = vadd.f32 %v2690_v38, %v2578_v1  ;;  %v2769_v58 = vmax.f32 %v2689_v11, 0.0 }
 0x1d2   : > { %v2581_v54 = vpop.f32.mrf.mxu0 }
 0x1d3   : > { %v2694_v61 = vpop.f32.mrf.mxu1  ;;  %v2693_v10 = vadd.f32 %v2692_v2, %v2580_v32  ;;  %v2582_v60 = vadd.f32 %v2581_v54, %v2469_v3  ;;  %v2770_v17 = vmax.f32 %v2691_v6, 0.0  ;;  %v2479_v54 = vadd.f32 %v10785_v7, %v2366_v12 }
 0x1d4   : > { %v2585_v39 = vpop.f32.mrf.mxu0 }
 0x1d5   : > { %v2698_v25 = vpop.f32.mrf.mxu1  ;;  %v2695_v15 = vadd.f32 %v2694_v61, %v2582_v60  ;;  %v2773_v50 = vmax.f32 %v2693_v10, 0.0  ;;  %v2586_v2 = vadd.f32 %v2585_v39, %v10774_v27  ;;  %v8684_v27 = vld [vmem:[%s12494_s6 + $0xe0] ss:$16 sps:$4 sm:$0xff]   ;;  %v8689_v61 = vld [vmem:[%s12494_s6 + $0xec] ss:$16 sps:$4 sm:$0xff]   ;;  %v2376_v10 = vadd.f32 %v10797_v34, %v10756_v5 }
 0x1d6   : > { %v2587_v37 = vpop.f32.mrf.mxu0  ;;  %3916 = vmatprep.subr.bf16.mxu1 %v8689_v61  ;;  %v2487_v34 = vadd.f32 %v10793_v33, %v2374_v43  ;;  %v8698_v33 = vld [vmem:[%s12494_s6 + $0xa4] ss:$16 sps:$4 sm:$0xff]   ;;  %v2386_v61 = vadd.f32 %v10811_v22, %v10756_v5  ;;  %v8705_v22 = vld [vmem:[%s12494_s6 + $0x88] ss:$16 sps:$4 sm:$0xff]  }
 0x1d7   : > { %v2700_v44 = vpop.f32.mrf.mxu1  ;;  %v2774_v49 = vmax.f32 %v2695_v15, 0.0  ;;  %v2588_v53 = vadd.f32 %v2587_v37, %v10781_v0  ;;  %v2833_v14 = vpack.c.bf16 %v2773_v50, %v2769_v58  ;;  %v8686_v0 = vld [vmem:[%s12494_s6 + $0xe4] ss:$16 sps:$4 sm:$0xff]   ;;  %v2699_v7 = vadd.f32 %v2698_v25, %v2586_v2  ;;  %v8693_v58 = vld [vmem:[%s12494_s6 + $0xc8] ss:$16 sps:$4 sm:$0xff]  }
 0x1d8   : > { %v2589_v3 = vpop.f32.mrf.mxu0  ;;  %3803 = vmatprep.subr.bf16.mxu0 %v8686_v0  ;;  %v8692_v25 = vld [vmem:[%s12494_s6 + $0xc4] ss:$16 sps:$4 sm:$0xff]  }
 0x1d9   : > { %v2702_v32 = vpop.f32.mrf.mxu1  ;;  %v2590_v8 = vadd.f32 %v2589_v3, %v2477_v59  ;;  %v2834_v38 = vpack.c.bf16 %v2774_v49, %v2770_v17  ;;  %v2701_v35 = vadd.f32 %v2700_v44, %v2588_v53  ;;  %3804 = vmatpush1.bf16.msra.mxu0 %v8684_v27  ;;  %v8690_v44 = vld [vmem:[%s12494_s6 + $0xc0] ss:$16 sps:$4 sm:$0xff]   ;;  %v8695_v59 = vld [vmem:[%s12494_s6 + $0xcc] ss:$16 sps:$4 sm:$0xff]   ;;  %v2777_v2 = vmax.f32 %v2699_v7, 0.0 }
 0x1da   : > { %v2591_v60 = vpop.f32.mrf.mxu0  ;;  %3805 = vmatprep.subr.bf16.mxu0 %v8692_v25  ;;  %v8699_v27 = vld [vmem:[%s12494_s6 + $0xa8] ss:$16 sps:$4 sm:$0xff]  }
 0x1db   : > { %v2704_v1 = vpop.f32.mrf.mxu1  ;;  %v2703_v6 = vadd.f32 %v2702_v32, %v2590_v8  ;;  %v2592_v20 = vadd.f32 %v2591_v60, %v2479_v54  ;;  %3404 = vmatprep.mubr.bf16.mxu1 %v2834_v38  ;;  %v2778_v17 = vmax.f32 %v2701_v35, 0.0  ;;  %v2489_v8 = vadd.f32 %v10799_v18, %v2376_v10  ;;  %v8696_v35 = vld [vmem:[%s12494_s6 + $0xa0] ss:$16 sps:$4 sm:$0xff]  }
 0x1dc   : > { %v2595_v11 = vpop.f32.mrf.mxu0  ;;  %3405 = vmatmul.mubr.bf16.vlgmr.msra.gmra.mxu1 %v2833_v14  ;;  %v8701_v14 = vld [vmem:[%s12494_s6 + $0xac] ss:$16 sps:$4 sm:$0xff]   ;;  %v2384_v60 = vadd.f32 %v10805_v23, %v10753_v48  ;;  %v8704_v23 = vld [vmem:[%s12494_s6 + $0x84] ss:$16 sps:$4 sm:$0xff]  }
 0x1dd   : > { %v2708_v39 = vpop.f32.mrf.mxu1  ;;  %v2705_v12 = vadd.f32 %v2704_v1, %v2592_v20  ;;  %v2781_v15 = vmax.f32 %v2703_v6, 0.0  ;;  %3917 = vmatpush1.bf16.msra.mxu1 %v8687_v13  ;;  %v2596_v3 = vadd.f32 %v2595_v11, %v10788_v57  ;;  %3806 = vmatpush1.bf16.msra.mxu0 %v8690_v44  ;;  %v8707_v13 = vld [vmem:[%s12494_s6 + $0x8c] ss:$16 sps:$4 sm:$0xff]  }
 0x1de   : > { %v2597_v50 = vpop.f32.mrf.mxu0  ;;  %3918 = vmatprep.subr.bf16.mxu1 %v8695_v59  ;;  %3807 = vmatprep.subr.bf16.mxu0 %v8698_v33 }
 0x1df   : > { %v2710_v37 = vpop.f32.mrf.mxu1  ;;  %v2782_v49 = vmax.f32 %v2705_v12, 0.0  ;;  %v2598_v53 = vadd.f32 %v2597_v50, %v10795_v55  ;;  %v2837_v1 = vpack.c.bf16 %v2781_v15, %v2777_v2  ;;  %v2709_v0 = vadd.f32 %v2708_v39, %v2596_v3  ;;  %v8702_v39 = vld [vmem:[%s12494_s6 + $0x80] ss:$16 sps:$4 sm:$0xff]  }
 0x1e0   : > { %v2599_v32 = vpop.f32.mrf.mxu0  ;;  %v2497_v50 = vadd.f32 %v10807_v19, %v2384_v60  ;;  %v2394_v3 = vadd.f32 %v10819_v41, %v10753_v48 }
 0x1e1   : > { %v2712_v54 = vpop.f32.mrf.mxu1  ;;  %v2600_v38 = vadd.f32 %v2599_v32, %v2487_v34  ;;  %v2838_v55 = vpack.c.bf16 %v2782_v49, %v2778_v17  ;;  %v2711_v6 = vadd.f32 %v2710_v37, %v2598_v53  ;;  %3919 = vmatpush1.bf16.msra.mxu1 %v8693_v58  ;;  %3808 = vmatpush1.bf16.msra.mxu0 %v8696_v35  ;;  %v2785_v34 = vmax.f32 %v2709_v0, 0.0 }
 0x1e2   : > { %v2601_v57 = vpop.f32.mrf.mxu0  ;;  %3920 = vmatprep.subr.bf16.mxu1 %v8701_v14  ;;  %3809 = vmatprep.subr.bf16.mxu0 %v8704_v23  ;;  %v2499_v58 = vadd.f32 %v10813_v47, %v2386_v61  ;;  %v2396_v47 = vadd.f32 %v10825_v46, %v10756_v5 }
 0x1e3   : > { %v2714_v43 = vpop.f32.mrf.mxu1  ;;  %v2713_v20 = vadd.f32 %v2712_v54, %v2600_v38  ;;  %v2602_v18 = vadd.f32 %v2601_v57, %v2489_v8  ;;  %3414 = vmatprep.mubr.bf16.mxu1 %v2838_v55  ;;  %v2786_v37 = vmax.f32 %v2711_v6, 0.0 }
 0x1e4   : > { %v2605_v7 = vpop.f32.mrf.mxu0  ;;  %3415 = vmatmul.mubr.bf16.gmra.mxu1 %v2837_v1 }
 0x1e5   : > { %v2718_v11 = vpop.f32.mrf.mxu1  ;;  %v2715_v10 = vadd.f32 %v2714_v43, %v2602_v18  ;;  %v2789_v12 = vmax.f32 %v2713_v20, 0.0  ;;  %3921 = vmatpush1.bf16.msra.mxu1 %v8699_v27  ;;  %v2606_v17 = vadd.f32 %v2605_v7, %v10802_v21  ;;  %3810 = vmatpush1.bf16.msra.mxu0 %v8702_v39  ;;  %v2507_v43 = vadd.f32 %v10821_v4, %v2394_v3 }
 0x1e6   : > { %v2607_v25 = vpop.f32.mrf.mxu0  ;;  %3922 = vmatprep.subr.bf16.mxu1 %v8707_v13  ;;  %v2509_v7 = vadd.f32 %v10827_v40, %v2396_v47 }
 0x1e7   : > { %v2720_v15 = vpop.f32.mrf.mxu1  ;;  %v2790_v44 = vmax.f32 %v2715_v10, 0.0  ;;  %v2608_v59 = vadd.f32 %v2607_v25, %v10809_v9  ;;  %v2841_v9 = vpack.c.bf16 %v2789_v12, %v2785_v34  ;;  %v2719_v21 = vadd.f32 %v2718_v11, %v2606_v17 }
 0x1e8   : > { %v2609_v49 = vpop.f32.mrf.mxu0  ;;  %v2404_v12 = vadd.f32 %v10833_v28, %v10753_v48 }
 0x1e9   : > { %v2722_v53 = vpop.f32.mrf.mxu1  ;;  %v2610_v2 = vadd.f32 %v2609_v49, %v2497_v50  ;;  %v2842_v19 = vpack.c.bf16 %v2790_v44, %v2786_v37  ;;  %v2721_v33 = vadd.f32 %v2720_v15, %v2608_v59  ;;  %3923 = vmatpush1.bf16.msra.mxu1 %v8705_v22  ;;  %v2793_v18 = vmax.f32 %v2719_v21, 0.0 }
 0x1ea   : > { %v2611_v32 = vpop.f32.mrf.mxu0  ;;  %v2517_v22 = vadd.f32 %v10835_v56, %v2404_v12 }
 0x1eb   : > { %v2724_v54 = vpop.f32.mrf.mxu1  ;;  %v2723_v8 = vadd.f32 %v2722_v53, %v2610_v2  ;;  %v2612_v38 = vadd.f32 %v2611_v32, %v2499_v58  ;;  %3424 = vmatprep.mubr.bf16.mxu1 %v2842_v19  ;;  %v2794_v35 = vmax.f32 %v2721_v33, 0.0  ;;  %v2414_v33 = vadd.f32 %v10847_v63, %v10753_v48 }
 0x1ec   : > { %v2615_v55 = vpop.f32.mrf.mxu0  ;;  %3425 = vmatmul.mubr.bf16.gmra.mxu1 %v2841_v9 }
 0x1ed   : > { %v2728_v14 = vpop.f32.mrf.mxu1  ;;  %v2725_v60 = vadd.f32 %v2724_v54, %v2612_v38  ;;  %v2797_v1 = vmax.f32 %v2723_v8, 0.0  ;;  %v2616_v27 = vadd.f32 %v2615_v55, %v10816_v45  ;;  %v2406_v45 = vadd.f32 %v10839_v31, %v10756_v5 }
 0x1ee   : > { %v2617_v57 = vpop.f32.mrf.mxu0 }
 0x1ef   : > { %v2730_v41 = vpop.f32.mrf.mxu1  ;;  %v2798_v6 = vmax.f32 %v2725_v60, 0.0  ;;  %v2618_v20 = vadd.f32 %v2617_v57, %v10823_v51  ;;  %v2845_v46 = vpack.c.bf16 %v2797_v1, %v2793_v18  ;;  %v2729_v51 = vadd.f32 %v2728_v14, %v2616_v27 }
 0x1f0   : > { %v2619_v23 = vpop.f32.mrf.mxu0  ;;  %v2519_v19 = vadd.f32 %v10841_v24, %v2406_v45  ;;  %v2527_v1 = vadd.f32 %v10849_v29, %v2414_v33 }
 0x1f1   : > { %v2732_v0 = vpop.f32.mrf.mxu1  ;;  %v2620_v11 = vadd.f32 %v2619_v23, %v2507_v43  ;;  %v2846_v13 = vpack.c.bf16 %v2798_v6, %v2794_v35  ;;  %v2731_v4 = vadd.f32 %v2730_v41, %v2618_v20  ;;  %v2801_v49 = vmax.f32 %v2729_v51, 0.0  ;;  %v12555_v51 = vld [vmem:[#allocation4_spill] sm:$0xff] }
 0x1f2   : > { %v2621_v61 = vpop.f32.mrf.mxu0 }
 0x1f3   : > { %v2734_v10 = vpop.f32.mrf.mxu1  ;;  %v2733_v25 = vadd.f32 %v2732_v0, %v2620_v11  ;;  %v2622_v15 = vadd.f32 %v2621_v61, %v2509_v7  ;;  %3434 = vmatprep.mubr.bf16.mxu1 %v2846_v13  ;;  %v2802_v34 = vmax.f32 %v2731_v4, 0.0  ;;  %v2424_v11 = vadd.f32 %v10861_v62, %v10753_v48  ;;  %v12556_v48 = vld [vmem:[#allocation2_spill] sm:$0xff] }
 0x1f4   : > { %v2625_v39 = vpop.f32.mrf.mxu0  ;;  %3435 = vmatmul.mubr.bf16.gmra.mxu1 %v2845_v46 }
 0x1f5   : > { %v2738_v50 = vpop.f32.mrf.mxu1  ;;  %v2735_v40 = vadd.f32 %v2734_v10, %v2622_v15  ;;  %v2805_v37 = vmax.f32 %v2733_v25, 0.0  ;;  %v2626_v53 = vadd.f32 %v2625_v39, %v10830_v16  ;;  %v2416_v16 = vadd.f32 %v10853_v52, %v10756_v5 }
 0x1f6   : > { %v2627_v44 = vpop.f32.mrf.mxu0  ;;  %v2537_v39 = vadd.f32 %v12555_v51, %v2424_v11 }
 0x1f7   : > { %v2740_v59 = vpop.f32.mrf.mxu1  ;;  %v2806_v17 = vmax.f32 %v2735_v40, 0.0  ;;  %v2628_v28 = vadd.f32 %v2627_v44, %v10837_v30  ;;  %v2849_v31 = vpack.c.bf16 %v2805_v37, %v2801_v49  ;;  %v2739_v30 = vadd.f32 %v2738_v50, %v2626_v53  ;;  %v12557_v37 = vld [vmem:[#allocation3_spill] sm:$0xff] }
 0x1f8   : > { %v2629_v58 = vpop.f32.mrf.mxu0  ;;  %v2529_v18 = vadd.f32 %v10855_v36, %v2416_v16  ;;  %v8713_v16 = vld [vmem:[%s12494_s6 + $0x6c] ss:$16 sps:$4 sm:$0xff]  }
 0x1f9   : > { %v2742_v2 = vpop.f32.mrf.mxu1  ;;  %v2630_v3 = vadd.f32 %v2629_v58, %v2517_v22  ;;  %v2850_v9 = vpack.c.bf16 %v2806_v17, %v2802_v34  ;;  %v2741_v56 = vadd.f32 %v2740_v59, %v2628_v28  ;;  %v2809_v43 = vmax.f32 %v2739_v30, 0.0  ;;  %v12558_v34 = vld [vmem:[#allocation11_spill] sm:$0xff]  ;;  %3924 = vmatprep.subr.bf16.mxu1 %v8713_v16 }
 0x1fa   : > { %v2631_v32 = vpop.f32.mrf.mxu0  ;;  %v12559_v30 = vmov 0  }
 0x1fb   : > { %v2744_v54 = vpop.f32.mrf.mxu1  ;;  %v2743_v8 = vadd.f32 %v2742_v2, %v2630_v3  ;;  %v2632_v38 = vadd.f32 %v2631_v32, %v2519_v19  ;;  %3444 = vmatprep.mubr.bf16.mxu1 %v2850_v9  ;;  %v2810_v57 = vmax.f32 %v2741_v56, 0.0 }
 0x1fc   : > { %v2635_v21 = vpop.f32.mrf.mxu0  ;;  %3445 = vmatmul.mubr.bf16.gmra.mxu1 %v2849_v31 }
 0x1fd   : > { %v2748_v55 = vpop.f32.mrf.mxu1  ;;  %v2745_v24 = vadd.f32 %v2744_v54, %v2632_v38  ;;  %v2813_v14 = vmax.f32 %v2743_v8, 0.0  ;;  %v2636_v35 = vadd.f32 %v2635_v21, %v10844_v42  ;;  %v12554_v42 = vld [vmem:[#allocation5_spill] sm:$0xff]  ;;  %v8708_v21 = vld [vmem:[%s12494_s6 + $0x60] ss:$16 sps:$4 sm:$0xff]  }
 0x1fe   : > { %v2637_v47 = vpop.f32.mrf.mxu0  ;;  %v2426_v12 = vadd.f32 %v12554_v42, %v10756_v5 }
 0x1ff   : > { %v2750_v60 = vpop.f32.mrf.mxu1  ;;  %v2814_v41 = vmax.f32 %v2745_v24, 0.0  ;;  %v2638_v63 = vadd.f32 %v2637_v47, %v10851_v26  ;;  %v2853_v52 = vpack.c.bf16 %v2813_v14, %v2809_v43  ;;  %v2749_v26 = vadd.f32 %v2748_v55, %v2636_v35  ;;  %v8710_v55 = vld [vmem:[%s12494_s6 + $0x64] ss:$16 sps:$4 sm:$0xff]   ;;  %v8711_v24 = vld [vmem:[%s12494_s6 + $0x68] ss:$16 sps:$4 sm:$0xff]  }
 0x200   : > { %v2639_v6 = vpop.f32.mrf.mxu0  ;;  %v2539_v17 = vadd.f32 %v12558_v34, %v2426_v12  ;;  %3811 = vmatprep.subr.bf16.mxu0 %v8710_v55  ;;  %3925 = vmatpush1.bf16.msra.mxu1 %v8711_v24  ;;  %v8716_v14 = vld [vmem:[%s12494_s6 + $0x44] ss:$16 sps:$4 sm:$0xff]   ;;  %v8719_v47 = vld [vmem:[%s12494_s6 + $0x4c] ss:$16 sps:$4 sm:$0xff]   ;;  %v8723_v43 = vld [vmem:[%s12494_s6 + $0x28] ss:$16 sps:$4 sm:$0xff]  }
 0x201   : > { %v2752_v20 = vpop.f32.mrf.mxu1  ;;  %v2640_v27 = vadd.f32 %v2639_v6, %v2527_v1  ;;  %v2854_v23 = vpack.c.bf16 %v2814_v41, %v2810_v57  ;;  %v2751_v29 = vadd.f32 %v2750_v60, %v2638_v63  ;;  %v2817_v40 = vmax.f32 %v2749_v26, 0.0  ;;  %3812 = vmatpush1.bf16.msra.mxu0 %v8708_v21  ;;  %v8714_v60 = vld [vmem:[%s12494_s6 + $0x40] ss:$16 sps:$4 sm:$0xff]   ;;  %v8717_v1 = vld [vmem:[%s12494_s6 + $0x48] ss:$16 sps:$4 sm:$0xff]   ;;  %3926 = vmatprep.subr.bf16.mxu1 %v8719_v47 }
 0x202   : > { %v2641_v0 = vpop.f32.mrf.mxu0  ;;  %3813 = vmatprep.subr.bf16.mxu0 %v8716_v14  ;;  %v8722_v57 = vld [vmem:[%s12494_s6 + $0x24] ss:$16 sps:$4 sm:$0xff]   ;;  %v8725_v41 = vld [vmem:[%s12494_s6 + $0x2c] ss:$16 sps:$4 sm:$0xff]   ;;  %v8720_v63 = vld [vmem:[%s12494_s6 + $0x20] ss:$16 sps:$4 sm:$0xff]  }
 0x203   : > { %v2754_v7 = vpop.f32.mrf.mxu1  ;;  %v2753_v13 = vadd.f32 %v2752_v20, %v2640_v27  ;;  %v2642_v46 = vadd.f32 %v2641_v0, %v2529_v18  ;;  %3454 = vmatprep.mubr.bf16.mxu1 %v2854_v23  ;;  %v2818_v50 = vmax.f32 %v2751_v29, 0.0  ;;  %v8728_v35 = vld [vmem:[%s12494_s6 + $0x4] ss:$16 sps:$4 sm:$0xff]   ;;  %v8731_v6 = vld [vmem:[%s12494_s6 + $0xc] ss:$16 sps:$4 sm:$0xff]  }
 0x204   : > { %v2645_v61 = vpop.f32.mrf.mxu0  ;;  %3455 = vmatmul.mubr.bf16.gmra.mxu1 %v2853_v52  ;;  %v8726_v20 = vld [vmem:[%s12494_s6] ss:$16 sps:$4 sm:$0xff]   ;;  %v8729_v18 = vld [vmem:[%s12494_s6 + $0x8] ss:$16 sps:$4 sm:$0xff]  }
 0x205   : > { %v2758_v10 = vpop.f32.mrf.mxu1  ;;  %v2755_v36 = vadd.f32 %v2754_v7, %v2642_v46  ;;  %v2821_v4 = vmax.f32 %v2753_v13, 0.0  ;;  %v2646_v44 = vadd.f32 %v2645_v61, %v12557_v37  ;;  %3814 = vmatpush1.bf16.msra.mxu0 %v8714_v60  ;;  %3927 = vmatpush1.bf16.msra.mxu1 %v8717_v1  ;;  %v8734_v46 = vld [vmem:[%s12496_s8 + $0x18c] ss:$28 sps:$4 sm:$0xff]  }
 0x206   : > { %v2647_v25 = vpop.f32.mrf.mxu0  ;;  %3815 = vmatprep.subr.bf16.mxu0 %v8722_v57  ;;  %3928 = vmatprep.subr.bf16.mxu1 %v8725_v41  ;;  %v8737_v26 = vld [vmem:[%s12496_s8 + $0x50c] ss:$28 sps:$4 sm:$0xff]  }
 0x207   : > { %v2760_v15 = vpop.f32.mrf.mxu1  ;;  %v2822_v45 = vmax.f32 %v2755_v36, 0.0  ;;  %v2648_v62 = vadd.f32 %v2647_v25, %v12556_v48  ;;  %v2857_v5 = vpack.c.bf16 %v2821_v4, %v2817_v40  ;;  %v2759_v3 = vadd.f32 %v2758_v10, %v2646_v44 }
 0x208   : > { %v2649_v59 = vpop.f32.mrf.mxu0 }
 0x209   : > { %v2762_v22 = vpop.f32.mrf.mxu1  ;;  %v2650_v28 = vadd.f32 %v2649_v59, %v2537_v39  ;;  %v2858_v49 = vpack.c.bf16 %v2822_v45, %v2818_v50  ;;  %v2761_v58 = vadd.f32 %v2760_v15, %v2648_v62  ;;  %v2825_v56 = vmax.f32 %v2759_v3, 0.0  ;;  %3816 = vmatpush1.bf16.msra.mxu0 %v8720_v63  ;;  %3929 = vmatpush1.bf16.msra.mxu1 %v8723_v43  ;;  %v2927_v15 = vld [vmem:[%s12493_s5] sm:$0x3]  ;;  %v12560_v39 = vld [vmem:[#allocation9_spill] sm:$0xff] }
 0x20a   : > { %v2651_v53 = vpop.f32.mrf.mxu0  ;;  %3817 = vmatprep.subr.bf16.mxu0 %v8728_v35  ;;  %3930 = vmatprep.subr.bf16.mxu1 %v8731_v6  ;;  %v11054_v50 = vrot.slane %v2927_v15, %v12560_v39  ;;  %v12561_v45 = vld [vmem:[#allocation10_spill] sm:$0xff] }
 0x20b   : > { %v2763_v2 = vadd.f32 %v2762_v22, %v2650_v28  ;;  %v2652_v19 = vadd.f32 %v2651_v53, %v2539_v17  ;;  %3464 = vmatprep.mubr.bf16.mxu1 %v2858_v49  ;;  %v2764_v9 = vpop.f32.mrf.mxu1  ;;  %v2826_v54 = vmax.f32 %v2761_v58, 0.0  ;;  %v11057_v48 = vrot.slane %v2927_v15, %v12561_v45 }
 0x20c   : > { %3465 = vmatmul.mubr.bf16.gmra.mxu1 %v2857_v5 }
 0x20d   : > { %v2765_v31 = vadd.f32 %v2764_v9, %v2652_v19  ;;  %v2829_v32 = vmax.f32 %v2763_v2, 0.0  ;;  %3818 = vmatpush1.bf16.msra.mxu0 %v8726_v20  ;;  %3931 = vmatpush1.bf16.msra.mxu1 %v8729_v18 }
 0x20e   : > { %5570 = vmatprep.subr.bf16.mxu0 %v8734_v46  ;;  %5683 = vmatprep.subr.bf16.mxu1 %v8737_v26  ;;  %v3485_v46 = vld [vmem:[%s11130_s19] sm:$0xff] }
 0x20f   : > { %v2830_v33 = vmax.f32 %v2765_v31, 0.0  ;;  %v2861_v38 = vpack.c.bf16 %v2829_v32, %v2825_v56 }
 0x211   : > { %v2862_v8 = vpack.c.bf16 %v2830_v33, %v2826_v54 }
 0x213   : > { %3474 = vmatprep.mubr.bf16.mxu1 %v2862_v8 }
 0x214   : > { %3475 = vmatmul.mubr.bf16.gmra.mxu1 %v2861_v38 }
 0x215   : > { %3948 = vmatprep.mubr.bf16.mxu1 %v12559_v30 }
 0x21c   : > { %v3293_v27 = vpop.f32.mrf.mxu0 }
 0x21d   : > { %v3294_v40 = vadd.f32 %v3293_v27, %v11054_v50 }
 0x21e   : > { %v3295_v23 = vpop.f32.mrf.mxu0 }
 0x21f   : > { %v3296_v44 = vadd.f32 %v3295_v23, %v11057_v48 }
 0x220   : > { %v3297_v52 = vpop.f32.mrf.mxu0 }
 0x221   : > { %v3298_v17 = vadd.f32 %v3297_v52, %v11054_v50 }
 0x222   : > { %v3299_v0 = vpop.f32.mrf.mxu0 }
 0x223   : > { %v3300_v5 = vadd.f32 %v3299_v0, %v11057_v48 }
 0x224   : > { %v3303_v7 = vpop.f32.mrf.mxu0 }
 0x225   : > { %v3304_v3 = vadd.f32 %v3303_v7, %v11054_v50 }
 0x226   : > { %v3305_v11 = vpop.f32.mrf.mxu0 }
 0x227   : > { %v3306_v54 = vadd.f32 %v3305_v11, %v11057_v48 }
 0x228   : > { %v3307_v29 = vpop.f32.mrf.mxu0 }
 0x229   : > { %v3308_v21 = vadd.f32 %v3307_v29, %v11054_v50 }
 0x22a   : > { %v3309_v13 = vpop.f32.mrf.mxu0 }
 0x22b   : > { %v3310_v14 = vadd.f32 %v3309_v13, %v11057_v48 }
 0x22c   : > { %v3313_v61 = vpop.f32.mrf.mxu0 }
 0x22d   : > { %v3314_v41 = vadd.f32 %v3313_v61, %v11054_v50 }
 0x22e   : > { %v3315_v10 = vpop.f32.mrf.mxu0 }
 0x22f   : > { %v3316_v6 = vadd.f32 %v3315_v10, %v11057_v48 }
 0x230   : > { %v11038_v42 = vpop.f32.mrf.mxu0 }
 0x231   : > { %v3318_v52 = vadd.f32 %v11038_v42, %v11054_v50 }
 0x232   : > { %v11040_v12 = vpop.f32.mrf.mxu0 }
 0x233   : > { %v3320_v29 = vadd.f32 %v11040_v12, %v11057_v48 }
 0x234   : > { %v11042_v36 = vpop.f32.mrf.mxu0 }
 0x235   : > { %v3324_v15 = vadd.f32 %v11042_v36, %v11054_v50 }
 0x236   : > { %v11044_v4 = vpop.f32.mrf.mxu0 }
 0x238   : > { %v11046_v25 = vpop.f32.mrf.mxu0 }
 0x23a   : > { %v11051_v51 = vpop.f32.mrf.mxu0 }
 0x23c   : > { %v11059_v62 = vpop.f32.mrf.mxu0 }
 0x23e   : > { %v11072_v59 = vpop.f32.mrf.mxu0 }
 0x240   : > { %v11087_v53 = vpop.f32.mrf.mxu0 }
 0x242   : > { %v11098_v33 = vpop.f32.mrf.mxu0 }
 0x244   : > { %v11109_v47 = vpop.f32.mrf.mxu0 }
 0x246   : > { %v11120_v20 = vpop.f32.mrf.mxu0 }
 0x248   : > { %v11139_v13 = vpop.f32.mrf.mxu0 }
 0x29c   : > { %v3406_v37 = vpop.f32.mrf.mxu1 }
 0x29d   : > { %v11074_v22 = vadd.f32 %v3406_v37, %v3294_v40 }
 0x29e   : > { %v3408_v34 = vpop.f32.mrf.mxu1 }
 0x29f   : > { %7308 = vst.msk [vmem:[%s11069_s30] sm:$0xff] %vm7307_vm1, %v11074_v22  ;;  %v3409_v28 = vadd.f32 %v3408_v34, %v3296_v44  ;;  %v3486_v44 = vld [vmem:[%s11130_s19 + $0x8] sm:$0xff] }
 0x2a0   : > { %v3410_v49 = vpop.f32.mrf.mxu1 }
 0x2a1   : > { %v3501_v58 = vmul.f32 0.5, %v3409_v28  ;;  %7324 = vst.msk [vmem:[%s11080_s16] sm:$0xff] %vm7307_vm1, %v3409_v28  ;;  %v11091_v2 = vadd.f32 %v3410_v49, %v3298_v17  ;;  %v3326_v17 = vadd.f32 %v11044_v4, %v11057_v48  ;;  %v11154_v28 = vpop.f32.mrf.mxu0 }
 0x2a2   : > { %v3412_v19 = vpop.f32.mrf.mxu1 }
 0x2a3   : > { %v3517_v9 = vmul.f32 1.442695, %v3501_v58  ;;  %7309 = vst.msk [vmem:[%s11069_s30 + $0x8] sm:$0xff] %vm7307_vm1, %v11091_v2  ;;  %v3413_v31 = vadd.f32 %v3412_v19, %v3300_v5  ;;  %v3328_v19 = vadd.f32 %v11046_v25, %v11054_v50 }
 0x2a4   : > { %v3416_v32 = vpop.f32.mrf.mxu1 }
 0x2a5   : > { %9052 = vpow2.f32 %v3517_v9  ;;  %v3502_v56 = vmul.f32 0.5, %v3413_v31  ;;  %7325 = vst.msk [vmem:[%s11080_s16 + $0x8] sm:$0xff] %vm7307_vm1, %v3413_v31  ;;  %v11102_v8 = vadd.f32 %v3416_v32, %v3304_v3  ;;  %v3330_v31 = vadd.f32 %v11051_v51, %v11057_v48 }
 0x2a6   : > { %v3418_v38 = vpop.f32.mrf.mxu1  ;;  %v3334_v51 = vadd.f32 %v11059_v62, %v11054_v50  ;;  %v8740_v62 = vld [vmem:[%s12496_s8 + $0x154] ss:$28 sps:$4 sm:$0xff]  }
 0x2a7   : > { %v3519_v55 = vmul.f32 1.442695, %v3502_v56  ;;  %7310 = vst.msk [vmem:[%s11069_s30 + $0x10] sm:$0xff] %vm7307_vm1, %v11102_v8  ;;  %v3419_v16 = vadd.f32 %v3418_v38, %v3306_v54  ;;  %v11168_v56 = vpop.f32.mrf.mxu0 }
 0x2a8   : > { %v3420_v24 = vpop.f32.mrf.mxu1 }
 0x2a9   : > { %9054 = vpow2.f32 %v3519_v55  ;;  %v3503_v60 = vmul.f32 0.5, %v3419_v16  ;;  %7326 = vst.msk [vmem:[%s11080_s16 + $0x10] sm:$0xff] %vm7307_vm1, %v3419_v16  ;;  %v11113_v1 = vadd.f32 %v3420_v24, %v3308_v21  ;;  %v3487_v55 = vld [vmem:[%s11130_s19 + $0x10] sm:$0xff] }
 0x2aa   : > { %v3422_v57 = vpop.f32.mrf.mxu1 }
 0x2ab   : > { %v3521_v63 = vmul.f32 1.442695, %v3503_v60  ;;  %7311 = vst.msk [vmem:[%s11069_s30 + $0x18] sm:$0xff] %vm7307_vm1, %v11113_v1  ;;  %v3423_v43 = vadd.f32 %v3422_v57, %v3310_v14  ;;  %v8732_v57 = vld [vmem:[%s12496_s8 + $0x188] ss:$28 sps:$4 sm:$0xff]  }
 0x2ac   : > { %v3426_v35 = vpop.f32.mrf.mxu1 }
 0x2ad   : > { %9056 = vpow2.f32 %v3521_v63  ;;  %v3504_v18 = vmul.f32 0.5, %v3423_v43  ;;  %7327 = vst.msk [vmem:[%s11080_s16 + $0x18] sm:$0xff] %vm7307_vm1, %v3423_v43  ;;  %v11124_v27 = vadd.f32 %v3426_v35, %v3314_v41  ;;  %v3488_v63 = vld [vmem:[%s11130_s19 + $0x18] sm:$0xff]  ;;  %v8743_v35 = vld [vmem:[%s12496_s8 + $0x4d4] ss:$28 sps:$4 sm:$0xff]  }
 0x2ae   : > { %v3428_v23 = vpop.f32.mrf.mxu1 }
 0x2af   : > { %v3523_v0 = vmul.f32 1.442695, %v3504_v18  ;;  %7312 = vst.msk [vmem:[%s11069_s30 + $0x20] sm:$0xff] %vm7307_vm1, %v11124_v27  ;;  %v3429_v7 = vadd.f32 %v3428_v23, %v3316_v6  ;;  %v3336_v6 = vadd.f32 %v11072_v59, %v11057_v48  ;;  %v11196_v18 = vpop.f32.mrf.mxu0 }
 0x2b0   : > { %v3430_v11 = vpop.f32.mrf.mxu1 }
 0x2b1   : > { %9058 = vpow2.f32 %v3523_v0  ;;  %v3505_v26 = vmul.f32 0.5, %v3429_v7  ;;  %7328 = vst.msk [vmem:[%s11080_s16 + $0x20] sm:$0xff] %vm7307_vm1, %v3429_v7  ;;  %v11144_v61 = vadd.f32 %v3430_v11, %v3318_v52  ;;  %v3338_v11 = vadd.f32 %v11087_v53, %v11054_v50 }
 0x2b2   : > { %v9053_v10 = vpop.eup %9052  ;;  %v3432_v42 = vpop.f32.mrf.mxu1  ;;  %v3340_v53 = vadd.f32 %v11098_v33, %v11057_v48 }
 0x2b3   : > { %v3525_v40 = vmul.f32 1.442695, %v3505_v26  ;;  %7313 = vst.msk [vmem:[%s11069_s30 + $0x28] sm:$0xff] %vm7307_vm1, %v11144_v61  ;;  %v3433_v12 = vadd.f32 %v3432_v42, %v3320_v29  ;;  %v3549_v37 = vmul.f32 %v9053_v10, %v3485_v46  ;;  %v8738_v26 = vld [vmem:[%s12496_s8 + $0x150] ss:$28 sps:$4 sm:$0xff]  }
 0x2b4   : > { %v3436_v34 = vpop.f32.mrf.mxu1  ;;  %v8741_v10 = vld [vmem:[%s12496_s8 + $0x4d0] ss:$28 sps:$4 sm:$0xff]  }
 0x2b5   : > { %9060 = vpow2.f32 %v3525_v40  ;;  %v3506_v49 = vmul.f32 0.5, %v3433_v12  ;;  %7329 = vst.msk [vmem:[%s11080_s16 + $0x28] sm:$0xff] %vm7307_vm1, %v3433_v12  ;;  %v11158_v36 = vadd.f32 %v3436_v34, %v3324_v15  ;;  %v3565_v54 = vadd.f32 %v3549_v37, %v11074_v22  ;;  %v8746_v40 = vld [vmem:[%s12496_s8 + $0x11c] ss:$28 sps:$4 sm:$0xff]   ;;  %v11224_v37 = vpop.f32.mrf.mxu0  ;;  %v3489_v34 = vld [vmem:[%s11130_s19 + $0x20] sm:$0xff] }
 0x2b6   : > { %v9055_v5 = vpop.eup %9054  ;;  %v3438_v58 = vpop.f32.mrf.mxu1  ;;  %v8749_v12 = vld [vmem:[%s12496_s8 + $0x49c] ss:$28 sps:$4 sm:$0xff]  }
 0x2b7   : > { %v3550_v3 = vmul.f32 %v9055_v5, %v3486_v44  ;;  %v3527_v9 = vmul.f32 1.442695, %v3506_v49  ;;  %7314 = vst.msk [vmem:[%s11069_s30 + $0x30] sm:$0xff] %vm7307_vm1, %v11158_v36  ;;  %v3439_v4 = vadd.f32 %v3438_v58, %v3326_v17  ;;  %v3344_v5 = vadd.f32 %v11109_v47, %v11054_v50 }
 0x2b8   : > { %v3440_v32 = vpop.f32.mrf.mxu1 }
 0x2b9   : > { %9062 = vpow2.f32 %v3527_v9  ;;  %v3507_v38 = vmul.f32 0.5, %v3439_v4  ;;  %7330 = vst.msk [vmem:[%s11080_s16 + $0x30] sm:$0xff] %vm7307_vm1, %v3439_v4  ;;  %v11172_v25 = vadd.f32 %v3440_v32, %v3328_v19  ;;  %v3566_v21 = vadd.f32 %v3550_v3, %v11091_v2  ;;  %v8735_v2 = vld [vmem:[%s12496_s8 + $0x508] ss:$28 sps:$4 sm:$0xff]   ;;  %v8744_v9 = vld [vmem:[%s12496_s8 + $0x118] ss:$28 sps:$4 sm:$0xff]  }
 0x2ba   : > { %v9057_v16 = vpop.eup %9056  ;;  %v3442_v24 = vpop.f32.mrf.mxu1  ;;  %v8752_v32 = vld [vmem:[%s12496_s8 + $0xe4] ss:$28 sps:$4 sm:$0xff]  }
 0x2bb   : > { %v3529_v14 = vmul.f32 1.442695, %v3507_v38  ;;  %7315 = vst.msk [vmem:[%s11069_s30 + $0x38] sm:$0xff] %vm7307_vm1, %v11172_v25  ;;  %v3443_v22 = vadd.f32 %v3442_v24, %v3330_v31  ;;  %v3581_v60 = vpack.c.bf16 %v3566_v21, %v3565_v54  ;;  %v3551_v43 = vmul.f32 %v9057_v16, %v3487_v55  ;;  %v3490_v31 = vld [vmem:[%s11130_s19 + $0x28] sm:$0xff]  ;;  %v8755_v54 = vld [vmem:[%s12496_s8 + $0x464] ss:$28 sps:$4 sm:$0xff]   ;;  %v11252_v21 = vpop.f32.mrf.mxu0 }
 0x2bc   : > { %v3446_v41 = vpop.f32.mrf.mxu1  ;;  %v3346_v38 = vadd.f32 %v11120_v20, %v11057_v48 }
 0x2bd   : > { %9064 = vpow2.f32 %v3529_v14  ;;  %v3508_v23 = vmul.f32 0.5, %v3443_v22  ;;  %7331 = vst.msk [vmem:[%s11080_s16 + $0x38] sm:$0xff] %vm7307_vm1, %v3443_v22  ;;  %v11200_v52 = vadd.f32 %v3446_v41, %v3334_v51  ;;  %3836 = vmatmul.mubr.bf16.vlgmr.msra.gmra.mxu0 %v3581_v60  ;;  %3949 = vmatmul.mubr.bf16.vlgmr.msra.gmra.mxu1 %v3581_v60  ;;  %v3567_v15 = vadd.f32 %v3551_v43, %v11102_v8  ;;  %v8758_v43 = vld [vmem:[%s12496_s8 + $0xac] ss:$28 sps:$4 sm:$0xff]  }
 0x2be   : > { %v9059_v0 = vpop.eup %9058  ;;  %v3448_v7 = vpop.f32.mrf.mxu1  ;;  %3845 = vmatprep.mubr.bf16.mxu0 %v12559_v30  ;;  %3958 = vmatprep.mubr.bf16.mxu1 %v12559_v30  ;;  %v3348_v14 = vadd.f32 %v11139_v13, %v11054_v50  ;;  %v3350_v13 = vadd.f32 %v11154_v28, %v11057_v48 }
 0x2bf   : > { %v3531_v59 = vmul.f32 1.442695, %v3508_v23  ;;  %7316 = vst.msk [vmem:[%s11069_s30 + $0x40] sm:$0xff] %vm7307_vm1, %v11200_v52  ;;  %v3449_v29 = vadd.f32 %v3448_v7, %v3336_v6  ;;  %v3552_v46 = vmul.f32 %v9059_v0, %v3488_v63  ;;  %5571 = vmatpush1.bf16.msra.mxu0 %v8732_v57  ;;  %5684 = vmatpush1.bf16.msra.mxu1 %v8735_v2  ;;  %v8750_v57 = vld [vmem:[%s12496_s8 + $0xe0] ss:$28 sps:$4 sm:$0xff]   ;;  %v3491_v23 = vld [vmem:[%s11130_s19 + $0x30] sm:$0xff] }
 0x2c0   : > { %v3450_v42 = vpop.f32.mrf.mxu1  ;;  %5572 = vmatprep.subr.bf16.mxu0 %v8740_v62  ;;  %5685 = vmatprep.subr.bf16.mxu1 %v8743_v35  ;;  %v8753_v2 = vld [vmem:[%s12496_s8 + $0x460] ss:$28 sps:$4 sm:$0xff]   ;;  %v8761_v62 = vld [vmem:[%s12496_s8 + $0x42c] ss:$28 sps:$4 sm:$0xff]   ;;  %v3363_v35 = vpop.f32.mrf.mxu0 }
 0x2c1   : > { %9066 = vpow2.f32 %v3531_v59  ;;  %v3509_v44 = vmul.f32 0.5, %v3449_v29  ;;  %7332 = vst.msk [vmem:[%s11080_s16 + $0x40] sm:$0xff] %vm7307_vm1, %v3449_v29  ;;  %v11228_v33 = vadd.f32 %v3450_v42, %v3338_v11  ;;  %v3568_v8 = vadd.f32 %v3552_v46, %v11113_v1  ;;  %v8747_v1 = vld [vmem:[%s12496_s8 + $0x498] ss:$28 sps:$4 sm:$0xff]  }
 0x2c2   : > { %v9061_v17 = vpop.eup %9060  ;;  %v3452_v49 = vpop.f32.mrf.mxu1  ;;  %v3354_v11 = vadd.f32 %v11168_v56, %v11054_v50  ;;  %v8764_v42 = vld [vmem:[%s12496_s8 + $0x74] ss:$28 sps:$4 sm:$0xff]  }
 0x2c3   : > { %v3533_v58 = vmul.f32 1.442695, %v3509_v44  ;;  %7317 = vst.msk [vmem:[%s11069_s30 + $0x48] sm:$0xff] %vm7307_vm1, %v11228_v33  ;;  %v3453_v19 = vadd.f32 %v3452_v49, %v3340_v53  ;;  %v3582_v3 = vpack.c.bf16 %v3568_v8, %v3567_v15  ;;  %5573 = vmatpush1.bf16.msra.mxu0 %v8738_v26  ;;  %5686 = vmatpush1.bf16.msra.mxu1 %v8741_v10  ;;  %v8756_v26 = vld [vmem:[%s12496_s8 + $0xa8] ss:$28 sps:$4 sm:$0xff]   ;;  %v3492_v53 = vld [vmem:[%s11130_s19 + $0x38] sm:$0xff] }
 0x2c4   : > { %v3456_v4 = vpop.f32.mrf.mxu1  ;;  %v3553_v47 = vmul.f32 %v9061_v17, %v3489_v34  ;;  %5574 = vmatprep.subr.bf16.mxu0 %v8746_v40  ;;  %5687 = vmatprep.subr.bf16.mxu1 %v8749_v12  ;;  %v8767_v15 = vld [vmem:[%s12496_s8 + $0x3f4] ss:$28 sps:$4 sm:$0xff]   ;;  %v3356_v40 = vadd.f32 %v11196_v18, %v11057_v48  ;;  %v3365_v12 = vpop.f32.mrf.mxu0  ;;  %v3358_v49 = vadd.f32 %v11224_v37, %v11054_v50 }
 0x2c5   : > { %9068 = vpow2.f32 %v3533_v58  ;;  %v3510_v55 = vmul.f32 0.5, %v3453_v19  ;;  %7333 = vst.msk [vmem:[%s11080_s16 + $0x48] sm:$0xff] %vm7307_vm1, %v3453_v19  ;;  %v11256_v16 = vadd.f32 %v3456_v4, %v3344_v5  ;;  %3846 = vmatmul.mubr.bf16.gmra.mxu0 %v3582_v3  ;;  %3959 = vmatmul.mubr.bf16.gmra.mxu1 %v3582_v3  ;;  %v8762_v19 = vld [vmem:[%s12496_s8 + $0x70] ss:$28 sps:$4 sm:$0xff]   ;;  %v3360_v37 = vadd.f32 %v11252_v21, %v11057_v48  ;;  %v8770_v4 = vld [vmem:[%s12496_s8 + $0x3c] ss:$28 sps:$4 sm:$0xff]  }
 0x2c6   : > { %v9063_v24 = vpop.eup %9062  ;;  %v3458_v51 = vpop.f32.mrf.mxu1  ;;  %3855 = vmatprep.mubr.bf16.mxu0 %v12559_v30  ;;  %3968 = vmatprep.mubr.bf16.mxu1 %v12559_v30  ;;  %v3569_v63 = vadd.f32 %v3553_v47, %v11124_v27  ;;  %v8765_v3 = vld [vmem:[%s12496_s8 + $0x3f0] ss:$28 sps:$4 sm:$0xff]  }
 0x2c7   : > { %v3535_v20 = vmul.f32 1.442695, %v3510_v55  ;;  %7318 = vst.msk [vmem:[%s11069_s30 + $0x50] sm:$0xff] %vm7307_vm1, %v11256_v16  ;;  %v3459_v22 = vadd.f32 %v3458_v51, %v3346_v38  ;;  %v3554_v60 = vmul.f32 %v9063_v24, %v3490_v31  ;;  %5575 = vmatpush1.bf16.msra.mxu0 %v8744_v9  ;;  %5688 = vmatpush1.bf16.msra.mxu1 %v8747_v1  ;;  %v8773_v31 = vld [vmem:[%s12496_s8 + $0x3bc] ss:$28 sps:$4 sm:$0xff]   ;;  %v3367_v47 = vpop.f32.mrf.mxu0  ;;  %v3493_v38 = vld [vmem:[%s11130_s19 + $0x40] sm:$0xff] }
 0x2c8   : > { %v3460_v41 = vpop.f32.mrf.mxu1  ;;  %5576 = vmatprep.subr.bf16.mxu0 %v8752_v32  ;;  %5689 = vmatprep.subr.bf16.mxu1 %v8755_v54  ;;  %v3364_v24 = vadd.f32 %v3363_v35, %v11054_v50 }
 0x2c9   : > { %9070 = vpow2.f32 %v3535_v20  ;;  %v3511_v6 = vmul.f32 0.5, %v3459_v22  ;;  %7334 = vst.msk [vmem:[%s11080_s16 + $0x50] sm:$0xff] %vm7307_vm1, %v3459_v22  ;;  %v11282_v28 = vadd.f32 %v3460_v41, %v3348_v14  ;;  %v3570_v27 = vadd.f32 %v3554_v60, %v11144_v61  ;;  %v8759_v61 = vld [vmem:[%s12496_s8 + $0x428] ss:$28 sps:$4 sm:$0xff]   ;;  %v8768_v22 = vld [vmem:[%s12496_s8 + $0x38] ss:$28 sps:$4 sm:$0xff]  }
 0x2ca   : > { %v9065_v0 = vpop.eup %9064  ;;  %v3462_v7 = vpop.f32.mrf.mxu1  ;;  %v8779_v41 = vld [vmem:[%s12496_s8 + $0x384] ss:$28 sps:$4 sm:$0xff]  }
 0x2cb   : > { %v3537_v59 = vmul.f32 1.442695, %v3511_v6  ;;  %7319 = vst.msk [vmem:[%s11069_s30 + $0x58] sm:$0xff] %vm7307_vm1, %v11282_v28  ;;  %v3463_v29 = vadd.f32 %v3462_v7, %v3350_v13  ;;  %v3583_v46 = vpack.c.bf16 %v3570_v27, %v3569_v63  ;;  %5577 = vmatpush1.bf16.msra.mxu0 %v8750_v57  ;;  %5690 = vmatpush1.bf16.msra.mxu1 %v8753_v2  ;;  %v3494_v57 = vld [vmem:[%s11130_s19 + $0x48] sm:$0xff]  ;;  %v8776_v13 = vld [vmem:[%s12496_s8 + $0x4] ss:$28 sps:$4 sm:$0xff]  }
 0x2cc   : > { %v3466_v10 = vpop.f32.mrf.mxu1  ;;  %v3555_v56 = vmul.f32 %v9065_v0, %v3491_v23  ;;  %5578 = vmatprep.subr.bf16.mxu0 %v8758_v43  ;;  %5691 = vmatprep.subr.bf16.mxu1 %v8761_v62  ;;  %v3366_v63 = vadd.f32 %v3365_v12, %v11057_v48  ;;  %v3369_v43 = vpop.f32.mrf.mxu0  ;;  %v3368_v23 = vadd.f32 %v3367_v47, %v11054_v50 }
 0x2cd   : > { %9072 = vpow2.f32 %v3537_v59  ;;  %v3512_v44 = vmul.f32 0.5, %v3463_v29  ;;  %7335 = vst.msk [vmem:[%s11080_s16 + $0x58] sm:$0xff] %vm7307_vm1, %v3463_v29  ;;  %v11308_v8 = vadd.f32 %v3466_v10, %v3354_v11  ;;  %3856 = vmatmul.mubr.bf16.gmra.mxu0 %v3583_v46  ;;  %3969 = vmatmul.mubr.bf16.gmra.mxu1 %v3583_v46  ;;  %v8774_v59 = vld [vmem:[%s12496_s8] ss:$28 sps:$4 sm:$0xff]   ;;  %v3370_v50 = vadd.f32 %v3369_v43, %v11057_v48  ;;  %v8785_v10 = vld [vmem:[%s12496_s8 + $0x6cc] ss:$28 sps:$4 sm:$0xff]  }
 0x2ce   : > { %v9067_v34 = vpop.eup %9066  ;;  %v3468_v17 = vpop.f32.mrf.mxu1  ;;  %3865 = vmatprep.mubr.bf16.mxu0 %v12559_v30  ;;  %3978 = vmatprep.mubr.bf16.mxu1 %v12559_v30  ;;  %v3571_v1 = vadd.f32 %v3555_v56, %v11158_v36  ;;  %v8777_v29 = vld [vmem:[%s12496_s8 + $0x380] ss:$28 sps:$4 sm:$0xff]   ;;  %v3499_v43 = vld [vmem:[%s11130_s19 + $0x70] sm:$0xff] }
 0x2cf   : > { %v3539_v5 = vmul.f32 1.442695, %v3512_v44  ;;  %7320 = vst.msk [vmem:[%s11069_s30 + $0x60] sm:$0xff] %vm7307_vm1, %v11308_v8  ;;  %v3469_v18 = vadd.f32 %v3468_v17, %v3356_v40  ;;  %v3556_v58 = vmul.f32 %v9067_v34, %v3492_v53  ;;  %5579 = vmatpush1.bf16.msra.mxu0 %v8756_v26  ;;  %5692 = vmatpush1.bf16.msra.mxu1 %v8759_v61  ;;  %v8782_v61 = vld [vmem:[%s12496_s8 + $0x34c] ss:$28 sps:$4 sm:$0xff]   ;;  %v3496_v17 = vld [vmem:[%s11130_s19 + $0x58] sm:$0xff] }
 0x2d0   : > { %v3470_v9 = vpop.f32.mrf.mxu1  ;;  %5580 = vmatprep.subr.bf16.mxu0 %v8764_v42  ;;  %5693 = vmatprep.subr.bf16.mxu1 %v8767_v15  ;;  %v3495_v15 = vld [vmem:[%s11130_s19 + $0x50] sm:$0xff]  ;;  %v8780_v34 = vld [vmem:[%s12496_s8 + $0x348] ss:$28 sps:$4 sm:$0xff]  }
 0x2d1   : > { %9074 = vpow2.f32 %v3539_v5  ;;  %v3513_v32 = vmul.f32 0.5, %v3469_v18  ;;  %7336 = vst.msk [vmem:[%s11080_s16 + $0x60] sm:$0xff] %vm7307_vm1, %v3469_v18  ;;  %v11334_v54 = vadd.f32 %v3470_v9, %v3358_v49  ;;  %v3572_v36 = vadd.f32 %v3556_v58, %v11172_v25  ;;  %v8771_v25 = vld [vmem:[%s12496_s8 + $0x3b8] ss:$28 sps:$4 sm:$0xff]   ;;  %v8786_v9 = vld [vmem:[%s12496_s8 + $0x310] ss:$28 sps:$4 sm:$0xff]  }
 0x2d2   : > { %v9069_v21 = vpop.eup %9068  ;;  %v3472_v55 = vpop.f32.mrf.mxu1  ;;  %v8788_v49 = vld [vmem:[%s12496_s8 + $0x314] ss:$28 sps:$4 sm:$0xff]  }
 0x2d3   : > { %v3541_v51 = vmul.f32 1.442695, %v3513_v32  ;;  %7321 = vst.msk [vmem:[%s11069_s30 + $0x68] sm:$0xff] %vm7307_vm1, %v11334_v54  ;;  %v3473_v14 = vadd.f32 %v3472_v55, %v3360_v37  ;;  %v3584_v20 = vpack.c.bf16 %v3572_v36, %v3571_v1  ;;  %5581 = vmatpush1.bf16.msra.mxu0 %v8762_v19  ;;  %5694 = vmatpush1.bf16.msra.mxu1 %v8765_v3  ;;  %v8791_v5 = vld [vmem:[%s12496_s8 + $0x694] ss:$28 sps:$4 sm:$0xff]  }
 0x2d4   : > { %v3476_v60 = vpop.f32.mrf.mxu1  ;;  %v3557_v2 = vmul.f32 %v9069_v21, %v3493_v38  ;;  %5582 = vmatprep.subr.bf16.mxu0 %v8770_v4  ;;  %5695 = vmatprep.subr.bf16.mxu1 %v8773_v31  ;;  %v8789_v1 = vld [vmem:[%s12496_s8 + $0x690] ss:$28 sps:$4 sm:$0xff]   ;;  %v8794_v4 = vld [vmem:[%s12496_s8 + $0x2dc] ss:$28 sps:$4 sm:$0xff]   ;;  %v3497_v38 = vld [vmem:[%s11130_s19 + $0x60] sm:$0xff] }
 0x2d5   : > { %9076 = vpow2.f32 %v3541_v51  ;;  %v3514_v62 = vmul.f32 0.5, %v3473_v14  ;;  %7337 = vst.msk [vmem:[%s11080_s16 + $0x68] sm:$0xff] %vm7307_vm1, %v3473_v14  ;;  %v11358_v35 = vadd.f32 %v3476_v60, %v3364_v24  ;;  %3866 = vmatmul.mubr.bf16.gmra.mxu0 %v3584_v20  ;;  %3979 = vmatmul.mubr.bf16.gmra.mxu1 %v3584_v20  ;;  %v8797_v31 = vld [vmem:[%s12496_s8 + $0x65c] ss:$28 sps:$4 sm:$0xff]   ;;  %v3498_v51 = vld [vmem:[%s11130_s19 + $0x68] sm:$0xff] }
 0x2d6   : > { %v9071_v6 = vpop.eup %9070  ;;  %v3478_v27 = vpop.f32.mrf.mxu1  ;;  %3875 = vmatprep.mubr.bf16.mxu0 %v12559_v30  ;;  %3988 = vmatprep.mubr.bf16.mxu1 %v12559_v30  ;;  %v3573_v26 = vadd.f32 %v3557_v2, %v11200_v52  ;;  %v8792_v55 = vld [vmem:[%s12496_s8 + $0x2d8] ss:$28 sps:$4 sm:$0xff]   ;;  %v8801_v60 = vld [vmem:[%s12496_s8 + $0x620] ss:$28 sps:$4 sm:$0xff]   ;;  %v8809_v2 = vld [vmem:[%s12496_s8 + $0x5ec] ss:$28 sps:$4 sm:$0xff]  }
 0x2d7   : > { %v3543_v0 = vmul.f32 1.442695, %v3514_v62  ;;  %7322 = vst.msk [vmem:[%s11069_s30 + $0x70] sm:$0xff] %vm7307_vm1, %v11358_v35  ;;  %v3479_v7 = vadd.f32 %v3478_v27, %v3366_v63  ;;  %v3558_v11 = vmul.f32 %v9071_v6, %v3494_v57  ;;  %5583 = vmatpush1.bf16.msra.mxu0 %v8768_v22  ;;  %5696 = vmatpush1.bf16.msra.mxu1 %v8771_v25  ;;  %v8795_v24 = vld [vmem:[%s12496_s8 + $0x658] ss:$28 sps:$4 sm:$0xff]  }
 0x2d8   : > { %v3480_v46 = vpop.f32.mrf.mxu1  ;;  %5584 = vmatprep.subr.bf16.mxu0 %v8776_v13  ;;  %5697 = vmatprep.subr.bf16.mxu1 %v8779_v41  ;;  %v8798_v25 = vld [vmem:[%s12496_s8 + $0x2a0] ss:$28 sps:$4 sm:$0xff]   ;;  %v8806_v57 = vld [vmem:[%s12496_s8 + $0x26c] ss:$28 sps:$4 sm:$0xff]  }
 0x2d9   : > { %9078 = vpow2.f32 %v3543_v0  ;;  %v3515_v53 = vmul.f32 0.5, %v3479_v7  ;;  %7338 = vst.msk [vmem:[%s11080_s16 + $0x70] sm:$0xff] %vm7307_vm1, %v3479_v7  ;;  %v11382_v48 = vadd.f32 %v3480_v46, %v3368_v23  ;;  %v3574_v56 = vadd.f32 %v3558_v11, %v11228_v33  ;;  %v8783_v33 = vld [vmem:[%s12496_s8 + $0x6c8] ss:$28 sps:$4 sm:$0xff]   ;;  %v3500_v23 = vld [vmem:[%s11130_s19 + $0x78] sm:$0xff] }
 0x2da   : > { %v9073_v52 = vpop.eup %9072  ;;  %v3482_v42 = vpop.f32.mrf.mxu1  ;;  %v8804_v6 = vld [vmem:[%s12496_s8 + $0x268] ss:$28 sps:$4 sm:$0xff]   ;;  %v8818_v46 = vld [vmem:[%s12496_s8 + $0x1fc] ss:$28 sps:$4 sm:$0xff]  }
 0x2db   : > { %v3545_v40 = vmul.f32 1.442695, %v3515_v53  ;;  %7323 = vst.msk [vmem:[%s11069_s30 + $0x78] sm:$0xff] %vm7307_vm1, %v11382_v48  ;;  %v3483_v12 = vadd.f32 %v3482_v42, %v3370_v50  ;;  %v3585_v44 = vpack.c.bf16 %v3574_v56, %v3573_v26  ;;  %5585 = vmatpush1.bf16.msra.mxu0 %v8774_v59  ;;  %5698 = vmatpush1.bf16.msra.mxu1 %v8777_v29  ;;  %v8807_v27 = vld [vmem:[%s12496_s8 + $0x5e8] ss:$28 sps:$4 sm:$0xff]  }
 0x2dc   : > { %5586 = vmatprep.subr.bf16.mxu0 %v8782_v61  ;;  %5699 = vmatprep.subr.bf16.mxu1 %v8785_v10  ;;  %v3559_v58 = vmul.f32 %v9073_v52, %v3495_v15  ;;  %v8812_v29 = vld [vmem:[%s12496_s8 + $0x234] ss:$28 sps:$4 sm:$0xff]   ;;  %v8821_v26 = vld [vmem:[%s12496_s8 + $0x57c] ss:$28 sps:$4 sm:$0xff]   ;;  %v8824_v53 = vld [vmem:[%s12496_s8 + $0x1c4] ss:$28 sps:$4 sm:$0xff]  }
 0x2dd   : > { %9080 = vpow2.f32 %v3545_v40  ;;  %v3516_v18 = vmul.f32 0.5, %v3483_v12  ;;  %7339 = vst.msk [vmem:[%s11080_s16 + $0x78] sm:$0xff] %vm7307_vm1, %v3483_v12  ;;  %3876 = vmatmul.mubr.bf16.gmra.mxu0 %v3585_v44  ;;  %3989 = vmatmul.mubr.bf16.gmra.mxu1 %v3585_v44  ;;  %v8815_v50 = vld [vmem:[%s12496_s8 + $0x5b4] ss:$28 sps:$4 sm:$0xff]   ;;  %v8822_v56 = vld [vmem:[%s12496_s8 + $0x1c0] ss:$28 sps:$4 sm:$0xff]  }
 0x2de   : > { %v9075_v19 = vpop.eup %9074  ;;  %3885 = vmatprep.mubr.bf16.mxu0 %v12559_v30  ;;  %3998 = vmatprep.mubr.bf16.mxu1 %v12559_v30  ;;  %v3575_v47 = vadd.f32 %v3559_v58, %v11256_v16  ;;  %v8800_v16 = vld [vmem:[%s12496_s8 + $0x2a4] ss:$28 sps:$4 sm:$0xff]   ;;  %v8816_v61 = vld [vmem:[%s12496_s8 + $0x1f8] ss:$28 sps:$4 sm:$0xff]  }
 0x2df   : > { %v3547_v3 = vmul.f32 1.442695, %v3516_v18  ;;  %v3560_v37 = vmul.f32 %v9075_v19, %v3496_v17  ;;  %5587 = vmatpush2.bf16.msra.mxu0 %v8780_v34  ;;  %5700 = vmatpush2.bf16.msra.mxu1 %v8783_v33  ;;  %v8819_v10 = vld [vmem:[%s12496_s8 + $0x578] ss:$28 sps:$4 sm:$0xff]   ;;  %v8825_v52 = vld [vmem:[%s12496_s8 + $0x540] ss:$28 sps:$4 sm:$0xff]  }
 0x2e0   : > { %5588 = vmatprep.subr.bf16.mxu0 %v8788_v49  ;;  %5701 = vmatprep.subr.bf16.mxu1 %v8791_v5  ;;  %v8830_v42 = vld [vmem:[%s12496_s8 + $0x194] ss:$28 sps:$4 sm:$0xff]   ;;  %v3621_v40 = vld [vmem:[%s12495_s7] sm:$0xf]  ;;  %v12562_v33 = vld [vmem:[#allocation7_spill] sm:$0xff] }
 0x2e1   : > { %9082 = vpow2.f32 %v3547_v3  ;;  %v3576_v32 = vadd.f32 %v3560_v37, %v11282_v28  ;;  %v8803_v28 = vld [vmem:[%s12496_s8 + $0x624] ss:$28 sps:$4 sm:$0xff]   ;;  %v8833_v15 = vld [vmem:[%s12496_s8 + $0x514] ss:$28 sps:$4 sm:$0xff]   ;;  %v11508_v34 = vrot.slane %v3621_v40, %v12561_v45  ;;  %v11511_v17 = vrot.slane %v3621_v40, %v12562_v33 }
 0x2e2   : > { %v9077_v36 = vpop.eup %9076  ;;  %v11514_v49 = vrot.slane %v3621_v40, %v12560_v39  ;;  %v12563_v5 = vld [vmem:[#allocation6_spill] sm:$0xff] }
 0x2e3   : > { %v3586_v21 = vpack.c.bf16 %v3576_v32, %v3575_v47  ;;  %5589 = vmatpush2.bf16.msra.mxu0 %v8786_v9  ;;  %5702 = vmatpush2.bf16.msra.mxu1 %v8789_v1  ;;  %v3561_v14 = vmul.f32 %v9077_v36, %v3497_v38  ;;  %v11517_v18 = vrot.slane %v3621_v40, %v12563_v5 }
 0x2e4   : > { %5590 = vmatprep.subr.bf16.mxu0 %v8794_v4  ;;  %5703 = vmatprep.subr.bf16.mxu1 %v8797_v31 }
 0x2e5   : > { %3886 = vmatmul.mubr.bf16.gmra.mxu0 %v3586_v21  ;;  %3999 = vmatmul.mubr.bf16.gmra.mxu1 %v3586_v21  ;;  %v3577_v13 = vadd.f32 %v3561_v14, %v11308_v8 }
 0x2e6   : > { %v9079_v20 = vpop.eup %9078  ;;  %3895 = vmatprep.mubr.bf16.mxu0 %v12559_v30  ;;  %4008 = vmatprep.mubr.bf16.mxu1 %v12559_v30 }
 0x2e7   : > { %v3562_v22 = vmul.f32 %v9079_v20, %v3498_v51  ;;  %5591 = vmatpush2.bf16.msra.mxu0 %v8792_v55  ;;  %5704 = vmatpush2.bf16.msra.mxu1 %v8795_v24 }
 0x2e8   : > { %5592 = vmatprep.subr.bf16.mxu0 %v8800_v16  ;;  %5705 = vmatprep.subr.bf16.mxu1 %v8803_v28 }
 0x2e9   : > { %v3578_v41 = vadd.f32 %v3562_v22, %v11334_v54 }
 0x2ea   : > { %v9081_v63 = vpop.eup %9080 }
 0x2eb   : > { %v3587_v62 = vpack.c.bf16 %v3578_v41, %v3577_v13  ;;  %5593 = vmatpush2.bf16.msra.mxu0 %v8798_v25  ;;  %5706 = vmatpush2.bf16.msra.mxu1 %v8801_v60  ;;  %v3563_v8 = vmul.f32 %v9081_v63, %v3499_v43  ;;  %v8828_v43 = vld [vmem:[%s12496_s8 + $0x190] ss:$28 sps:$4 sm:$0xff]  }
 0x2ec   : > { %5594 = vmatprep.subr.bf16.mxu0 %v8806_v57  ;;  %5707 = vmatprep.subr.bf16.mxu1 %v8809_v2 }
 0x2ed   : > { %3896 = vmatmul.mubr.bf16.gmra.mxu0 %v3587_v62  ;;  %4009 = vmatmul.mubr.bf16.gmra.mxu1 %v3587_v62  ;;  %v3579_v7 = vadd.f32 %v3563_v8, %v11358_v35  ;;  %v8813_v35 = vld [vmem:[%s12496_s8 + $0x5b0] ss:$28 sps:$4 sm:$0xff]  }
 0x2ee   : > { %v9083_v54 = vpop.eup %9082  ;;  %3905 = vmatprep.mubr.bf16.mxu0 %v12559_v30  ;;  %4018 = vmatprep.mubr.bf16.mxu1 %v12559_v30  ;;  %v8810_v30 = vld [vmem:[%s12496_s8 + $0x230] ss:$28 sps:$4 sm:$0xff]  }
 0x2ef   : > { %v3564_v0 = vmul.f32 %v9083_v54, %v3500_v23  ;;  %5595 = vmatpush2.bf16.msra.mxu0 %v8804_v6  ;;  %5708 = vmatpush2.bf16.msra.mxu1 %v8807_v27  ;;  %v8831_v62 = vld [vmem:[%s12496_s8 + $0x510] ss:$28 sps:$4 sm:$0xff]  }
 0x2f0   : > { %5596 = vmatprep.subr.bf16.mxu0 %v8812_v29  ;;  %5709 = vmatprep.subr.bf16.mxu1 %v8815_v50 }
 0x2f1   : > { %v3580_v11 = vadd.f32 %v3564_v0, %v11382_v48  ;;  %v8827_v48 = vld [vmem:[%s12496_s8 + $0x544] ss:$28 sps:$4 sm:$0xff]   ;;  %v8836_v0 = vld [vmem:[%s12496_s8 + $0x15c] ss:$28 sps:$4 sm:$0xff]  }
 0x2f3   : > { %v3588_v59 = vpack.c.bf16 %v3580_v11, %v3579_v7  ;;  %5597 = vmatpush2.bf16.msra.mxu0 %v8810_v30  ;;  %5710 = vmatpush2.bf16.msra.mxu1 %v8813_v35  ;;  %v8839_v7 = vld [vmem:[%s12496_s8 + $0x4dc] ss:$28 sps:$4 sm:$0xff]  }
 0x2f4   : > { %5598 = vmatprep.subr.bf16.mxu0 %v8818_v46  ;;  %5711 = vmatprep.subr.bf16.mxu1 %v8821_v26 }
 0x2f5   : > { %3906 = vmatmul.mubr.bf16.gmra.mxu0 %v3588_v59  ;;  %4019 = vmatmul.mubr.bf16.gmra.mxu1 %v3588_v59 }
 0x2f7   : > { %5599 = vmatpush2.bf16.msra.mxu0 %v8816_v61  ;;  %5712 = vmatpush2.bf16.msra.mxu1 %v8819_v10  ;;  %v8834_v10 = vld [vmem:[%s12496_s8 + $0x158] ss:$28 sps:$4 sm:$0xff]  }
 0x2f8   : > { %5600 = vmatprep.subr.bf16.mxu0 %v8824_v53  ;;  %5713 = vmatprep.subr.bf16.mxu1 %v8827_v48 }
 0x2fb   : > { %5601 = vmatpush2.bf16.msra.mxu0 %v8822_v56  ;;  %5714 = vmatpush2.bf16.msra.mxu1 %v8825_v52 }
 0x2fc   : > { %5796 = vmatprep.subr.bf16.mxu0 %v8830_v42  ;;  %5909 = vmatprep.subr.bf16.mxu1 %v8833_v15  ;;  %v8837_v42 = vld [vmem:[%s12496_s8 + $0x4d8] ss:$28 sps:$4 sm:$0xff]   ;;  %v8842_v15 = vld [vmem:[%s12496_s8 + $0x124] ss:$28 sps:$4 sm:$0xff]  }
 0x37d   : > { %v3837_v12 = vpop.f32.mrf.mxu0  ;;  %v3950_v44 = vpop.f32.mrf.mxu1 }
 0x37e   : > { %v3838_v47 = vadd.f32 %v3837_v12, %v11514_v49  ;;  %v3951_v32 = vadd.f32 %v3950_v44, %v11517_v18 }
 0x37f   : > { %v3839_v58 = vpop.f32.mrf.mxu0  ;;  %v3952_v19 = vpop.f32.mrf.mxu1 }
 0x380   : > { %v3840_v9 = vadd.f32 %v3839_v58, %v11508_v34  ;;  %v3953_v1 = vadd.f32 %v3952_v19, %v11511_v17  ;;  %v4029_v60 = vmax.f32 %v3838_v47, 0.0  ;;  %v4031_v57 = vmax.f32 %v3951_v32, 0.0  ;;  %v8845_v47 = vld [vmem:[%s12496_s8 + $0x4a4] ss:$28 sps:$4 sm:$0xff]  }
 0x381   : > { %v3841_v3 = vpop.f32.mrf.mxu0  ;;  %v3954_v37 = vpop.f32.mrf.mxu1 }
 0x382   : > { %v3842_v4 = vadd.f32 %v3841_v3, %v11514_v49  ;;  %v3955_v31 = vadd.f32 %v3954_v37, %v11517_v18  ;;  %v4030_v14 = vmax.f32 %v3840_v9, 0.0  ;;  %v4032_v20 = vmax.f32 %v3953_v1, 0.0 }
 0x383   : > { %v3843_v36 = vpop.f32.mrf.mxu0  ;;  %v3956_v38 = vpop.f32.mrf.mxu1 }
 0x384   : > { %v3844_v21 = vadd.f32 %v3843_v36, %v11508_v34  ;;  %v3957_v55 = vadd.f32 %v3956_v38, %v11511_v17  ;;  %v4033_v24 = vmax.f32 %v3842_v4, 0.0  ;;  %v4035_v51 = vmax.f32 %v3955_v31, 0.0  ;;  %v8840_v31 = vld [vmem:[%s12496_s8 + $0x120] ss:$28 sps:$4 sm:$0xff]  }
 0x385   : > { %v3847_v16 = vpop.f32.mrf.mxu0  ;;  %v3960_v28 = vpop.f32.mrf.mxu1 }
 0x386   : > { %v4034_v22 = vmax.f32 %v3844_v21, 0.0  ;;  %v4036_v25 = vmax.f32 %v3957_v55, 0.0  ;;  %v11537_v6 = vpack.c.bf16 %v4033_v24, %v4029_v60  ;;  %v11539_v27 = vpack.c.bf16 %v4035_v51, %v4031_v57  ;;  %v8843_v24 = vld [vmem:[%s12496_s8 + $0x4a0] ss:$28 sps:$4 sm:$0xff]   ;;  %v8848_v51 = vld [vmem:[%s12496_s8 + $0xec] ss:$28 sps:$4 sm:$0xff]  }
 0x387   : > { %v3849_v2 = vpop.f32.mrf.mxu0  ;;  %v3962_v13 = vpop.f32.mrf.mxu1  ;;  %v3848_v50 = vadd.f32 %v3847_v16, %v11514_v49  ;;  %v3961_v30 = vadd.f32 %v3960_v28, %v11517_v18 }
 0x388   : > { %v11527_v41 = vpack.c.bf16 %v4034_v22, %v4030_v14  ;;  %v11529_v63 = vpack.c.bf16 %v4036_v25, %v4032_v20  ;;  %v3850_v23 = vadd.f32 %v3849_v2, %v11508_v34  ;;  %v3963_v11 = vadd.f32 %v3962_v13, %v11511_v17  ;;  %v8851_v20 = vld [vmem:[%s12496_s8 + $0x46c] ss:$28 sps:$4 sm:$0xff]  }
 0x389   : > { %v3851_v8 = vpop.f32.mrf.mxu0  ;;  %v3964_v54 = vpop.f32.mrf.mxu1  ;;  %v4037_v19 = vmax.f32 %v3848_v50, 0.0  ;;  %v4039_v3 = vmax.f32 %v3961_v30, 0.0 }
 0x38a   : > { %v3852_v59 = vadd.f32 %v3851_v8, %v11514_v49  ;;  %v3965_v29 = vadd.f32 %v3964_v54, %v11517_v18  ;;  %5602 = vmatprep.mubr.bf16.mxu0 %v11527_v41  ;;  %5715 = vmatprep.mubr.bf16.mxu1 %v11529_v63  ;;  %v4038_v40 = vmax.f32 %v3850_v23, 0.0  ;;  %v4040_v12 = vmax.f32 %v3963_v11, 0.0 }
 0x38b   : > { %v3853_v35 = vpop.f32.mrf.mxu0  ;;  %v3966_v46 = vpop.f32.mrf.mxu1  ;;  %5603 = vmatmul.mubr.bf16.vlgmr.msra.gmra.mxu0 %v11537_v6  ;;  %5716 = vmatmul.mubr.bf16.vlgmr.msra.gmra.mxu1 %v11539_v27 }
 0x38c   : > { %v3854_v26 = vadd.f32 %v3853_v35, %v11508_v34  ;;  %v3967_v61 = vadd.f32 %v3966_v46, %v11511_v17  ;;  %5797 = vmatpush1.bf16.msra.mxu0 %v8828_v43  ;;  %5910 = vmatpush1.bf16.msra.mxu1 %v8831_v62  ;;  %v4041_v53 = vmax.f32 %v3852_v59, 0.0  ;;  %v4043_v48 = vmax.f32 %v3965_v29, 0.0  ;;  %v8846_v43 = vld [vmem:[%s12496_s8 + $0xe8] ss:$28 sps:$4 sm:$0xff]  }
 0x38d   : > { %v3857_v56 = vpop.f32.mrf.mxu0  ;;  %v3970_v52 = vpop.f32.mrf.mxu1  ;;  %5798 = vmatprep.subr.bf16.mxu0 %v8836_v0  ;;  %5911 = vmatprep.subr.bf16.mxu1 %v8839_v7  ;;  %v8849_v0 = vld [vmem:[%s12496_s8 + $0x468] ss:$28 sps:$4 sm:$0xff]   ;;  %v8854_v7 = vld [vmem:[%s12496_s8 + $0xb4] ss:$28 sps:$4 sm:$0xff]  }
 0x38e   : > { %v4042_v44 = vmax.f32 %v3854_v26, 0.0  ;;  %v4044_v58 = vmax.f32 %v3967_v61, 0.0  ;;  %v11578_v32 = vpack.c.bf16 %v4041_v53, %v4037_v19  ;;  %v11580_v36 = vpack.c.bf16 %v4043_v48, %v4039_v3  ;;  %v8852_v53 = vld [vmem:[%s12496_s8 + $0xb0] ss:$28 sps:$4 sm:$0xff]  }
 0x38f   : > { %v3859_v37 = vpop.f32.mrf.mxu0  ;;  %v3972_v9 = vpop.f32.mrf.mxu1  ;;  %v3858_v22 = vadd.f32 %v3857_v56, %v11514_v49  ;;  %v3971_v25 = vadd.f32 %v3970_v52, %v11517_v18  ;;  %v8857_v48 = vld [vmem:[%s12496_s8 + $0x434] ss:$28 sps:$4 sm:$0xff]  }
 0x390   : > { %v11568_v1 = vpack.c.bf16 %v4042_v44, %v4038_v40  ;;  %v11570_v4 = vpack.c.bf16 %v4044_v58, %v4040_v12  ;;  %5799 = vmatpush1.bf16.msra.mxu0 %v8834_v10  ;;  %v3860_v38 = vadd.f32 %v3859_v37, %v11508_v34  ;;  %5912 = vmatpush1.bf16.msra.mxu1 %v8837_v42  ;;  %v8855_v12 = vld [vmem:[%s12496_s8 + $0x430] ss:$28 sps:$4 sm:$0xff]   ;;  %v8860_v44 = vld [vmem:[%s12496_s8 + $0x7c] ss:$28 sps:$4 sm:$0xff]  }
 0x391   : > { %v3861_v21 = vpop.f32.mrf.mxu0  ;;  %v3974_v55 = vpop.f32.mrf.mxu1  ;;  %5800 = vmatprep.subr.bf16.mxu0 %v8842_v15  ;;  %v3973_v16 = vadd.f32 %v3972_v9, %v11511_v17  ;;  %5913 = vmatprep.subr.bf16.mxu1 %v8845_v47  ;;  %v4045_v30 = vmax.f32 %v3858_v22, 0.0  ;;  %v4047_v35 = vmax.f32 %v3971_v25, 0.0  ;;  %v8863_v37 = vld [vmem:[%s12496_s8 + $0x3fc] ss:$28 sps:$4 sm:$0xff]   ;;  %v8866_v22 = vld [vmem:[%s12496_s8 + $0x44] ss:$28 sps:$4 sm:$0xff]  }
 0x392   : > { %v3862_v28 = vadd.f32 %v3861_v21, %v11514_v49  ;;  %v3975_v14 = vadd.f32 %v3974_v55, %v11517_v18  ;;  %5612 = vmatprep.mubr.bf16.mxu0 %v11568_v1  ;;  %5725 = vmatprep.mubr.bf16.mxu1 %v11570_v4  ;;  %v4046_v11 = vmax.f32 %v3860_v38, 0.0 }
 0x393   : > { %v3863_v60 = vpop.f32.mrf.mxu0  ;;  %v3976_v57 = vpop.f32.mrf.mxu1  ;;  %5613 = vmatmul.mubr.bf16.gmra.mxu0 %v11578_v32  ;;  %5726 = vmatmul.mubr.bf16.gmra.mxu1 %v11580_v36  ;;  %v4048_v59 = vmax.f32 %v3973_v16, 0.0 }
 0x394   : > { %v3864_v2 = vadd.f32 %v3863_v60, %v11508_v34  ;;  %v3977_v13 = vadd.f32 %v3976_v57, %v11511_v17  ;;  %5801 = vmatpush1.bf16.msra.mxu0 %v8840_v31  ;;  %v4049_v62 = vmax.f32 %v3862_v28, 0.0  ;;  %v4051_v23 = vmax.f32 %v3975_v14, 0.0  ;;  %5914 = vmatpush1.bf16.msra.mxu1 %v8843_v24  ;;  %v8858_v24 = vld [vmem:[%s12496_s8 + $0x78] ss:$28 sps:$4 sm:$0xff]  }
 0x395   : > { %v3867_v8 = vpop.f32.mrf.mxu0  ;;  %v3980_v54 = vpop.f32.mrf.mxu1  ;;  %5802 = vmatprep.subr.bf16.mxu0 %v8848_v51  ;;  %5915 = vmatprep.subr.bf16.mxu1 %v8851_v20  ;;  %v8861_v20 = vld [vmem:[%s12496_s8 + $0x3f8] ss:$28 sps:$4 sm:$0xff]  }
 0x396   : > { %v4050_v29 = vmax.f32 %v3864_v2, 0.0  ;;  %v4052_v50 = vmax.f32 %v3977_v13, 0.0  ;;  %v11622_v56 = vpack.c.bf16 %v4049_v62, %v4045_v30  ;;  %v11624_v52 = vpack.c.bf16 %v4051_v23, %v4047_v35  ;;  %v8867_v35 = vld [vmem:[%s12496_s8 + $0x3c0] ss:$28 sps:$4 sm:$0xff]  }
 0x397   : > { %v3869_v46 = vpop.f32.mrf.mxu0  ;;  %v3982_v26 = vpop.f32.mrf.mxu1  ;;  %v3868_v9 = vadd.f32 %v3867_v8, %v11514_v49  ;;  %v3981_v31 = vadd.f32 %v3980_v54, %v11517_v18 }
 0x398   : > { %v11612_v61 = vpack.c.bf16 %v4050_v29, %v4046_v11  ;;  %v11614_v10 = vpack.c.bf16 %v4052_v50, %v4048_v59  ;;  %5803 = vmatpush1.bf16.msra.mxu0 %v8846_v43  ;;  %v3870_v42 = vadd.f32 %v3869_v46, %v11508_v34  ;;  %5916 = vmatpush1.bf16.msra.mxu1 %v8849_v0  ;;  %v8864_v0 = vld [vmem:[%s12496_s8 + $0x40] ss:$28 sps:$4 sm:$0xff]   ;;  %v8872_v46 = vld [vmem:[%s12496_s8 + $0xc] ss:$28 sps:$4 sm:$0xff]  }
 0x399   : > { %v3871_v15 = vpop.f32.mrf.mxu0  ;;  %v3984_v40 = vpop.f32.mrf.mxu1  ;;  %5804 = vmatprep.subr.bf16.mxu0 %v8854_v7  ;;  %v3983_v58 = vadd.f32 %v3982_v26, %v11511_v17  ;;  %5917 = vmatprep.subr.bf16.mxu1 %v8857_v48  ;;  %v4053_v13 = vmax.f32 %v3868_v9, 0.0  ;;  %v4055_v43 = vmax.f32 %v3981_v31, 0.0  ;;  %v8869_v7 = vld [vmem:[%s12496_s8 + $0x3c4] ss:$28 sps:$4 sm:$0xff]  }
 0x39a   : > { %v3872_v19 = vadd.f32 %v3871_v15, %v11514_v49  ;;  %v3985_v3 = vadd.f32 %v3984_v40, %v11517_v18  ;;  %5622 = vmatprep.mubr.bf16.mxu0 %v11612_v61  ;;  %5735 = vmatprep.mubr.bf16.mxu1 %v11614_v10  ;;  %v4054_v25 = vmax.f32 %v3870_v42, 0.0  ;;  %v8875_v42 = vld [vmem:[%s12496_s8 + $0x38c] ss:$28 sps:$4 sm:$0xff]  }
 0x39b   : > { %v3873_v47 = vpop.f32.mrf.mxu0  ;;  %v3986_v38 = vpop.f32.mrf.mxu1  ;;  %5623 = vmatmul.mubr.bf16.gmra.mxu0 %v11622_v56  ;;  %5736 = vmatmul.mubr.bf16.gmra.mxu1 %v11624_v52  ;;  %v4056_v60 = vmax.f32 %v3983_v58, 0.0 }
 0x39c   : > { %v3874_v21 = vadd.f32 %v3873_v47, %v11508_v34  ;;  %v3987_v55 = vadd.f32 %v3986_v38, %v11511_v17  ;;  %5805 = vmatpush1.bf16.msra.mxu0 %v8852_v53  ;;  %v4057_v51 = vmax.f32 %v3872_v19, 0.0  ;;  %v4059_v16 = vmax.f32 %v3985_v3, 0.0  ;;  %5918 = vmatpush1.bf16.msra.mxu1 %v8855_v12  ;;  %v8870_v3 = vld [vmem:[%s12496_s8 + $0x8] ss:$28 sps:$4 sm:$0xff]  }
 0x39d   : > { %v3877_v28 = vpop.f32.mrf.mxu0  ;;  %v3990_v14 = vpop.f32.mrf.mxu1  ;;  %5806 = vmatprep.subr.bf16.mxu0 %v8860_v44  ;;  %5919 = vmatprep.subr.bf16.mxu1 %v8863_v37  ;;  %v8873_v38 = vld [vmem:[%s12496_s8 + $0x388] ss:$28 sps:$4 sm:$0xff]  }
 0x39e   : > { %v4058_v57 = vmax.f32 %v3874_v21, 0.0  ;;  %v4060_v2 = vmax.f32 %v3987_v55, 0.0  ;;  %v11666_v11 = vpack.c.bf16 %v4057_v51, %v4053_v13  ;;  %v11668_v59 = vpack.c.bf16 %v4059_v16, %v4055_v43  ;;  %v8878_v21 = vld [vmem:[%s12496_s8 + $0x354] ss:$28 sps:$4 sm:$0xff]  }
 0x39f   : > { %v3879_v62 = vpop.f32.mrf.mxu0  ;;  %v3992_v23 = vpop.f32.mrf.mxu1  ;;  %v3878_v15 = vadd.f32 %v3877_v28, %v11514_v49  ;;  %v3991_v40 = vadd.f32 %v3990_v14, %v11517_v18 }
 0x3a0   : > { %v11656_v8 = vpack.c.bf16 %v4058_v57, %v4054_v25  ;;  %v11658_v54 = vpack.c.bf16 %v4060_v2, %v4056_v60  ;;  %5807 = vmatpush1.bf16.msra.mxu0 %v8858_v24  ;;  %v3880_v29 = vadd.f32 %v3879_v62, %v11508_v34  ;;  %5920 = vmatpush1.bf16.msra.mxu1 %v8861_v20  ;;  %v8876_v57 = vld [vmem:[%s12496_s8 + $0x350] ss:$28 sps:$4 sm:$0xff]  }
 0x3a1   : > { %v3881_v50 = vpop.f32.mrf.mxu0  ;;  %v3994_v30 = vpop.f32.mrf.mxu1  ;;  %5808 = vmatprep.subr.bf16.mxu0 %v8866_v22  ;;  %v3993_v26 = vadd.f32 %v3992_v23, %v11511_v17  ;;  %5921 = vmatprep.subr.bf16.mxu1 %v8869_v7  ;;  %v4061_v28 = vmax.f32 %v3878_v15, 0.0  ;;  %v4063_v14 = vmax.f32 %v3991_v40, 0.0  ;;  %v8881_v2 = vld [vmem:[%s12496_s8 + $0x6d4] ss:$28 sps:$4 sm:$0xff]  }
 0x3a2   : > { %v3882_v53 = vadd.f32 %v3881_v50, %v11514_v49  ;;  %v3995_v48 = vadd.f32 %v3994_v30, %v11517_v18  ;;  %5632 = vmatprep.mubr.bf16.mxu0 %v11656_v8  ;;  %5745 = vmatprep.mubr.bf16.mxu1 %v11658_v54  ;;  %v4062_v55 = vmax.f32 %v3880_v29, 0.0  ;;  %v8879_v7 = vld [vmem:[%s12496_s8 + $0x6d0] ss:$28 sps:$4 sm:$0xff]   ;;  %v8884_v29 = vld [vmem:[%s12496_s8 + $0x31c] ss:$28 sps:$4 sm:$0xff]  }
 0x3a3   : > { %v3883_v12 = vpop.f32.mrf.mxu0  ;;  %v3996_v44 = vpop.f32.mrf.mxu1  ;;  %5633 = vmatmul.mubr.bf16.gmra.mxu0 %v11666_v11  ;;  %5746 = vmatmul.mubr.bf16.gmra.mxu1 %v11668_v59  ;;  %v4064_v24 = vmax.f32 %v3993_v26, 0.0 }
 0x3a4   : > { %v3884_v58 = vadd.f32 %v3883_v12, %v11508_v34  ;;  %v3997_v19 = vadd.f32 %v3996_v44, %v11511_v17  ;;  %5809 = vmatpush1.bf16.msra.mxu0 %v8864_v0  ;;  %v4065_v37 = vmax.f32 %v3882_v53, 0.0  ;;  %v4067_v9 = vmax.f32 %v3995_v48, 0.0  ;;  %5922 = vmatpush1.bf16.msra.mxu1 %v8867_v35  ;;  %v8882_v12 = vld [vmem:[%s12496_s8 + $0x318] ss:$28 sps:$4 sm:$0xff]  }
 0x3a5   : > { %v3887_v31 = vpop.f32.mrf.mxu0  ;;  %v4000_v47 = vpop.f32.mrf.mxu1  ;;  %5810 = vmatprep.subr.bf16.mxu0 %v8872_v46  ;;  %5923 = vmatprep.subr.bf16.mxu1 %v8875_v42  ;;  %v8887_v46 = vld [vmem:[%s12496_s8 + $0x69c] ss:$28 sps:$4 sm:$0xff]  }
 0x3a6   : > { %v4066_v51 = vmax.f32 %v3884_v58, 0.0  ;;  %v4068_v16 = vmax.f32 %v3997_v19, 0.0  ;;  %v11710_v13 = vpack.c.bf16 %v4065_v37, %v4061_v28  ;;  %v11712_v43 = vpack.c.bf16 %v4067_v9, %v4063_v14  ;;  %v8885_v37 = vld [vmem:[%s12496_s8 + $0x698] ss:$28 sps:$4 sm:$0xff]   ;;  %v8890_v9 = vld [vmem:[%s12496_s8 + $0x2e4] ss:$28 sps:$4 sm:$0xff]  }
 0x3a7   : > { %v3889_v20 = vpop.f32.mrf.mxu0  ;;  %v4002_v22 = vpop.f32.mrf.mxu1  ;;  %v3888_v26 = vadd.f32 %v3887_v31, %v11514_v49  ;;  %v4001_v53 = vadd.f32 %v4000_v47, %v11517_v18 }
 0x3a8   : > { %v11700_v25 = vpack.c.bf16 %v4066_v51, %v4062_v55  ;;  %v11702_v60 = vpack.c.bf16 %v4068_v16, %v4064_v24  ;;  %5811 = vmatpush1.bf16.msra.mxu0 %v8870_v3  ;;  %v3890_v62 = vadd.f32 %v3889_v20, %v11508_v34  ;;  %5924 = vmatpush1.bf16.msra.mxu1 %v8873_v38  ;;  %v8888_v20 = vld [vmem:[%s12496_s8 + $0x2e0] ss:$28 sps:$4 sm:$0xff]  }
 0x3a9   : > { %v3891_v23 = vpop.f32.mrf.mxu0  ;;  %v4004_v0 = vpop.f32.mrf.mxu1  ;;  %5812 = vmatprep.subr.bf16.mxu0 %v8878_v21  ;;  %v4003_v50 = vadd.f32 %v4002_v22, %v11511_v17  ;;  %5925 = vmatprep.subr.bf16.mxu1 %v8881_v2  ;;  %v4069_v55 = vmax.f32 %v3888_v26, 0.0  ;;  %v4071_v24 = vmax.f32 %v4001_v53, 0.0  ;;  %v8893_v22 = vld [vmem:[%s12496_s8 + $0x664] ss:$28 sps:$4 sm:$0xff]  }
 0x3aa   : > { %v3892_v30 = vadd.f32 %v3891_v23, %v11514_v49  ;;  %v4005_v35 = vadd.f32 %v4004_v0, %v11517_v18  ;;  %5642 = vmatprep.mubr.bf16.mxu0 %v11700_v25  ;;  %5755 = vmatprep.mubr.bf16.mxu1 %v11702_v60  ;;  %v4070_v31 = vmax.f32 %v3890_v62, 0.0 }
 0x3ab   : > { %v3893_v48 = vpop.f32.mrf.mxu0  ;;  %v4006_v42 = vpop.f32.mrf.mxu1  ;;  %5643 = vmatmul.mubr.bf16.gmra.mxu0 %v11710_v13  ;;  %5756 = vmatmul.mubr.bf16.gmra.mxu1 %v11712_v43  ;;  %v4072_v47 = vmax.f32 %v4003_v50, 0.0 }
 0x3ac   : > { %v3894_v15 = vadd.f32 %v3893_v48, %v11508_v34  ;;  %v4007_v40 = vadd.f32 %v4006_v42, %v11511_v17  ;;  %5813 = vmatpush2.bf16.msra.mxu0 %v8876_v57  ;;  %v4073_v44 = vmax.f32 %v3892_v30, 0.0  ;;  %v4075_v58 = vmax.f32 %v4005_v35, 0.0  ;;  %5926 = vmatpush2.bf16.msra.mxu1 %v8879_v7  ;;  %v8891_v7 = vld [vmem:[%s12496_s8 + $0x660] ss:$28 sps:$4 sm:$0xff]  }
 0x3ad   : > { %v3897_v19 = vpop.f32.mrf.mxu0  ;;  %v4010_v3 = vpop.f32.mrf.mxu1  ;;  %5814 = vmatprep.subr.bf16.mxu0 %v8884_v29  ;;  %5927 = vmatprep.subr.bf16.mxu1 %v8887_v46  ;;  %v8896_v29 = vld [vmem:[%s12496_s8 + $0x2ac] ss:$28 sps:$4 sm:$0xff]  }
 0x3ae   : > { %v4074_v38 = vmax.f32 %v3894_v15, 0.0  ;;  %v4076_v21 = vmax.f32 %v4007_v40, 0.0  ;;  %v11754_v57 = vpack.c.bf16 %v4073_v44, %v4069_v55  ;;  %v11756_v2 = vpack.c.bf16 %v4075_v58, %v4071_v24  ;;  %v8899_v46 = vld [vmem:[%s12496_s8 + $0x62c] ss:$28 sps:$4 sm:$0xff]  }
 0x3af   : > { %v3899_v51 = vpop.f32.mrf.mxu0  ;;  %v4012_v16 = vpop.f32.mrf.mxu1  ;;  %v3898_v26 = vadd.f32 %v3897_v19, %v11514_v49  ;;  %v4011_v53 = vadd.f32 %v4010_v3, %v11517_v18 }
 0x3b0   : > { %v11744_v28 = vpack.c.bf16 %v4074_v38, %v4070_v31  ;;  %v11746_v14 = vpack.c.bf16 %v4076_v21, %v4072_v47  ;;  %5815 = vmatpush2.bf16.msra.mxu0 %v8882_v12  ;;  %v3900_v62 = vadd.f32 %v3899_v51, %v11508_v34  ;;  %5928 = vmatpush2.bf16.msra.mxu1 %v8885_v37  ;;  %v8894_v12 = vld [vmem:[%s12496_s8 + $0x2a8] ss:$28 sps:$4 sm:$0xff]  }
 0x3b1   : > { %v3901_v23 = vpop.f32.mrf.mxu0  ;;  %v4014_v0 = vpop.f32.mrf.mxu1  ;;  %5816 = vmatprep.subr.bf16.mxu0 %v8890_v9  ;;  %v4013_v50 = vadd.f32 %v4012_v16, %v11511_v17  ;;  %5929 = vmatprep.subr.bf16.mxu1 %v8893_v22  ;;  %v8897_v37 = vld [vmem:[%s12496_s8 + $0x628] ss:$28 sps:$4 sm:$0xff]   ;;  %v8902_v9 = vld [vmem:[%s12496_s8 + $0x274] ss:$28 sps:$4 sm:$0xff]   ;;  %v4077_v55 = vmax.f32 %v3898_v26, 0.0  ;;  %v4079_v24 = vmax.f32 %v4011_v53, 0.0 }
 0x3b2   : > { %v3902_v30 = vadd.f32 %v3901_v23, %v11514_v49  ;;  %v4015_v35 = vadd.f32 %v4014_v0, %v11517_v18  ;;  %5652 = vmatprep.mubr.bf16.mxu0 %v11744_v28  ;;  %5765 = vmatprep.mubr.bf16.mxu1 %v11746_v14  ;;  %v4078_v31 = vmax.f32 %v3900_v62, 0.0  ;;  %v8900_v23 = vld [vmem:[%s12496_s8 + $0x270] ss:$28 sps:$4 sm:$0xff]  }
 0x3b3   : > { %v3903_v48 = vpop.f32.mrf.mxu0  ;;  %v4016_v42 = vpop.f32.mrf.mxu1  ;;  %5653 = vmatmul.mubr.bf16.gmra.mxu0 %v11754_v57  ;;  %5766 = vmatmul.mubr.bf16.gmra.mxu1 %v11756_v2  ;;  %v4080_v47 = vmax.f32 %v4013_v50, 0.0  ;;  %v8905_v62 = vld [vmem:[%s12496_s8 + $0x5f4] ss:$28 sps:$4 sm:$0xff]  }
 0x3b4   : > { %v3904_v15 = vadd.f32 %v3903_v48, %v11508_v34  ;;  %v4017_v40 = vadd.f32 %v4016_v42, %v11511_v17  ;;  %5817 = vmatpush2.bf16.msra.mxu0 %v8888_v20  ;;  %v4081_v44 = vmax.f32 %v3902_v30, 0.0  ;;  %v4083_v58 = vmax.f32 %v4015_v35, 0.0  ;;  %5930 = vmatpush2.bf16.msra.mxu1 %v8891_v7  ;;  %v8903_v35 = vld [vmem:[%s12496_s8 + $0x5f0] ss:$28 sps:$4 sm:$0xff]   ;;  %v8911_v42 = vld [vmem:[%s12496_s8 + $0x5bc] ss:$28 sps:$4 sm:$0xff]  }
 0x3b5   : > { %v3907_v19 = vpop.f32.mrf.mxu0  ;;  %v4020_v3 = vpop.f32.mrf.mxu1  ;;  %5818 = vmatprep.subr.bf16.mxu0 %v8896_v29  ;;  %5931 = vmatprep.subr.bf16.mxu1 %v8899_v46  ;;  %v8908_v46 = vld [vmem:[%s12496_s8 + $0x23c] ss:$28 sps:$4 sm:$0xff]  }
 0x3b6   : > { %v4082_v38 = vmax.f32 %v3904_v15, 0.0  ;;  %v4084_v21 = vmax.f32 %v4017_v40, 0.0  ;;  %v11798_v0 = vpack.c.bf16 %v4081_v44, %v4077_v55  ;;  %v11800_v7 = vpack.c.bf16 %v4083_v58, %v4079_v24 }
 0x3b7   : > { %v3909_v51 = vpop.f32.mrf.mxu0  ;;  %v4022_v16 = vpop.f32.mrf.mxu1  ;;  %v3908_v15 = vadd.f32 %v3907_v19, %v11514_v49  ;;  %v4021_v40 = vadd.f32 %v4020_v3, %v11517_v18 }
 0x3b8   : > { %v11788_v20 = vpack.c.bf16 %v4082_v38, %v4078_v31  ;;  %v11790_v22 = vpack.c.bf16 %v4084_v21, %v4080_v47  ;;  %5819 = vmatpush2.bf16.msra.mxu0 %v8894_v12  ;;  %v3910_v29 = vadd.f32 %v3909_v51, %v11508_v34  ;;  %5932 = vmatpush2.bf16.msra.mxu1 %v8897_v37  ;;  %v8912_v51 = vld [vmem:[%s12496_s8 + $0x200] ss:$28 sps:$4 sm:$0xff]  }
 0x3b9   : > { %v3911_v50 = vpop.f32.mrf.mxu0  ;;  %v4024_v30 = vpop.f32.mrf.mxu1  ;;  %5820 = vmatprep.subr.bf16.mxu0 %v8902_v9  ;;  %v4023_v26 = vadd.f32 %v4022_v16, %v11511_v17  ;;  %5933 = vmatprep.subr.bf16.mxu1 %v8905_v62  ;;  %v8906_v9 = vld [vmem:[%s12496_s8 + $0x238] ss:$28 sps:$4 sm:$0xff]   ;;  %v4085_v38 = vmax.f32 %v3908_v15, 0.0  ;;  %v4087_v21 = vmax.f32 %v4021_v40, 0.0  ;;  %v8917_v16 = vld [vmem:[%s12496_s8 + $0x584] ss:$28 sps:$4 sm:$0xff]  }
 0x3ba   : > { %v3912_v53 = vadd.f32 %v3911_v50, %v11514_v49  ;;  %v4025_v48 = vadd.f32 %v4024_v30, %v11517_v18  ;;  %5662 = vmatprep.mubr.bf16.mxu0 %v11788_v20  ;;  %5775 = vmatprep.mubr.bf16.mxu1 %v11790_v22  ;;  %v8909_v18 = vld [vmem:[%s12496_s8 + $0x5b8] ss:$28 sps:$4 sm:$0xff]   ;;  %v4086_v19 = vmax.f32 %v3910_v29, 0.0  ;;  %v8915_v29 = vld [vmem:[%s12496_s8 + $0x580] ss:$28 sps:$4 sm:$0xff]  }
 0x3bb   : > { %v3913_v12 = vpop.f32.mrf.mxu0  ;;  %v4026_v44 = vpop.f32.mrf.mxu1  ;;  %5663 = vmatmul.mubr.bf16.gmra.mxu0 %v11798_v0  ;;  %5776 = vmatmul.mubr.bf16.gmra.mxu1 %v11800_v7  ;;  %v8920_v50 = vld [vmem:[%s12496_s8 + $0x1cc] ss:$28 sps:$4 sm:$0xff]   ;;  %v8932_v15 = vld [vmem:[%s12496_s8 + $0x164] ss:$28 sps:$4 sm:$0xff]  }
 0x3bc   : > { %v3914_v58 = vadd.f32 %v3913_v12, %v11508_v34  ;;  %v4027_v37 = vadd.f32 %v4026_v44, %v11511_v17  ;;  %5821 = vmatpush2.bf16.msra.mxu0 %v8900_v23  ;;  %v4089_v31 = vmax.f32 %v3912_v53, 0.0  ;;  %v4091_v49 = vmax.f32 %v4025_v48, 0.0  ;;  %5934 = vmatpush2.bf16.msra.mxu1 %v8903_v35  ;;  %v8914_v34 = vld [vmem:[%s12496_s8 + $0x204] ss:$28 sps:$4 sm:$0xff]   ;;  %v8923_v30 = vld [vmem:[%s12496_s8 + $0x54c] ss:$28 sps:$4 sm:$0xff]  }
 0x3bd   : > { %5822 = vmatprep.subr.bf16.mxu0 %v8908_v46  ;;  %v4088_v17 = vmax.f32 %v4023_v26, 0.0  ;;  %5935 = vmatprep.subr.bf16.mxu1 %v8911_v42  ;;  %v8918_v35 = vld [vmem:[%s12496_s8 + $0x1c8] ss:$28 sps:$4 sm:$0xff]   ;;  %v8926_v26 = vld [vmem:[%s12496_s8 + $0x19c] ss:$28 sps:$4 sm:$0xff]  }
 0x3be   : > { %v4090_v3 = vmax.f32 %v3914_v58, 0.0  ;;  %v4092_v47 = vmax.f32 %v4027_v37, 0.0  ;;  %v11842_v23 = vpack.c.bf16 %v4089_v31, %v4085_v38  ;;  %v11844_v62 = vpack.c.bf16 %v4091_v49, %v4087_v21  ;;  %v8921_v46 = vld [vmem:[%s12496_s8 + $0x548] ss:$28 sps:$4 sm:$0xff]   ;;  %v8929_v53 = vld [vmem:[%s12496_s8 + $0x51c] ss:$28 sps:$4 sm:$0xff]  }
 0x3bf   : > { %v8924_v48 = vld [vmem:[%s12496_s8 + $0x198] ss:$28 sps:$4 sm:$0xff]   ;;  %v8935_v40 = vld [vmem:[%s12496_s8 + $0x4e4] ss:$28 sps:$4 sm:$0xff]   ;;  %v8938_v58 = vld [vmem:[%s12496_s8 + $0x12c] ss:$28 sps:$4 sm:$0xff]  }
 0x3c0   : > { %v11832_v55 = vpack.c.bf16 %v4090_v3, %v4086_v19  ;;  %v11834_v24 = vpack.c.bf16 %v4092_v47, %v4088_v17  ;;  %5823 = vmatpush2.bf16.msra.mxu0 %v8906_v9  ;;  %5936 = vmatpush2.bf16.msra.mxu1 %v8909_v18  ;;  %v8927_v42 = vld [vmem:[%s12496_s8 + $0x518] ss:$28 sps:$4 sm:$0xff]   ;;  %v8930_v12 = vld [vmem:[%s12496_s8 + $0x160] ss:$28 sps:$4 sm:$0xff]   ;;  %v8941_v37 = vld [vmem:[%s12496_s8 + $0x4ac] ss:$28 sps:$4 sm:$0xff]  }
 0x3c1   : > { %5824 = vmatprep.subr.bf16.mxu0 %v8914_v34  ;;  %5937 = vmatprep.subr.bf16.mxu1 %v8917_v16  ;;  %v8933_v44 = vld [vmem:[%s12496_s8 + $0x4e0] ss:$28 sps:$4 sm:$0xff]   ;;  %v8936_v9 = vld [vmem:[%s12496_s8 + $0x128] ss:$28 sps:$4 sm:$0xff]   ;;  %v8944_v49 = vld [vmem:[%s12496_s8 + $0xf4] ss:$28 sps:$4 sm:$0xff]  }
 0x3c2   : > { %5672 = vmatprep.mubr.bf16.mxu0 %v11832_v55  ;;  %5785 = vmatprep.mubr.bf16.mxu1 %v11834_v24  ;;  %v8939_v31 = vld [vmem:[%s12496_s8 + $0x4a8] ss:$28 sps:$4 sm:$0xff]   ;;  %v8947_v18 = vld [vmem:[%s12496_s8 + $0x474] ss:$28 sps:$4 sm:$0xff]   ;;  %v8950_v17 = vld [vmem:[%s12496_s8 + $0xbc] ss:$28 sps:$4 sm:$0xff]  }
 0x3c3   : > { %5673 = vmatmul.mubr.bf16.gmra.mxu0 %v11842_v23  ;;  %5786 = vmatmul.mubr.bf16.gmra.mxu1 %v11844_v62  ;;  %v8942_v34 = vld [vmem:[%s12496_s8 + $0xf0] ss:$28 sps:$4 sm:$0xff]   ;;  %v8953_v3 = vld [vmem:[%s12496_s8 + $0x43c] ss:$28 sps:$4 sm:$0xff]   ;;  %v8956_v21 = vld [vmem:[%s12496_s8 + $0x84] ss:$28 sps:$4 sm:$0xff]  }
 0x3c4   : > { %5825 = vmatpush2.bf16.msra.mxu0 %v8912_v51  ;;  %5828 = vmatprep.mubr.bf16.mxu0 %v11527_v41  ;;  %v8945_v19 = vld [vmem:[%s12496_s8 + $0x470] ss:$28 sps:$4 sm:$0xff]   ;;  %v8948_v47 = vld [vmem:[%s12496_s8 + $0xb8] ss:$28 sps:$4 sm:$0xff]   ;;  %v8959_v51 = vld [vmem:[%s12496_s8 + $0x404] ss:$28 sps:$4 sm:$0xff]  }
 0x3c5   : > { %5938 = vmatpush2.bf16.msra.mxu1 %v8915_v29  ;;  %5941 = vmatprep.mubr.bf16.mxu1 %v11529_v63  ;;  %v8951_v38 = vld [vmem:[%s12496_s8 + $0x438] ss:$28 sps:$4 sm:$0xff]   ;;  %v8954_v16 = vld [vmem:[%s12496_s8 + $0x80] ss:$28 sps:$4 sm:$0xff]  }
 0x3c6   : > { %5826 = vmatprep.subr.bf16.mxu0 %v8920_v50  ;;  %5939 = vmatprep.subr.bf16.mxu1 %v8923_v30  ;;  %v8957_v29 = vld [vmem:[%s12496_s8 + $0x400] ss:$28 sps:$4 sm:$0xff]   ;;  %v8962_v50 = vld [vmem:[%s12496_s8 + $0x4c] ss:$28 sps:$4 sm:$0xff]  }
 0x3c7   : > { %v8965_v30 = vld [vmem:[%s12496_s8 + $0x3cc] ss:$28 sps:$4 sm:$0xff]  }
 0x3c8   : > { %5827 = vmatpush2.bf16.msra.mxu0 %v8918_v35  ;;  %v8960_v35 = vld [vmem:[%s12496_s8 + $0x48] ss:$28 sps:$4 sm:$0xff]  }
 0x3c9   : > { %5940 = vmatpush2.bf16.msra.mxu1 %v8921_v46  ;;  %6022 = vmatprep.subr.bf16.mxu0 %v8926_v26  ;;  %v8963_v46 = vld [vmem:[%s12496_s8 + $0x3c8] ss:$28 sps:$4 sm:$0xff]   ;;  %v8968_v26 = vld [vmem:[%s12496_s8 + $0x14] ss:$28 sps:$4 sm:$0xff]  }
 0x3ca   : > { %6135 = vmatprep.subr.bf16.mxu1 %v8929_v53  ;;  %v8971_v53 = vld [vmem:[%s12496_s8 + $0x394] ss:$28 sps:$4 sm:$0xff]  }
 0x3cb   : > { %5829 = vmatmul.mubr.bf16.vlgmr.msra.gmra.mxu0 %v11537_v6 }
 0x3cc   : > { %5942 = vmatmul.mubr.bf16.vlgmr.msra.gmra.mxu1 %v11539_v27  ;;  %5838 = vmatprep.mubr.bf16.mxu0 %v11568_v1 }
 0x3cd   : > { %5951 = vmatprep.mubr.bf16.mxu1 %v11570_v4  ;;  %6023 = vmatpush1.bf16.msra.mxu0 %v8924_v48  ;;  %v8966_v48 = vld [vmem:[%s12496_s8 + $0x10] ss:$28 sps:$4 sm:$0xff]  }
 0x3ce   : > { %6136 = vmatpush1.bf16.msra.mxu1 %v8927_v42  ;;  %6024 = vmatprep.subr.bf16.mxu0 %v8932_v15  ;;  %v8969_v42 = vld [vmem:[%s12496_s8 + $0x390] ss:$28 sps:$4 sm:$0xff]   ;;  %v8974_v15 = vld [vmem:[%s12496_s8 + $0x35c] ss:$28 sps:$4 sm:$0xff]  }
 0x3cf   : > { %6137 = vmatprep.subr.bf16.mxu1 %v8935_v40  ;;  %v8977_v40 = vld [vmem:[%s12496_s8 + $0x6dc] ss:$28 sps:$4 sm:$0xff]  }
 0x3d1   : > { %6025 = vmatpush1.bf16.msra.mxu0 %v8930_v12  ;;  %v8972_v12 = vld [vmem:[%s12496_s8 + $0x358] ss:$28 sps:$4 sm:$0xff]  }
 0x3d2   : > { %6138 = vmatpush1.bf16.msra.mxu1 %v8933_v44  ;;  %6026 = vmatprep.subr.bf16.mxu0 %v8938_v58  ;;  %v8975_v44 = vld [vmem:[%s12496_s8 + $0x6d8] ss:$28 sps:$4 sm:$0xff]   ;;  %v8980_v58 = vld [vmem:[%s12496_s8 + $0x324] ss:$28 sps:$4 sm:$0xff]  }
 0x3d3   : > { %5839 = vmatmul.mubr.bf16.gmra.mxu0 %v11578_v32  ;;  %6139 = vmatprep.subr.bf16.mxu1 %v8941_v37  ;;  %v8983_v37 = vld [vmem:[%s12496_s8 + $0x6a4] ss:$28 sps:$4 sm:$0xff]  }
 0x3d4   : > { %5952 = vmatmul.mubr.bf16.gmra.mxu1 %v11580_v36  ;;  %5848 = vmatprep.mubr.bf16.mxu0 %v11612_v61 }
 0x3d5   : > { %5961 = vmatprep.mubr.bf16.mxu1 %v11614_v10  ;;  %6027 = vmatpush1.bf16.msra.mxu0 %v8936_v9  ;;  %v8978_v9 = vld [vmem:[%s12496_s8 + $0x320] ss:$28 sps:$4 sm:$0xff]  }
 0x3d6   : > { %6140 = vmatpush1.bf16.msra.mxu1 %v8939_v31  ;;  %6028 = vmatprep.subr.bf16.mxu0 %v8944_v49  ;;  %v8981_v31 = vld [vmem:[%s12496_s8 + $0x6a0] ss:$28 sps:$4 sm:$0xff]   ;;  %v8986_v49 = vld [vmem:[%s12496_s8 + $0x2ec] ss:$28 sps:$4 sm:$0xff]  }
 0x3d7   : > { %6141 = vmatprep.subr.bf16.mxu1 %v8947_v18  ;;  %v8989_v18 = vld [vmem:[%s12496_s8 + $0x66c] ss:$28 sps:$4 sm:$0xff]  }
 0x3d9   : > { %6029 = vmatpush1.bf16.msra.mxu0 %v8942_v34  ;;  %v8984_v34 = vld [vmem:[%s12496_s8 + $0x2e8] ss:$28 sps:$4 sm:$0xff]  }
 0x3da   : > { %6142 = vmatpush1.bf16.msra.mxu1 %v8945_v19  ;;  %6030 = vmatprep.subr.bf16.mxu0 %v8950_v17  ;;  %v8987_v19 = vld [vmem:[%s12496_s8 + $0x668] ss:$28 sps:$4 sm:$0xff]   ;;  %v8992_v17 = vld [vmem:[%s12496_s8 + $0x2b4] ss:$28 sps:$4 sm:$0xff]  }
 0x3db   : > { %5849 = vmatmul.mubr.bf16.gmra.mxu0 %v11622_v56  ;;  %6143 = vmatprep.subr.bf16.mxu1 %v8953_v3  ;;  %v8995_v3 = vld [vmem:[%s12496_s8 + $0x634] ss:$28 sps:$4 sm:$0xff]  }
 0x3dc   : > { %5962 = vmatmul.mubr.bf16.gmra.mxu1 %v11624_v52  ;;  %5858 = vmatprep.mubr.bf16.mxu0 %v11656_v8 }
 0x3dd   : > { %5971 = vmatprep.mubr.bf16.mxu1 %v11658_v54  ;;  %6031 = vmatpush1.bf16.msra.mxu0 %v8948_v47  ;;  %v8990_v47 = vld [vmem:[%s12496_s8 + $0x2b0] ss:$28 sps:$4 sm:$0xff]  }
 0x3de   : > { %6144 = vmatpush1.bf16.msra.mxu1 %v8951_v38  ;;  %6032 = vmatprep.subr.bf16.mxu0 %v8956_v21  ;;  %v8993_v38 = vld [vmem:[%s12496_s8 + $0x630] ss:$28 sps:$4 sm:$0xff]   ;;  %v8998_v21 = vld [vmem:[%s12496_s8 + $0x27c] ss:$28 sps:$4 sm:$0xff]  }
 0x3df   : > { %6145 = vmatprep.subr.bf16.mxu1 %v8959_v51  ;;  %v9001_v51 = vld [vmem:[%s12496_s8 + $0x5fc] ss:$28 sps:$4 sm:$0xff]  }
 0x3e1   : > { %6033 = vmatpush1.bf16.msra.mxu0 %v8954_v16  ;;  %v8996_v16 = vld [vmem:[%s12496_s8 + $0x278] ss:$28 sps:$4 sm:$0xff]  }
 0x3e2   : > { %6146 = vmatpush1.bf16.msra.mxu1 %v8957_v29  ;;  %6034 = vmatprep.subr.bf16.mxu0 %v8962_v50  ;;  %v8999_v29 = vld [vmem:[%s12496_s8 + $0x5f8] ss:$28 sps:$4 sm:$0xff]   ;;  %v9004_v50 = vld [vmem:[%s12496_s8 + $0x244] ss:$28 sps:$4 sm:$0xff]  }
 0x3e3   : > { %5859 = vmatmul.mubr.bf16.gmra.mxu0 %v11666_v11  ;;  %6147 = vmatprep.subr.bf16.mxu1 %v8965_v30  ;;  %v9007_v30 = vld [vmem:[%s12496_s8 + $0x5c4] ss:$28 sps:$4 sm:$0xff]  }
 0x3e4   : > { %5972 = vmatmul.mubr.bf16.gmra.mxu1 %v11668_v59  ;;  %5868 = vmatprep.mubr.bf16.mxu0 %v11700_v25 }
 0x3e5   : > { %5981 = vmatprep.mubr.bf16.mxu1 %v11702_v60  ;;  %6035 = vmatpush1.bf16.msra.mxu0 %v8960_v35  ;;  %v9002_v35 = vld [vmem:[%s12496_s8 + $0x240] ss:$28 sps:$4 sm:$0xff]  }
 0x3e6   : > { %6148 = vmatpush1.bf16.msra.mxu1 %v8963_v46  ;;  %6036 = vmatprep.subr.bf16.mxu0 %v8968_v26  ;;  %v9005_v46 = vld [vmem:[%s12496_s8 + $0x5c0] ss:$28 sps:$4 sm:$0xff]   ;;  %v9010_v26 = vld [vmem:[%s12496_s8 + $0x20c] ss:$28 sps:$4 sm:$0xff]  }
 0x3e7   : > { %6149 = vmatprep.subr.bf16.mxu1 %v8971_v53  ;;  %v9013_v53 = vld [vmem:[%s12496_s8 + $0x58c] ss:$28 sps:$4 sm:$0xff]  }
 0x3e9   : > { %6037 = vmatpush1.bf16.msra.mxu0 %v8966_v48  ;;  %v9008_v48 = vld [vmem:[%s12496_s8 + $0x208] ss:$28 sps:$4 sm:$0xff]  }
 0x3ea   : > { %6150 = vmatpush1.bf16.msra.mxu1 %v8969_v42  ;;  %6038 = vmatprep.subr.bf16.mxu0 %v8974_v15  ;;  %v9011_v42 = vld [vmem:[%s12496_s8 + $0x588] ss:$28 sps:$4 sm:$0xff]   ;;  %v9016_v15 = vld [vmem:[%s12496_s8 + $0x1d4] ss:$28 sps:$4 sm:$0xff]  }
 0x3eb   : > { %5869 = vmatmul.mubr.bf16.gmra.mxu0 %v11710_v13  ;;  %6151 = vmatprep.subr.bf16.mxu1 %v8977_v40  ;;  %v9019_v40 = vld [vmem:[%s12496_s8 + $0x554] ss:$28 sps:$4 sm:$0xff]  }
 0x3ec   : > { %5982 = vmatmul.mubr.bf16.gmra.mxu1 %v11712_v43  ;;  %5878 = vmatprep.mubr.bf16.mxu0 %v11744_v28 }
 0x3ed   : > { %5991 = vmatprep.mubr.bf16.mxu1 %v11746_v14  ;;  %6039 = vmatpush2.bf16.msra.mxu0 %v8972_v12  ;;  %v9014_v12 = vld [vmem:[%s12496_s8 + $0x1d0] ss:$28 sps:$4 sm:$0xff]  }
 0x3ee   : > { %6152 = vmatpush2.bf16.msra.mxu1 %v8975_v44  ;;  %6040 = vmatprep.subr.bf16.mxu0 %v8980_v58  ;;  %v9017_v44 = vld [vmem:[%s12496_s8 + $0x550] ss:$28 sps:$4 sm:$0xff]   ;;  %v9020_v58 = vld [vmem:[%s12496_s8 + $0x360] ss:$28 sps:$4 sm:$0xff]  }
 0x3ef   : > { %6153 = vmatprep.subr.bf16.mxu1 %v8983_v37  ;;  %v9022_v37 = vld [vmem:[%s12496_s8 + $0x6e0] ss:$28 sps:$4 sm:$0xff]  }
 0x3f1   : > { %6041 = vmatpush2.bf16.msra.mxu0 %v8978_v9  ;;  %v9021_v9 = vld [vmem:[%s12496_s8 + $0x1a0] ss:$28 sps:$4 sm:$0xff]  }
 0x3f2   : > { %6154 = vmatpush2.bf16.msra.mxu1 %v8981_v31  ;;  %6042 = vmatprep.subr.bf16.mxu0 %v8986_v49  ;;  %v9023_v31 = vld [vmem:[%s12496_s8 + $0x520] ss:$28 sps:$4 sm:$0xff]   ;;  %v9024_v49 = vld [vmem:[%s12496_s8 + $0x328] ss:$28 sps:$4 sm:$0xff]  }
 0x3f3   : > { %5879 = vmatmul.mubr.bf16.gmra.mxu0 %v11754_v57  ;;  %6155 = vmatprep.subr.bf16.mxu1 %v8989_v18  ;;  %v9026_v18 = vld [vmem:[%s12496_s8 + $0x6a8] ss:$28 sps:$4 sm:$0xff]  }
 0x3f4   : > { %5992 = vmatmul.mubr.bf16.gmra.mxu1 %v11756_v2  ;;  %5888 = vmatprep.mubr.bf16.mxu0 %v11788_v20 }
 0x3f5   : > { %6001 = vmatprep.mubr.bf16.mxu1 %v11790_v22  ;;  %6043 = vmatpush2.bf16.msra.mxu0 %v8984_v34  ;;  %v9025_v34 = vld [vmem:[%s12496_s8 + $0x168] ss:$28 sps:$4 sm:$0xff]  }
 0x3f6   : > { %6156 = vmatpush2.bf16.msra.mxu1 %v8987_v19  ;;  %6044 = vmatprep.subr.bf16.mxu0 %v8992_v17  ;;  %v9027_v19 = vld [vmem:[%s12496_s8 + $0x4e8] ss:$28 sps:$4 sm:$0xff]   ;;  %v9028_v17 = vld [vmem:[%s12496_s8 + $0x2f0] ss:$28 sps:$4 sm:$0xff]  }
 0x3f7   : > { %6157 = vmatprep.subr.bf16.mxu1 %v8995_v3  ;;  %v9030_v3 = vld [vmem:[%s12496_s8 + $0x670] ss:$28 sps:$4 sm:$0xff]  }
 0x3f9   : > { %6045 = vmatpush2.bf16.msra.mxu0 %v8990_v47  ;;  %v9029_v47 = vld [vmem:[%s12496_s8 + $0x130] ss:$28 sps:$4 sm:$0xff]  }
 0x3fa   : > { %6158 = vmatpush2.bf16.msra.mxu1 %v8993_v38  ;;  %6046 = vmatprep.subr.bf16.mxu0 %v8998_v21  ;;  %v9031_v38 = vld [vmem:[%s12496_s8 + $0x4b0] ss:$28 sps:$4 sm:$0xff]   ;;  %v9032_v21 = vld [vmem:[%s12496_s8 + $0x2b8] ss:$28 sps:$4 sm:$0xff]  }
 0x3fb   : > { %5889 = vmatmul.mubr.bf16.gmra.mxu0 %v11798_v0  ;;  %6159 = vmatprep.subr.bf16.mxu1 %v9001_v51  ;;  %v9034_v51 = vld [vmem:[%s12496_s8 + $0x638] ss:$28 sps:$4 sm:$0xff]  }
 0x3fc   : > { %6002 = vmatmul.mubr.bf16.gmra.mxu1 %v11800_v7  ;;  %5898 = vmatprep.mubr.bf16.mxu0 %v11832_v55 }
 0x3fd   : > { %6011 = vmatprep.mubr.bf16.mxu1 %v11834_v24  ;;  %6047 = vmatpush2.bf16.msra.mxu0 %v8996_v16  ;;  %v9033_v16 = vld [vmem:[%s12496_s8 + $0xf8] ss:$28 sps:$4 sm:$0xff]  }
 0x3fe   : > { %6160 = vmatpush2.bf16.msra.mxu1 %v8999_v29  ;;  %6048 = vmatprep.subr.bf16.mxu0 %v9004_v50  ;;  %v9035_v29 = vld [vmem:[%s12496_s8 + $0x478] ss:$28 sps:$4 sm:$0xff]   ;;  %v9036_v50 = vld [vmem:[%s12496_s8 + $0x280] ss:$28 sps:$4 sm:$0xff]  }
 0x3ff   : > { %6161 = vmatprep.subr.bf16.mxu1 %v9007_v30  ;;  %v9038_v30 = vld [vmem:[%s12496_s8 + $0x600] ss:$28 sps:$4 sm:$0xff]  }
 0x401   : > { %6049 = vmatpush2.bf16.msra.mxu0 %v9002_v35  ;;  %v9037_v35 = vld [vmem:[%s12496_s8 + $0xc0] ss:$28 sps:$4 sm:$0xff]  }
 0x402   : > { %6162 = vmatpush2.bf16.msra.mxu1 %v9005_v46  ;;  %6050 = vmatprep.subr.bf16.mxu0 %v9010_v26  ;;  %v9039_v46 = vld [vmem:[%s12496_s8 + $0x440] ss:$28 sps:$4 sm:$0xff]   ;;  %v9040_v26 = vld [vmem:[%s12496_s8 + $0x248] ss:$28 sps:$4 sm:$0xff]  }
 0x403   : > { %5899 = vmatmul.mubr.bf16.gmra.mxu0 %v11842_v23  ;;  %6163 = vmatprep.subr.bf16.mxu1 %v9013_v53  ;;  %v9042_v53 = vld [vmem:[%s12496_s8 + $0x5c8] ss:$28 sps:$4 sm:$0xff]  }
 0x404   : > { %6012 = vmatmul.mubr.bf16.gmra.mxu1 %v11844_v62  ;;  %6054 = vmatprep.mubr.bf16.mxu0 %v11527_v41 }
 0x405   : > { %6051 = vmatpush2.bf16.msra.mxu0 %v9008_v48  ;;  %6167 = vmatprep.mubr.bf16.mxu1 %v11529_v63  ;;  %v9041_v48 = vld [vmem:[%s12496_s8 + $0x88] ss:$28 sps:$4 sm:$0xff]  }
 0x406   : > { %6164 = vmatpush2.bf16.msra.mxu1 %v9011_v42  ;;  %6052 = vmatprep.subr.bf16.mxu0 %v9016_v15  ;;  %v9043_v42 = vld [vmem:[%s12496_s8 + $0x408] ss:$28 sps:$4 sm:$0xff]   ;;  %v9044_v15 = vld [vmem:[%s12496_s8 + $0x210] ss:$28 sps:$4 sm:$0xff]  }
 0x407   : > { %6165 = vmatprep.subr.bf16.mxu1 %v9019_v40  ;;  %v9046_v40 = vld [vmem:[%s12496_s8 + $0x590] ss:$28 sps:$4 sm:$0xff]  }
 0x409   : > { %6053 = vmatpush2.bf16.msra.mxu0 %v9014_v12  ;;  %v9045_v12 = vld [vmem:[%s12496_s8 + $0x50] ss:$28 sps:$4 sm:$0xff]  }
 0x40a   : > { %6166 = vmatpush2.bf16.msra.mxu1 %v9017_v44  ;;  %8155 = vmatprep.subr.bf16.mxu0 %v9020_v58  ;;  %v9047_v44 = vld [vmem:[%s12496_s8 + $0x3d0] ss:$28 sps:$4 sm:$0xff]   ;;  %v9048_v58 = vld [vmem:[%s12496_s8 + $0x1d8] ss:$28 sps:$4 sm:$0xff]  }
 0x40b   : > { %8219 = vmatprep.subr.bf16.mxu1 %v9022_v37  ;;  %v9050_v37 = vld [vmem:[%s12496_s8 + $0x558] ss:$28 sps:$4 sm:$0xff]  }
 0x40c   : > { %6055 = vmatmul.mubr.bf16.vlgmr.msra.gmra.mxu0 %v11537_v6 }
 0x40d   : > { %6168 = vmatmul.mubr.bf16.vlgmr.msra.gmra.mxu1 %v11539_v27  ;;  %6064 = vmatprep.mubr.bf16.mxu0 %v11568_v1 }
 0x40e   : > { %6177 = vmatprep.mubr.bf16.mxu1 %v11570_v4  ;;  %8156 = vmatpush3.bf16.msra.mxu0 %v9021_v9  ;;  %v9049_v9 = vld [vmem:[%s12496_s8 + $0x18] ss:$28 sps:$4 sm:$0xff]  }
 0x40f   : > { %8220 = vmatpush3.bf16.msra.mxu1 %v9023_v31  ;;  %8157 = vmatprep.subr.bf16.mxu0 %v9024_v49  ;;  %v9051_v31 = vld [vmem:[%s12496_s8 + $0x398] ss:$28 sps:$4 sm:$0xff]   ;;  %v12221_v49 = vld [vmem:[%s12497_s9] sm:$0x7f] }
 0x410   : > { %8221 = vmatprep.subr.bf16.mxu1 %v9026_v18  ;;  %v12226_v18 = vrot.slane %v12221_v49, %v12560_v39 }
 0x412   : > { %8158 = vmatpush3.bf16.msra.mxu0 %v9025_v34  ;;  %v12230_v34 = vrot.slane %v12221_v49, %v12561_v45 }
 0x413   : > { %8222 = vmatpush3.bf16.msra.mxu1 %v9027_v19  ;;  %8159 = vmatprep.subr.bf16.mxu0 %v9028_v17 }
 0x414   : > { %6065 = vmatmul.mubr.bf16.gmra.mxu0 %v11578_v32  ;;  %8223 = vmatprep.subr.bf16.mxu1 %v9030_v3 }
 0x415   : > { %6178 = vmatmul.mubr.bf16.gmra.mxu1 %v11580_v36  ;;  %6074 = vmatprep.mubr.bf16.mxu0 %v11612_v61 }
 0x416   : > { %6187 = vmatprep.mubr.bf16.mxu1 %v11614_v10  ;;  %8160 = vmatpush3.bf16.msra.mxu0 %v9029_v47 }
 0x417   : > { %8224 = vmatpush3.bf16.msra.mxu1 %v9031_v38  ;;  %8161 = vmatprep.subr.bf16.mxu0 %v9032_v21 }
 0x418   : > { %8225 = vmatprep.subr.bf16.mxu1 %v9034_v51 }
 0x41a   : > { %8162 = vmatpush3.bf16.msra.mxu0 %v9033_v16 }
 0x41b   : > { %8226 = vmatpush3.bf16.msra.mxu1 %v9035_v29  ;;  %8163 = vmatprep.subr.bf16.mxu0 %v9036_v50 }
 0x41c   : > { %6075 = vmatmul.mubr.bf16.gmra.mxu0 %v11622_v56  ;;  %8227 = vmatprep.subr.bf16.mxu1 %v9038_v30 }
 0x41d   : > { %6188 = vmatmul.mubr.bf16.gmra.mxu1 %v11624_v52  ;;  %6084 = vmatprep.mubr.bf16.mxu0 %v11656_v8 }
 0x41e   : > { %6197 = vmatprep.mubr.bf16.mxu1 %v11658_v54  ;;  %8164 = vmatpush3.bf16.msra.mxu0 %v9037_v35 }
 0x41f   : > { %8228 = vmatpush3.bf16.msra.mxu1 %v9039_v46  ;;  %8165 = vmatprep.subr.bf16.mxu0 %v9040_v26 }
 0x420   : > { %8229 = vmatprep.subr.bf16.mxu1 %v9042_v53 }
 0x422   : > { %8166 = vmatpush3.bf16.msra.mxu0 %v9041_v48 }
 0x423   : > { %8230 = vmatpush3.bf16.msra.mxu1 %v9043_v42  ;;  %8167 = vmatprep.subr.bf16.mxu0 %v9044_v15 }
 0x424   : > { %6085 = vmatmul.mubr.bf16.gmra.mxu0 %v11666_v11  ;;  %8231 = vmatprep.subr.bf16.mxu1 %v9046_v40 }
 0x425   : > { %6198 = vmatmul.mubr.bf16.gmra.mxu1 %v11668_v59  ;;  %6094 = vmatprep.mubr.bf16.mxu0 %v11700_v25 }
 0x426   : > { %6207 = vmatprep.mubr.bf16.mxu1 %v11702_v60  ;;  %8168 = vmatpush3.bf16.msra.mxu0 %v9045_v12 }
 0x427   : > { %8232 = vmatpush3.bf16.msra.mxu1 %v9047_v44  ;;  %8169 = vmatprep.subr.bf16.mxu0 %v9048_v58 }
 0x428   : > { %8233 = vmatprep.subr.bf16.mxu1 %v9050_v37 }
 0x42a   : > { %8170 = vmatpush3.bf16.msra.mxu0 %v9049_v9 }
 0x42b   : > { %8234 = vmatpush3.bf16.msra.mxu1 %v9051_v31 }
 0x42c   : > { %6095 = vmatmul.mubr.bf16.gmra.mxu0 %v11710_v13 }
 0x42d   : > { %6208 = vmatmul.mubr.bf16.gmra.mxu1 %v11712_v43  ;;  %6104 = vmatprep.mubr.bf16.mxu0 %v11744_v28 }
 0x42e   : > { %6217 = vmatprep.mubr.bf16.mxu1 %v11746_v14 }
 0x434   : > { %6105 = vmatmul.mubr.bf16.gmra.mxu0 %v11754_v57 }
 0x435   : > { %6218 = vmatmul.mubr.bf16.gmra.mxu1 %v11756_v2  ;;  %6114 = vmatprep.mubr.bf16.mxu0 %v11788_v20 }
 0x436   : > { %6227 = vmatprep.mubr.bf16.mxu1 %v11790_v22 }
 0x43c   : > { %6115 = vmatmul.mubr.bf16.gmra.mxu0 %v11798_v0 }
 0x43d   : > { %6228 = vmatmul.mubr.bf16.gmra.mxu1 %v11800_v7  ;;  %6124 = vmatprep.mubr.bf16.mxu0 %v11832_v55 }
 0x43e   : > { %6237 = vmatprep.mubr.bf16.mxu1 %v11834_v24 }
 0x444   : > { %6125 = vmatmul.mubr.bf16.gmra.mxu0 %v11842_v23 }
 0x445   : > { %6238 = vmatmul.mubr.bf16.gmra.mxu1 %v11844_v62  ;;  %6280 = vmatprep.mubr.bf16.mxu0 %v11527_v41 }
 0x446   : > { %6377 = vmatprep.mubr.bf16.mxu1 %v11529_v63 }
 0x44b   : > { %v5604_v19 = vpop.f32.mrf.mxu0  ;;  %v5717_v17 = vpop.f32.mrf.mxu1 }
 0x44c   : > { %v5605_v3 = vadd.f32 %v5604_v19, %v12226_v18  ;;  %6281 = vmatmul.mubr.bf16.vlgmr.msra.gmra.mxu0 %v11537_v6 }
 0x44d   : > { %6378 = vmatmul.mubr.bf16.vlgmr.msra.gmra.mxu1 %v11539_v27  ;;  %6288 = vmatprep.mubr.bf16.mxu0 %v11568_v1  ;;  %v5606_v41 = vpop.f32.mrf.mxu0  ;;  %v5719_v63 = vpop.f32.mrf.mxu1 }
 0x44e   : > { %v5718_v47 = vadd.f32 %v5717_v17, %v5605_v3  ;;  %6385 = vmatprep.mubr.bf16.mxu1 %v11570_v4  ;;  %v5607_v39 = vadd.f32 %v5606_v41, %v12230_v34 }
 0x44f   : > { %v5608_v38 = vpop.f32.mrf.mxu0  ;;  %v5721_v45 = vpop.f32.mrf.mxu1 }
 0x450   : > { %v6442_v21 = vmul.f32 0.5, %v5718_v47  ;;  %v5720_v51 = vadd.f32 %v5719_v63, %v5607_v39  ;;  %v5609_v16 = vadd.f32 %v5608_v38, %v12226_v18 }
 0x451   : > { %v5610_v29 = vpop.f32.mrf.mxu0  ;;  %v5723_v50 = vpop.f32.mrf.mxu1 }
 0x452   : > { %9084 = vtanh.f32 %v6442_v21  ;;  %v6443_v6 = vmul.f32 0.5, %v5720_v51  ;;  %v5722_v27 = vadd.f32 %v5721_v45, %v5609_v16  ;;  %v5611_v1 = vadd.f32 %v5610_v29, %v12230_v34 }
 0x453   : > { %v5614_v30 = vpop.f32.mrf.mxu0  ;;  %v5727_v35 = vpop.f32.mrf.mxu1 }
 0x454   : > { %9086 = vtanh.f32 %v6443_v6  ;;  %v6449_v46 = vmul.f32 0.5, %v5722_v27  ;;  %v5724_v4 = vadd.f32 %v5723_v50, %v5611_v1  ;;  %v5615_v26 = vadd.f32 %v5614_v30, %v12226_v18  ;;  %6289 = vmatmul.mubr.bf16.gmra.mxu0 %v11578_v32 }
 0x455   : > { %6386 = vmatmul.mubr.bf16.gmra.mxu1 %v11580_v36  ;;  %6296 = vmatprep.mubr.bf16.mxu0 %v11612_v61  ;;  %v5616_v53 = vpop.f32.mrf.mxu0  ;;  %v5729_v48 = vpop.f32.mrf.mxu1 }
 0x456   : > { %9088 = vtanh.f32 %v6449_v46  ;;  %v6450_v42 = vmul.f32 0.5, %v5724_v4  ;;  %v5728_v15 = vadd.f32 %v5727_v35, %v5615_v26  ;;  %6393 = vmatprep.mubr.bf16.mxu1 %v11614_v10  ;;  %v5617_v40 = vadd.f32 %v5616_v53, %v12230_v34 }
 0x457   : > { %v5618_v12 = vpop.f32.mrf.mxu0  ;;  %v5731_v44 = vpop.f32.mrf.mxu1 }
 0x458   : > { %9090 = vtanh.f32 %v6450_v42  ;;  %v6456_v58 = vmul.f32 0.5, %v5728_v15  ;;  %v5730_v37 = vadd.f32 %v5729_v48, %v5617_v40  ;;  %v5619_v32 = vadd.f32 %v5618_v12, %v12226_v18 }
 0x459   : > { %v5620_v9 = vpop.f32.mrf.mxu0  ;;  %v5733_v36 = vpop.f32.mrf.mxu1 }
 0x45a   : > { %9092 = vtanh.f32 %v6456_v58  ;;  %v6457_v61 = vmul.f32 0.5, %v5730_v37  ;;  %v5732_v31 = vadd.f32 %v5731_v44, %v5619_v32  ;;  %v5621_v19 = vadd.f32 %v5620_v9, %v12230_v34 }
 0x45b   : > { %v5624_v17 = vpop.f32.mrf.mxu0  ;;  %v5737_v3 = vpop.f32.mrf.mxu1 }
 0x45c   : > { %9094 = vtanh.f32 %v6457_v61  ;;  %v6463_v10 = vmul.f32 0.5, %v5732_v31  ;;  %v5734_v41 = vadd.f32 %v5733_v36, %v5621_v19  ;;  %v5625_v63 = vadd.f32 %v5624_v17, %v12226_v18  ;;  %6297 = vmatmul.mubr.bf16.gmra.mxu0 %v11622_v56 }
 0x45d   : > { %6394 = vmatmul.mubr.bf16.gmra.mxu1 %v11624_v52  ;;  %6304 = vmatprep.mubr.bf16.mxu0 %v11656_v8  ;;  %v5626_v47 = vpop.f32.mrf.mxu0  ;;  %v5739_v39 = vpop.f32.mrf.mxu1 }
 0x45e   : > { %9096 = vtanh.f32 %v6463_v10  ;;  %v6464_v38 = vmul.f32 0.5, %v5734_v41  ;;  %v5738_v45 = vadd.f32 %v5737_v3, %v5625_v63  ;;  %6401 = vmatprep.mubr.bf16.mxu1 %v11658_v54  ;;  %v5627_v21 = vadd.f32 %v5626_v47, %v12230_v34 }
 0x45f   : > { %v9085_v51 = vpop.eup %9084  ;;  %v5628_v16 = vpop.f32.mrf.mxu0 }
 0x460   : > { %v5741_v29 = vpop.f32.mrf.mxu1  ;;  %v6666_v50 = vmul.f32 0.5, %v9085_v51  ;;  %9098 = vtanh.f32 %v6464_v38  ;;  %v6470_v56 = vmul.f32 0.5, %v5738_v45  ;;  %v5740_v6 = vadd.f32 %v5739_v39, %v5627_v21 }
 0x461   : > { %v9087_v52 = vpop.eup %9086  ;;  %v5629_v8 = vadd.f32 %v5628_v16, %v12226_v18  ;;  %v5630_v27 = vpop.f32.mrf.mxu0 }
 0x462   : > { %v5743_v1 = vpop.f32.mrf.mxu1  ;;  %v6667_v30 = vmul.f32 0.5, %v9087_v52  ;;  %9100 = vtanh.f32 %v6470_v56  ;;  %v6471_v35 = vmul.f32 0.5, %v5740_v6  ;;  %v6778_v54 = vadd.f32 0.5, %v6666_v50 }
 0x463   : > { %v9089_v46 = vpop.eup %9088  ;;  %v5742_v4 = vadd.f32 %v5741_v29, %v5629_v8  ;;  %v5631_v26 = vadd.f32 %v5630_v27, %v12230_v34  ;;  %v5634_v53 = vpop.f32.mrf.mxu0 }
 0x464   : > { %v5747_v48 = vpop.f32.mrf.mxu1  ;;  %v6779_v42 = vadd.f32 0.5, %v6667_v30  ;;  %v6673_v15 = vmul.f32 0.5, %v9089_v46  ;;  %9102 = vtanh.f32 %v6471_v35  ;;  %v5635_v40 = vadd.f32 %v5634_v53, %v12226_v18  ;;  %6305 = vmatmul.mubr.bf16.gmra.mxu0 %v11666_v11 }
 0x465   : > { %v9091_v12 = vpop.eup %9090  ;;  %v6477_v44 = vmul.f32 0.5, %v5742_v4  ;;  %v5744_v58 = vadd.f32 %v5743_v1, %v5631_v26  ;;  %6402 = vmatmul.mubr.bf16.gmra.mxu1 %v11668_v59  ;;  %6312 = vmatprep.mubr.bf16.mxu0 %v11700_v25  ;;  %v5636_v37 = vpop.f32.mrf.mxu0 }
 0x466   : > { %v5749_v32 = vpop.f32.mrf.mxu1  ;;  %v8091_v9 = vpack.c.bf16 %v6779_v42, %v6778_v54  ;;  %v6674_v36 = vmul.f32 0.5, %v9091_v12  ;;  %v5748_v61 = vadd.f32 %v5747_v48, %v5635_v40  ;;  %6409 = vmatprep.mubr.bf16.mxu1 %v11702_v60  ;;  %v6785_v31 = vadd.f32 0.5, %v6673_v15 }
 0x467   : > { %v9093_v11 = vpop.eup %9092  ;;  %9104 = vtanh.f32 %v6477_v44  ;;  %v6478_v19 = vmul.f32 0.5, %v5744_v58  ;;  %v5637_v17 = vadd.f32 %v5636_v37, %v12230_v34  ;;  %v5638_v3 = vpop.f32.mrf.mxu0 }
 0x468   : > { %v5751_v10 = vpop.f32.mrf.mxu1  ;;  %7242 = vst [vmem:[%s12262_s25] sm:$0xff] %v8091_v9  ;;  %v6786_v41 = vadd.f32 0.5, %v6674_v36  ;;  %v6680_v59 = vmul.f32 0.5, %v9093_v11  ;;  %v6484_v63 = vmul.f32 0.5, %v5748_v61  ;;  %v5639_v25 = vadd.f32 %v5638_v3, %v12226_v18 }
 0x469   : > { %v9095_v47 = vpop.eup %9094  ;;  %9106 = vtanh.f32 %v6478_v19  ;;  %v5750_v39 = vadd.f32 %v5749_v32, %v5637_v17  ;;  %v5640_v38 = vpop.f32.mrf.mxu0 }
 0x46a   : > { %v5753_v60 = vpop.f32.mrf.mxu1  ;;  %v8095_v45 = vpack.c.bf16 %v6786_v41, %v6785_v31  ;;  %v6681_v21 = vmul.f32 0.5, %v9095_v47  ;;  %9108 = vtanh.f32 %v6484_v63  ;;  %v5752_v29 = vadd.f32 %v5751_v10, %v5639_v25 }
 0x46b   : > { %v9097_v51 = vpop.eup %9096  ;;  %v6485_v16 = vmul.f32 0.5, %v5750_v39  ;;  %v5641_v50 = vadd.f32 %v5640_v38, %v12230_v34  ;;  %v5644_v56 = vpop.f32.mrf.mxu0  ;;  %v6792_v52 = vadd.f32 0.5, %v6680_v59 }
 0x46c   : > { %v5757_v6 = vpop.f32.mrf.mxu1  ;;  %7247 = vst [vmem:[%s12262_s25 + $0x1c] sm:$0xff] %v8095_v45  ;;  %v6793_v8 = vadd.f32 0.5, %v6681_v21  ;;  %v6687_v27 = vmul.f32 0.5, %v9097_v51  ;;  %v5645_v1 = vadd.f32 %v5644_v56, %v12226_v18  ;;  %6313 = vmatmul.mubr.bf16.gmra.mxu0 %v11710_v13  ;;  %v6491_v35 = vmul.f32 0.5, %v5752_v29 }
 0x46d   : > { %v9099_v30 = vpop.eup %9098  ;;  %9110 = vtanh.f32 %v6485_v16  ;;  %v5754_v46 = vadd.f32 %v5753_v60, %v5641_v50  ;;  %6410 = vmatmul.mubr.bf16.gmra.mxu1 %v11712_v43  ;;  %6320 = vmatprep.mubr.bf16.mxu0 %v11744_v28  ;;  %v5646_v54 = vpop.f32.mrf.mxu0 }
 0x46e   : > { %v5759_v4 = vpop.f32.mrf.mxu1  ;;  %v8099_v26 = vpack.c.bf16 %v6793_v8, %v6792_v52  ;;  %v6688_v53 = vmul.f32 0.5, %v9099_v30  ;;  %v5758_v48 = vadd.f32 %v5757_v6, %v5645_v1  ;;  %6417 = vmatprep.mubr.bf16.mxu1 %v11746_v14  ;;  %v6799_v15 = vadd.f32 0.5, %v6687_v27 }
 0x46f   : > { %v9101_v42 = vpop.eup %9100  ;;  %9112 = vtanh.f32 %v6491_v35  ;;  %v6492_v13 = vmul.f32 0.5, %v5754_v46  ;;  %v5647_v40 = vadd.f32 %v5646_v54, %v12230_v34  ;;  %v5648_v12 = vpop.f32.mrf.mxu0 }
 0x470   : > { %v5761_v44 = vpop.f32.mrf.mxu1  ;;  %7251 = vst [vmem:[%s12262_s25 + $0x38] sm:$0xff] %v8099_v26  ;;  %v6800_v58 = vadd.f32 0.5, %v6688_v53  ;;  %v6694_v43 = vmul.f32 0.5, %v9101_v42  ;;  %v6498_v37 = vmul.f32 0.5, %v5758_v48  ;;  %v5649_v28 = vadd.f32 %v5648_v12, %v12226_v18 }
 0x471   : > { %v9103_v32 = vpop.eup %9102  ;;  %9114 = vtanh.f32 %v6492_v13  ;;  %v5760_v9 = vadd.f32 %v5759_v4, %v5647_v40  ;;  %v5650_v36 = vpop.f32.mrf.mxu0 }
 0x472   : > { %v5763_v14 = vpop.f32.mrf.mxu1  ;;  %v8103_v61 = vpack.c.bf16 %v6800_v58, %v6799_v15  ;;  %v6695_v11 = vmul.f32 0.5, %v9103_v32  ;;  %9116 = vtanh.f32 %v6498_v37  ;;  %v5762_v19 = vadd.f32 %v5761_v44, %v5649_v28 }
 0x473   : > { %v6499_v31 = vmul.f32 0.5, %v5760_v9  ;;  %v5651_v17 = vadd.f32 %v5650_v36, %v12230_v34  ;;  %v5654_v3 = vpop.f32.mrf.mxu0  ;;  %v6806_v59 = vadd.f32 0.5, %v6694_v43 }
 0x474   : > { %v5767_v10 = vpop.f32.mrf.mxu1  ;;  %v9105_v41 = vpop.eup %9104  ;;  %7255 = vst [vmem:[%s12262_s25 + $0x54] sm:$0xff] %v8103_v61  ;;  %v6807_v63 = vadd.f32 0.5, %v6695_v11  ;;  %v5655_v25 = vadd.f32 %v5654_v3, %v12226_v18  ;;  %6321 = vmatmul.mubr.bf16.gmra.mxu0 %v11754_v57  ;;  %v6505_v39 = vmul.f32 0.5, %v5762_v19 }
 0x475   : > { %v6701_v47 = vmul.f32 0.5, %v9105_v41  ;;  %9118 = vtanh.f32 %v6499_v31  ;;  %v5764_v38 = vadd.f32 %v5763_v14, %v5651_v17  ;;  %6418 = vmatmul.mubr.bf16.gmra.mxu1 %v11756_v2  ;;  %6328 = vmatprep.mubr.bf16.mxu0 %v11788_v20  ;;  %v5656_v60 = vpop.f32.mrf.mxu0 }
 0x476   : > { %v5769_v45 = vpop.f32.mrf.mxu1  ;;  %v9107_v21 = vpop.eup %9106  ;;  %v8107_v51 = vpack.c.bf16 %v6807_v63, %v6806_v59  ;;  %v5768_v16 = vadd.f32 %v5767_v10, %v5655_v25  ;;  %6425 = vmatprep.mubr.bf16.mxu1 %v11790_v22  ;;  %v5657_v29 = vadd.f32 %v5656_v60, %v12230_v34  ;;  %9120 = vtanh.f32 %v6505_v39 }
 0x477   : > { %v9109_v50 = vpop.eup %9108  ;;  %v6702_v57 = vmul.f32 0.5, %v9107_v21  ;;  %v6506_v56 = vmul.f32 0.5, %v5764_v38  ;;  %v5658_v6 = vpop.f32.mrf.mxu0  ;;  %v6813_v27 = vadd.f32 0.5, %v6701_v47 }
 0x478   : > { %v5771_v52 = vpop.f32.mrf.mxu1  ;;  %7259 = vst [vmem:[%s12262_s25 + $0x70] sm:$0xff] %v8107_v51  ;;  %v6512_v8 = vmul.f32 0.5, %v5768_v16  ;;  %v5770_v2 = vadd.f32 %v5769_v45, %v5657_v29  ;;  %v5659_v20 = vadd.f32 %v5658_v6, %v12226_v18  ;;  %v6708_v30 = vmul.f32 0.5, %v9109_v50 }
 0x479   : > { %v6814_v1 = vadd.f32 0.5, %v6702_v57  ;;  %9122 = vtanh.f32 %v6506_v56  ;;  %v5660_v35 = vpop.f32.mrf.mxu0 }
 0x47a   : > { %v5773_v22 = vpop.f32.mrf.mxu1  ;;  %v9111_v46 = vpop.eup %9110  ;;  %9124 = vtanh.f32 %v6512_v8  ;;  %v6513_v54 = vmul.f32 0.5, %v5770_v2  ;;  %v5772_v4 = vadd.f32 %v5771_v52, %v5659_v20  ;;  %v5661_v48 = vadd.f32 %v5660_v35, %v12230_v34 }
 0x47b   : > { %v8111_v26 = vpack.c.bf16 %v6814_v1, %v6813_v27  ;;  %v6709_v53 = vmul.f32 0.5, %v9111_v46  ;;  %v5664_v42 = vpop.f32.mrf.mxu0  ;;  %v6820_v44 = vadd.f32 0.5, %v6708_v30 }
 0x47c   : > { %v5777_v15 = vpop.f32.mrf.mxu1  ;;  %v9113_v13 = vpop.eup %9112  ;;  %9126 = vtanh.f32 %v6513_v54  ;;  %v6519_v40 = vmul.f32 0.5, %v5772_v4  ;;  %v5665_v12 = vadd.f32 %v5664_v42, %v12226_v18  ;;  %6329 = vmatmul.mubr.bf16.gmra.mxu0 %v11798_v0  ;;  %v5774_v37 = vadd.f32 %v5773_v22, %v5661_v48 }
 0x47d   : > { %7263 = vst [vmem:[%s12262_s25 + $0x8c] sm:$0xff] %v8111_v26  ;;  %v6821_v58 = vadd.f32 0.5, %v6709_v53  ;;  %v6715_v43 = vmul.f32 0.5, %v9113_v13  ;;  %6426 = vmatmul.mubr.bf16.gmra.mxu1 %v11800_v7  ;;  %6336 = vmatprep.mubr.bf16.mxu0 %v11832_v55  ;;  %v5666_v28 = vpop.f32.mrf.mxu0  ;;  %v12308_v4 = vrot.slane %v12221_v49, %v12563_v5  ;;  %v12314_v5 = vrot.slane %v12221_v49, %v12562_v33 }
 0x47e   : > { %v5779_v32 = vpop.f32.mrf.mxu1  ;;  %v9115_v9 = vpop.eup %9114  ;;  %9128 = vtanh.f32 %v6519_v40  ;;  %v5778_v36 = vadd.f32 %v5777_v15, %v5665_v12  ;;  %6433 = vmatprep.mubr.bf16.mxu1 %v11834_v24  ;;  %v5667_v14 = vadd.f32 %v5666_v28, %v12230_v34  ;;  %v6520_v31 = vmul.f32 0.5, %v5774_v37 }
 0x47f   : > { %v9117_v0 = vpop.eup %9116  ;;  %v8115_v61 = vpack.c.bf16 %v6821_v58, %v6820_v44  ;;  %v6716_v11 = vmul.f32 0.5, %v9115_v9  ;;  %v5668_v19 = vpop.f32.mrf.mxu0  ;;  %v6827_v10 = vadd.f32 0.5, %v6715_v43 }
 0x480   : > { %v5781_v17 = vpop.f32.mrf.mxu1  ;;  %v6526_v3 = vmul.f32 0.5, %v5778_v36  ;;  %v5780_v7 = vadd.f32 %v5779_v32, %v5667_v14  ;;  %v5669_v55 = vadd.f32 %v5668_v19, %v12226_v18  ;;  %v6722_v59 = vmul.f32 0.5, %v9117_v0 }
 0x481   : > { %7267 = vst [vmem:[%s12262_s25 + $0xa8] sm:$0xff] %v8115_v61  ;;  %v6828_v41 = vadd.f32 0.5, %v6716_v11  ;;  %9130 = vtanh.f32 %v6520_v31  ;;  %v5670_v63 = vpop.f32.mrf.mxu0 }
 0x482   : > { %v5783_v24 = vpop.f32.mrf.mxu1  ;;  %v9119_v25 = vpop.eup %9118  ;;  %9132 = vtanh.f32 %v6526_v3  ;;  %v6527_v47 = vmul.f32 0.5, %v5780_v7  ;;  %v5782_v39 = vadd.f32 %v5781_v17, %v5669_v55  ;;  %v5671_v45 = vadd.f32 %v5670_v63, %v12230_v34 }
 0x483   : > { %v8119_v38 = vpack.c.bf16 %v6828_v41, %v6827_v10  ;;  %v6723_v60 = vmul.f32 0.5, %v9119_v25  ;;  %v5674_v21 = vpop.f32.mrf.mxu0  ;;  %v9121_v16 = vpop.eup %9120  ;;  %v6834_v57 = vadd.f32 0.5, %v6722_v59 }
 0x484   : > { %v5787_v51 = vpop.f32.mrf.mxu1  ;;  %9134 = vtanh.f32 %v6527_v47  ;;  %v6533_v29 = vmul.f32 0.5, %v5782_v39  ;;  %v5675_v50 = vadd.f32 %v5674_v21, %v12226_v18  ;;  %6337 = vmatmul.mubr.bf16.gmra.mxu0 %v11842_v23  ;;  %v6729_v6 = vmul.f32 0.5, %v9121_v16 }
 0x485   : > { %7271 = vst [vmem:[%s12262_s25 + $0xc4] sm:$0xff] %v8119_v38  ;;  %v6835_v56 = vadd.f32 0.5, %v6723_v60  ;;  %v5784_v52 = vadd.f32 %v5783_v24, %v5671_v45  ;;  %6434 = vmatmul.mubr.bf16.gmra.mxu1 %v11844_v62  ;;  %v5676_v8 = vpop.f32.mrf.mxu0 }
 0x486   : > { %v5789_v2 = vpop.f32.mrf.mxu1  ;;  %v9123_v20 = vpop.eup %9122  ;;  %9136 = vtanh.f32 %v6533_v29  ;;  %v5788_v27 = vadd.f32 %v5787_v51, %v5675_v50  ;;  %v5677_v1 = vadd.f32 %v5676_v8, %v12230_v34  ;;  %v6841_v15 = vadd.f32 0.5, %v6729_v6 }
 0x487   : > { %v9125_v30 = vpop.eup %9124  ;;  %v8123_v35 = vpack.c.bf16 %v6835_v56, %v6834_v57  ;;  %v6730_v22 = vmul.f32 0.5, %v9123_v20  ;;  %v6534_v46 = vmul.f32 0.5, %v5784_v52  ;;  %v5678_v23 = vpop.f32.mrf.mxu0 }
 0x488   : > { %v5791_v54 = vpop.f32.mrf.mxu1  ;;  %v6736_v26 = vmul.f32 0.5, %v9125_v30  ;;  %v6540_v62 = vmul.f32 0.5, %v5788_v27  ;;  %v5790_v53 = vadd.f32 %v5789_v2, %v5677_v1  ;;  %v5679_v48 = vadd.f32 %v5678_v23, %v12226_v18 }
 0x489   : > { %v9127_v42 = vpop.eup %9126  ;;  %7275 = vst [vmem:[%s12262_s25 + $0xe0] sm:$0xff] %v8123_v35  ;;  %v6842_v13 = vadd.f32 0.5, %v6730_v22  ;;  %9138 = vtanh.f32 %v6534_v46  ;;  %v5680_v40 = vpop.f32.mrf.mxu0 }
 0x48a   : > { %v5793_v12 = vpop.f32.mrf.mxu1  ;;  %v6737_v44 = vmul.f32 0.5, %v9127_v42  ;;  %9140 = vtanh.f32 %v6540_v62  ;;  %v6541_v58 = vmul.f32 0.5, %v5790_v53  ;;  %v5792_v28 = vadd.f32 %v5791_v54, %v5679_v48 }
 0x48b   : > { %v9129_v43 = vpop.eup %9128  ;;  %v8127_v37 = vpack.c.bf16 %v6842_v13, %v6841_v15  ;;  %v5681_v18 = vadd.f32 %v5680_v40, %v12230_v34  ;;  %v5830_v32 = vpop.f32.mrf.mxu0  ;;  %v6848_v9 = vadd.f32 0.5, %v6736_v26 }
 0x48c   : > { %v6849_v36 = vadd.f32 0.5, %v6737_v44  ;;  %9142 = vtanh.f32 %v6541_v58  ;;  %v5831_v14 = vadd.f32 %v5830_v32, %v12308_v4  ;;  %v5943_v0 = vpop.f32.mrf.mxu1  ;;  %v6743_v61 = vmul.f32 0.5, %v9129_v43 }
 0x48d   : > { %7279 = vst [vmem:[%s12262_s25 + $0xfc] sm:$0xff] %v8127_v37  ;;  %v6547_v11 = vmul.f32 0.5, %v5792_v28  ;;  %v5794_v31 = vadd.f32 %v5793_v12, %v5681_v18  ;;  %v5832_v19 = vpop.f32.mrf.mxu0 }
 0x48e   : > { %v9131_v33 = vpop.eup %9130  ;;  %v8131_v49 = vpack.c.bf16 %v6849_v36, %v6848_v9  ;;  %v5944_v17 = vadd.f32 %v5943_v0, %v5831_v14  ;;  %v5833_v3 = vadd.f32 %v5832_v19, %v12314_v5  ;;  %v5945_v7 = vpop.f32.mrf.mxu1  ;;  %v6855_v38 = vadd.f32 0.5, %v6743_v61 }
 0x48f   : > { %v9133_v34 = vpop.eup %9132  ;;  %v6744_v55 = vmul.f32 0.5, %v9131_v33  ;;  %9144 = vtanh.f32 %v6547_v11  ;;  %v6548_v10 = vmul.f32 0.5, %v5794_v31  ;;  %v5834_v41 = vpop.f32.mrf.mxu0 }
 0x490   : > { %7283 = vst [vmem:[%s12262_s25 + $0x118] sm:$0xff] %v8131_v49  ;;  %v6750_v59 = vmul.f32 0.5, %v9133_v34  ;;  %v6444_v63 = vmul.f32 0.5, %v5944_v17  ;;  %v5946_v24 = vadd.f32 %v5945_v7, %v5833_v3  ;;  %v5835_v25 = vadd.f32 %v5834_v41, %v12308_v4  ;;  %v5947_v47 = vpop.f32.mrf.mxu1 }
 0x491   : > { %v9135_v39 = vpop.eup %9134  ;;  %v6856_v60 = vadd.f32 0.5, %v6744_v55  ;;  %9146 = vtanh.f32 %v6548_v10  ;;  %v5836_v45 = vpop.f32.mrf.mxu0 }
 0x492   : > { %v6751_v21 = vmul.f32 0.5, %v9135_v39  ;;  %9148 = vtanh.f32 %v6444_v63  ;;  %v6445_v51 = vmul.f32 0.5, %v5946_v24  ;;  %v5949_v16 = vpop.f32.mrf.mxu1  ;;  %v5948_v57 = vadd.f32 %v5947_v47, %v5835_v25 }
 0x493   : > { %v9137_v29 = vpop.eup %9136  ;;  %v8135_v50 = vpack.c.bf16 %v6856_v60, %v6855_v38  ;;  %v5837_v56 = vadd.f32 %v5836_v45, %v12314_v5  ;;  %v5840_v6 = vpop.f32.mrf.mxu0  ;;  %v6862_v52 = vadd.f32 0.5, %v6750_v59 }
 0x494   : > { %v6863_v8 = vadd.f32 0.5, %v6751_v21  ;;  %9150 = vtanh.f32 %v6445_v51  ;;  %v5841_v2 = vadd.f32 %v5840_v6, %v12308_v4  ;;  %v5953_v20 = vpop.f32.mrf.mxu1  ;;  %v6757_v27 = vmul.f32 0.5, %v9137_v29 }
 0x495   : > { %7287 = vst [vmem:[%s12262_s25 + $0x134] sm:$0xff] %v8135_v50  ;;  %v6451_v1 = vmul.f32 0.5, %v5948_v57  ;;  %v5950_v30 = vadd.f32 %v5949_v16, %v5837_v56  ;;  %v5842_v35 = vpop.f32.mrf.mxu0 }
 0x496   : > { %v9139_v22 = vpop.eup %9138  ;;  %v8139_v46 = vpack.c.bf16 %v6863_v8, %v6862_v52  ;;  %v5954_v23 = vadd.f32 %v5953_v20, %v5841_v2  ;;  %v5843_v54 = vadd.f32 %v5842_v35, %v12314_v5  ;;  %v5955_v26 = vpop.f32.mrf.mxu1  ;;  %v6869_v43 = vadd.f32 0.5, %v6757_v27 }
 0x497   : > { %v9141_v62 = vpop.eup %9140  ;;  %v6758_v53 = vmul.f32 0.5, %v9139_v22  ;;  %9152 = vtanh.f32 %v6451_v1  ;;  %v6452_v48 = vmul.f32 0.5, %v5950_v30  ;;  %v5844_v42 = vpop.f32.mrf.mxu0 }
 0x498   : > { %7291 = vst [vmem:[%s12262_s25 + $0x150] sm:$0xff] %v8139_v46  ;;  %v6764_v15 = vmul.f32 0.5, %v9141_v62  ;;  %v6458_v13 = vmul.f32 0.5, %v5954_v23  ;;  %v5956_v40 = vadd.f32 %v5955_v26, %v5843_v54  ;;  %v5845_v12 = vadd.f32 %v5844_v42, %v12308_v4  ;;  %v5957_v44 = vpop.f32.mrf.mxu1 }
 0x499   : > { %v9143_v58 = vpop.eup %9142  ;;  %v6870_v37 = vadd.f32 0.5, %v6758_v53  ;;  %9154 = vtanh.f32 %v6452_v48  ;;  %v5846_v28 = vpop.f32.mrf.mxu0 }
 0x49a   : > { %v6765_v18 = vmul.f32 0.5, %v9143_v58  ;;  %9156 = vtanh.f32 %v6458_v13  ;;  %v6459_v32 = vmul.f32 0.5, %v5956_v40  ;;  %v5959_v9 = vpop.f32.mrf.mxu1  ;;  %v5958_v14 = vadd.f32 %v5957_v44, %v5845_v12 }
 0x49b   : > { %v8143_v36 = vpack.c.bf16 %v6870_v37, %v6869_v43  ;;  %v5847_v0 = vadd.f32 %v5846_v28, %v12314_v5  ;;  %v5850_v61 = vpop.f32.mrf.mxu0  ;;  %v6876_v31 = vadd.f32 0.5, %v6764_v15 }
 0x49c   : > { %v9145_v11 = vpop.eup %9144  ;;  %v6877_v19 = vadd.f32 0.5, %v6765_v18  ;;  %9158 = vtanh.f32 %v6459_v32  ;;  %v5851_v33 = vadd.f32 %v5850_v61, %v12308_v4  ;;  %v5963_v49 = vpop.f32.mrf.mxu1  ;;  %v6465_v3 = vmul.f32 0.5, %v5958_v14 }
 0x49d   : > { %7295 = vst [vmem:[%s12262_s25 + $0x16c] sm:$0xff] %v8143_v36  ;;  %v6771_v17 = vmul.f32 0.5, %v9145_v11  ;;  %v5960_v7 = vadd.f32 %v5959_v9, %v5847_v0  ;;  %v5852_v34 = vpop.f32.mrf.mxu0 }
 0x49e   : > { %v9147_v55 = vpop.eup %9146  ;;  %v8147_v10 = vpack.c.bf16 %v6877_v19, %v6876_v31  ;;  %v5964_v41 = vadd.f32 %v5963_v49, %v5851_v33  ;;  %v5853_v59 = vadd.f32 %v5852_v34, %v12314_v5  ;;  %v5965_v63 = vpop.f32.mrf.mxu1  ;;  %9160 = vtanh.f32 %v6465_v3 }
 0x49f   : > { %v9149_v24 = vpop.eup %9148  ;;  %v6772_v25 = vmul.f32 0.5, %v9147_v55  ;;  %v6466_v47 = vmul.f32 0.5, %v5960_v7  ;;  %v5854_v39 = vpop.f32.mrf.mxu0  ;;  %v6883_v29 = vadd.f32 0.5, %v6771_v17 }
 0x4a0   : > { %7299 = vst [vmem:[%s12262_s25 + $0x188] sm:$0xff] %v8147_v10  ;;  %v6668_v38 = vmul.f32 0.5, %v9149_v24  ;;  %v6472_v60 = vmul.f32 0.5, %v5964_v41  ;;  %v5966_v45 = vadd.f32 %v5965_v63, %v5853_v59  ;;  %v5855_v21 = vadd.f32 %v5854_v39, %v12308_v4  ;;  %v5967_v51 = vpop.f32.mrf.mxu1 }
 0x4a1   : > { %v9151_v16 = vpop.eup %9150  ;;  %v6884_v50 = vadd.f32 0.5, %v6772_v25  ;;  %9162 = vtanh.f32 %v6466_v47  ;;  %v5856_v57 = vpop.f32.mrf.mxu0 }
 0x4a2   : > { %v6669_v56 = vmul.f32 0.5, %v9151_v16  ;;  %9164 = vtanh.f32 %v6472_v60  ;;  %v6473_v6 = vmul.f32 0.5, %v5966_v45  ;;  %v5969_v52 = vpop.f32.mrf.mxu1  ;;  %v5968_v2 = vadd.f32 %v5967_v51, %v5855_v21 }
 0x4a3   : > { %v8151_v8 = vpack.c.bf16 %v6884_v50, %v6883_v29  ;;  %v5857_v20 = vadd.f32 %v5856_v57, %v12314_v5  ;;  %v5860_v27 = vpop.f32.mrf.mxu0  ;;  %v6780_v30 = vadd.f32 0.5, %v6668_v38 }
 0x4a4   : > { %v9153_v1 = vpop.eup %9152  ;;  %v6781_v35 = vadd.f32 0.5, %v6669_v56  ;;  %9166 = vtanh.f32 %v6473_v6  ;;  %v5861_v22 = vadd.f32 %v5860_v27, %v12308_v4  ;;  %v5973_v46 = vpop.f32.mrf.mxu1  ;;  %v6479_v54 = vmul.f32 0.5, %v5968_v2 }
 0x4a5   : > { %7303 = vst [vmem:[%s12262_s25 + $0x1a4] sm:$0xff] %v8151_v8  ;;  %v6675_v23 = vmul.f32 0.5, %v9153_v1  ;;  %v5970_v26 = vadd.f32 %v5969_v52, %v5857_v20  ;;  %v5862_v62 = vpop.f32.mrf.mxu0 }
 0x4a6   : > { %v9155_v53 = vpop.eup %9154  ;;  %v8092_v48 = vpack.c.bf16 %v6781_v35, %v6780_v30  ;;  %v5974_v42 = vadd.f32 %v5973_v46, %v5861_v22  ;;  %v5863_v15 = vadd.f32 %v5862_v62, %v12314_v5  ;;  %v5975_v13 = vpop.f32.mrf.mxu1  ;;  %9168 = vtanh.f32 %v6479_v54 }
 0x4a7   : > { %v9157_v40 = vpop.eup %9156  ;;  %v6676_v12 = vmul.f32 0.5, %v9155_v53  ;;  %v6480_v44 = vmul.f32 0.5, %v5970_v26  ;;  %v5864_v58 = vpop.f32.mrf.mxu0  ;;  %v6787_v36 = vadd.f32 0.5, %v6675_v23 }
 0x4a8   : > { %7243 = vst [vmem:[%s12262_s25 + $0x8] sm:$0xff] %v8092_v48  ;;  %v6682_v43 = vmul.f32 0.5, %v9157_v40  ;;  %v6486_v37 = vmul.f32 0.5, %v5974_v42  ;;  %v5976_v28 = vadd.f32 %v5975_v13, %v5863_v15  ;;  %v5865_v18 = vadd.f32 %v5864_v58, %v12308_v4  ;;  %v5977_v32 = vpop.f32.mrf.mxu1 }
 0x4a9   : > { %v9159_v9 = vpop.eup %9158  ;;  %v6788_v14 = vadd.f32 0.5, %v6676_v12  ;;  %9170 = vtanh.f32 %v6480_v44  ;;  %v5866_v0 = vpop.f32.mrf.mxu0 }
 0x4aa   : > { %v6683_v61 = vmul.f32 0.5, %v9159_v9  ;;  %9172 = vtanh.f32 %v6486_v37  ;;  %v6487_v11 = vmul.f32 0.5, %v5976_v28  ;;  %v5979_v31 = vpop.f32.mrf.mxu1  ;;  %v5978_v33 = vadd.f32 %v5977_v32, %v5865_v18 }
 0x4ab   : > { %v8096_v19 = vpack.c.bf16 %v6788_v14, %v6787_v36  ;;  %v5867_v49 = vadd.f32 %v5866_v0, %v12314_v5  ;;  %v5870_v17 = vpop.f32.mrf.mxu0  ;;  %v9161_v3 = vpop.eup %9160  ;;  %v6794_v7 = vadd.f32 0.5, %v6682_v43 }
 0x4ac   : > { %v6795_v34 = vadd.f32 0.5, %v6683_v61  ;;  %9174 = vtanh.f32 %v6487_v11  ;;  %v5871_v55 = vadd.f32 %v5870_v17, %v12308_v4  ;;  %v5983_v10 = vpop.f32.mrf.mxu1  ;;  %v6689_v41 = vmul.f32 0.5, %v9161_v3 }
 0x4ad   : > { %7248 = vst [vmem:[%s12262_s25 + $0x24] sm:$0xff] %v8096_v19  ;;  %v6493_v59 = vmul.f32 0.5, %v5978_v33  ;;  %v5980_v63 = vadd.f32 %v5979_v31, %v5867_v49  ;;  %v5872_v24 = vpop.f32.mrf.mxu0 }
 0x4ae   : > { %v9163_v25 = vpop.eup %9162  ;;  %v8100_v47 = vpack.c.bf16 %v6795_v34, %v6794_v7  ;;  %v5984_v39 = vadd.f32 %v5983_v10, %v5871_v55  ;;  %v5873_v38 = vadd.f32 %v5872_v24, %v12314_v5  ;;  %v5985_v60 = vpop.f32.mrf.mxu1  ;;  %v6801_v8 = vadd.f32 0.5, %v6689_v41 }
 0x4af   : > { %v9165_v45 = vpop.eup %9164  ;;  %v6690_v21 = vmul.f32 0.5, %v9163_v25  ;;  %9176 = vtanh.f32 %v6493_v59  ;;  %v6494_v51 = vmul.f32 0.5, %v5980_v63  ;;  %v5874_v16 = vpop.f32.mrf.mxu0 }
 0x4b0   : > { %7252 = vst [vmem:[%s12262_s25 + $0x40] sm:$0xff] %v8100_v47  ;;  %v6696_v29 = vmul.f32 0.5, %v9165_v45  ;;  %v6500_v50 = vmul.f32 0.5, %v5984_v39  ;;  %v5986_v57 = vadd.f32 %v5985_v60, %v5873_v38  ;;  %v5875_v56 = vadd.f32 %v5874_v16, %v12308_v4  ;;  %v5987_v6 = vpop.f32.mrf.mxu1 }
 0x4b1   : > { %v9167_v52 = vpop.eup %9166  ;;  %v6802_v2 = vadd.f32 0.5, %v6690_v21  ;;  %9178 = vtanh.f32 %v6494_v51  ;;  %v5876_v20 = vpop.f32.mrf.mxu0 }
 0x4b2   : > { %v6697_v27 = vmul.f32 0.5, %v9167_v52  ;;  %9180 = vtanh.f32 %v6500_v50  ;;  %v6501_v1 = vmul.f32 0.5, %v5986_v57  ;;  %v5989_v30 = vpop.f32.mrf.mxu1  ;;  %v5988_v22 = vadd.f32 %v5987_v6, %v5875_v56 }
 0x4b3   : > { %v8104_v35 = vpack.c.bf16 %v6802_v2, %v6801_v8  ;;  %v5877_v46 = vadd.f32 %v5876_v20, %v12314_v5  ;;  %v5880_v23 = vpop.f32.mrf.mxu0  ;;  %v9169_v54 = vpop.eup %9168  ;;  %v6808_v26 = vadd.f32 0.5, %v6696_v29 }
 0x4b4   : > { %v6809_v62 = vadd.f32 0.5, %v6697_v27  ;;  %9182 = vtanh.f32 %v6501_v1  ;;  %v5881_v53 = vadd.f32 %v5880_v23, %v12308_v4  ;;  %v5993_v48 = vpop.f32.mrf.mxu1  ;;  %v6703_v42 = vmul.f32 0.5, %v9169_v54 }
 0x4b5   : > { %7256 = vst [vmem:[%s12262_s25 + $0x5c] sm:$0xff] %v8104_v35  ;;  %v6507_v15 = vmul.f32 0.5, %v5988_v22  ;;  %v5990_v13 = vadd.f32 %v5989_v30, %v5877_v46  ;;  %v5882_v40 = vpop.f32.mrf.mxu0 }
 0x4b6   : > { %v9171_v12 = vpop.eup %9170  ;;  %v8108_v44 = vpack.c.bf16 %v6809_v62, %v6808_v26  ;;  %v5994_v58 = vadd.f32 %v5993_v48, %v5881_v53  ;;  %v5883_v43 = vadd.f32 %v5882_v40, %v12314_v5  ;;  %v5995_v37 = vpop.f32.mrf.mxu1  ;;  %v6815_v19 = vadd.f32 0.5, %v6703_v42 }
 0x4b7   : > { %v9173_v28 = vpop.eup %9172  ;;  %v6704_v18 = vmul.f32 0.5, %v9171_v12  ;;  %9184 = vtanh.f32 %v6507_v15  ;;  %v6508_v32 = vmul.f32 0.5, %v5990_v13  ;;  %v5884_v9 = vpop.f32.mrf.mxu0 }
 0x4b8   : > { %7260 = vst [vmem:[%s12262_s25 + $0x78] sm:$0xff] %v8108_v44  ;;  %v6710_v36 = vmul.f32 0.5, %v9173_v28  ;;  %v6514_v14 = vmul.f32 0.5, %v5994_v58  ;;  %v5996_v0 = vadd.f32 %v5995_v37, %v5883_v43  ;;  %v5885_v61 = vadd.f32 %v5884_v9, %v12308_v4  ;;  %v5997_v11 = vpop.f32.mrf.mxu1 }
 0x4b9   : > { %v9175_v31 = vpop.eup %9174  ;;  %v6816_v33 = vadd.f32 0.5, %v6704_v18  ;;  %9186 = vtanh.f32 %v6508_v32  ;;  %v5886_v49 = vpop.f32.mrf.mxu0  ;;  %v12564_v18 = vld [vmem:[#allocation8_spill] sm:$0xff] }
 0x4ba   : > { %v6711_v17 = vmul.f32 0.5, %v9175_v31  ;;  %9188 = vtanh.f32 %v6514_v14  ;;  %v6515_v3 = vmul.f32 0.5, %v5996_v0  ;;  %v5999_v7 = vpop.f32.mrf.mxu1  ;;  %v5998_v55 = vadd.f32 %v5997_v11, %v5885_v61 }
 0x4bb   : > { %v8112_v34 = vpack.c.bf16 %v6816_v33, %v6815_v19  ;;  %v5887_v10 = vadd.f32 %v5886_v49, %v12314_v5  ;;  %v5890_v41 = vpop.f32.mrf.mxu0  ;;  %v6822_v63 = vadd.f32 0.5, %v6710_v36  ;;  %v4401_v32 = vsub.s32 4, %v12564_v18 }
 0x4bc   : > { %v9177_v59 = vpop.eup %9176  ;;  %v6823_v24 = vadd.f32 0.5, %v6711_v17  ;;  %9190 = vtanh.f32 %v6515_v3  ;;  %v5891_v25 = vadd.f32 %v5890_v41, %v12308_v4  ;;  %v6003_v47 = vpop.f32.mrf.mxu1  ;;  %v6521_v38 = vmul.f32 0.5, %v5998_v55 }
 0x4bd   : > { %7264 = vst [vmem:[%s12262_s25 + $0x94] sm:$0xff] %v8112_v34  ;;  %v6717_v39 = vmul.f32 0.5, %v9177_v59  ;;  %v6000_v60 = vadd.f32 %v5999_v7, %v5887_v10  ;;  %v5892_v45 = vpop.f32.mrf.mxu0  ;;  %v4405_v49 = vsub.s32 5, %v12564_v18 }
 0x4be   : > { %v9179_v21 = vpop.eup %9178  ;;  %v8116_v51 = vpack.c.bf16 %v6823_v24, %v6822_v63  ;;  %v6004_v16 = vadd.f32 %v6003_v47, %v5891_v25  ;;  %v5893_v29 = vadd.f32 %v5892_v45, %v12314_v5  ;;  %v6005_v50 = vpop.f32.mrf.mxu1  ;;  %9192 = vtanh.f32 %v6521_v38  ;;  %v12369_v24 = vld [vmem:[%s12497_s9] sm:$0x7f] }
 0x4bf   : > { %v9181_v57 = vpop.eup %9180  ;;  %v6718_v56 = vmul.f32 0.5, %v9179_v21  ;;  %v6522_v6 = vmul.f32 0.5, %v6000_v60  ;;  %v5894_v52 = vpop.f32.mrf.mxu0  ;;  %v6829_v35 = vadd.f32 0.5, %v6717_v39  ;;  %v12372_v25 = vrot.slane %v12369_v24, %v4401_v32 }
 0x4c0   : > { %7268 = vst [vmem:[%s12262_s25 + $0xb0] sm:$0xff] %v8116_v51  ;;  %v6724_v8 = vmul.f32 0.5, %v9181_v57  ;;  %v6528_v2 = vmul.f32 0.5, %v6004_v16  ;;  %v6006_v20 = vadd.f32 %v6005_v50, %v5893_v29  ;;  %v5895_v27 = vadd.f32 %v5894_v52, %v12308_v4  ;;  %v6007_v1 = vpop.f32.mrf.mxu1 }
 0x4c1   : > { %v9183_v30 = vpop.eup %9182  ;;  %v6830_v22 = vadd.f32 0.5, %v6718_v56  ;;  %9194 = vtanh.f32 %v6522_v6  ;;  %v5896_v46 = vpop.f32.mrf.mxu0  ;;  %v12376_v50 = vrot.slane %v12369_v24, %v4405_v49 }
 0x4c2   : > { %v6725_v23 = vmul.f32 0.5, %v9183_v30  ;;  %9196 = vtanh.f32 %v6528_v2  ;;  %v6529_v54 = vmul.f32 0.5, %v6006_v20  ;;  %v6009_v26 = vpop.f32.mrf.mxu1  ;;  %v6008_v53 = vadd.f32 %v6007_v1, %v5895_v27 }
 0x4c3   : > { %v8120_v62 = vpack.c.bf16 %v6830_v22, %v6829_v35  ;;  %v5897_v48 = vadd.f32 %v5896_v46, %v12314_v5  ;;  %v5900_v42 = vpop.f32.mrf.mxu0  ;;  %v6836_v13 = vadd.f32 0.5, %v6724_v8 }
 0x4c4   : > { %v9185_v15 = vpop.eup %9184  ;;  %v6837_v40 = vadd.f32 0.5, %v6725_v23  ;;  %9198 = vtanh.f32 %v6529_v54  ;;  %v5901_v12 = vadd.f32 %v5900_v42, %v12308_v4  ;;  %v6013_v44 = vpop.f32.mrf.mxu1  ;;  %v6535_v43 = vmul.f32 0.5, %v6008_v53 }
 0x4c5   : > { %7272 = vst [vmem:[%s12262_s25 + $0xcc] sm:$0xff] %v8120_v62  ;;  %v6731_v58 = vmul.f32 0.5, %v9185_v15  ;;  %v6010_v37 = vadd.f32 %v6009_v26, %v5897_v48  ;;  %v5902_v28 = vpop.f32.mrf.mxu0 }
 0x4c6   : > { %v9187_v9 = vpop.eup %9186  ;;  %v8124_v36 = vpack.c.bf16 %v6837_v40, %v6836_v13  ;;  %v6014_v14 = vadd.f32 %v6013_v44, %v5901_v12  ;;  %v5903_v0 = vadd.f32 %v5902_v28, %v12314_v5  ;;  %v6015_v61 = vpop.f32.mrf.mxu1  ;;  %9200 = vtanh.f32 %v6535_v43 }
 0x4c7   : > { %v9189_v11 = vpop.eup %9188  ;;  %v6732_v31 = vmul.f32 0.5, %v9187_v9  ;;  %v6536_v19 = vmul.f32 0.5, %v6010_v37  ;;  %v5904_v33 = vpop.f32.mrf.mxu0  ;;  %v6843_v41 = vadd.f32 0.5, %v6731_v58 }
 0x4c8   : > { %7276 = vst [vmem:[%s12262_s25 + $0xe8] sm:$0xff] %v8124_v36  ;;  %v6738_v17 = vmul.f32 0.5, %v9189_v11  ;;  %v6542_v3 = vmul.f32 0.5, %v6014_v14  ;;  %v6016_v7 = vadd.f32 %v6015_v61, %v5903_v0  ;;  %v5905_v34 = vadd.f32 %v5904_v33, %v12308_v4  ;;  %v6017_v55 = vpop.f32.mrf.mxu1 }
 0x4c9   : > { %v9191_v10 = vpop.eup %9190  ;;  %v6844_v59 = vadd.f32 0.5, %v6732_v31  ;;  %9202 = vtanh.f32 %v6536_v19  ;;  %v5906_v63 = vpop.f32.mrf.mxu0 }
 0x4ca   : > { %v6739_v47 = vmul.f32 0.5, %v9191_v10  ;;  %9204 = vtanh.f32 %v6542_v3  ;;  %v6543_v39 = vmul.f32 0.5, %v6016_v7  ;;  %v6019_v38 = vpop.f32.mrf.mxu1  ;;  %v6018_v60 = vadd.f32 %v6017_v55, %v5905_v34 }
 0x4cb   : > { %v8128_v4 = vpack.c.bf16 %v6844_v59, %v6843_v41  ;;  %v5907_v45 = vadd.f32 %v5906_v63, %v12314_v5  ;;  %v9193_v21 = vpop.eup %9192  ;;  %v6850_v51 = vadd.f32 0.5, %v6738_v17 }
 0x4cc   : > { %v6851_v16 = vadd.f32 0.5, %v6739_v47  ;;  %9206 = vtanh.f32 %v6543_v39  ;;  %v6056_v29 = vpop.f32.mrf.mxu0  ;;  %v6745_v57 = vmul.f32 0.5, %v9193_v21  ;;  %v6549_v56 = vmul.f32 0.5, %v6018_v60 }
 0x4cd   : > { %7280 = vst [vmem:[%s12262_s25 + $0x104] sm:$0xff] %v8128_v4  ;;  %v6020_v6 = vadd.f32 %v6019_v38, %v5907_v45  ;;  %v6057_v52 = vadd.f32 %v6056_v29, %v12372_v25  ;;  %v6169_v8 = vpop.f32.mrf.mxu1 }
 0x4ce   : > { %v9195_v2 = vpop.eup %9194  ;;  %v8132_v20 = vpack.c.bf16 %v6851_v16, %v6850_v51  ;;  %v6058_v27 = vpop.f32.mrf.mxu0  ;;  %9208 = vtanh.f32 %v6549_v56  ;;  %v6857_v62 = vadd.f32 0.5, %v6745_v57 }
 0x4cf   : > { %v9197_v5 = vpop.eup %9196  ;;  %v6746_v1 = vmul.f32 0.5, %v9195_v2  ;;  %v6550_v30 = vmul.f32 0.5, %v6020_v6  ;;  %v6171_v35 = vpop.f32.mrf.mxu1  ;;  %v6170_v46 = vadd.f32 %v6169_v8, %v6057_v52  ;;  %v6059_v23 = vadd.f32 %v6058_v27, %v12376_v50 }
 0x4d0   : > { %7284 = vst [vmem:[%s12262_s25 + $0x120] sm:$0xff] %v8132_v20  ;;  %v6752_v22 = vmul.f32 0.5, %v9197_v5  ;;  %v6060_v54 = vpop.f32.mrf.mxu0 }
 0x4d1   : > { %v9199_v26 = vpop.eup %9198  ;;  %v6858_v53 = vadd.f32 0.5, %v6746_v1  ;;  %9210 = vtanh.f32 %v6550_v30  ;;  %v6061_v48 = vadd.f32 %v6060_v54, %v12372_v25  ;;  %v6173_v42 = vpop.f32.mrf.mxu1  ;;  %v6446_v13 = vmul.f32 0.5, %v6170_v46 }
 0x4d2   : > { %v6753_v15 = vmul.f32 0.5, %v9199_v26  ;;  %v6172_v40 = vadd.f32 %v6171_v35, %v6059_v23  ;;  %v6062_v12 = vpop.f32.mrf.mxu0  ;;  %v6864_v32 = vadd.f32 0.5, %v6752_v22 }
 0x4d3   : > { %v8136_v44 = vpack.c.bf16 %v6858_v53, %v6857_v62  ;;  %v6174_v58 = vadd.f32 %v6173_v42, %v6061_v48  ;;  %v6063_v43 = vadd.f32 %v6062_v12, %v12376_v50  ;;  %v6175_v37 = vpop.f32.mrf.mxu1  ;;  %v9201_v28 = vpop.eup %9200  ;;  %9212 = vtanh.f32 %v6446_v13 }
 0x4d4   : > { %v6865_v9 = vadd.f32 0.5, %v6753_v15  ;;  %v6447_v36 = vmul.f32 0.5, %v6172_v40  ;;  %v6066_v14 = vpop.f32.mrf.mxu0  ;;  %v6759_v0 = vmul.f32 0.5, %v9201_v28 }
 0x4d5   : > { %7288 = vst [vmem:[%s12262_s25 + $0x13c] sm:$0xff] %v8136_v44  ;;  %v6453_v61 = vmul.f32 0.5, %v6174_v58  ;;  %v6176_v11 = vadd.f32 %v6175_v37, %v6063_v43  ;;  %v6067_v31 = vadd.f32 %v6066_v14, %v12372_v25  ;;  %v6179_v19 = vpop.f32.mrf.mxu1 }
 0x4d6   : > { %v9203_v33 = vpop.eup %9202  ;;  %v8140_v49 = vpack.c.bf16 %v6865_v9, %v6864_v32  ;;  %9214 = vtanh.f32 %v6447_v36  ;;  %v6068_v17 = vpop.f32.mrf.mxu0  ;;  %v6871_v39 = vadd.f32 0.5, %v6759_v0 }
 0x4d7   : > { %v9205_v3 = vpop.eup %9204  ;;  %v6760_v7 = vmul.f32 0.5, %v9203_v33  ;;  %9216 = vtanh.f32 %v6453_v61  ;;  %v6454_v34 = vmul.f32 0.5, %v6176_v11  ;;  %v6181_v55 = vpop.f32.mrf.mxu1  ;;  %v6180_v41 = vadd.f32 %v6179_v19, %v6067_v31 }
 0x4d8   : > { %7292 = vst [vmem:[%s12262_s25 + $0x158] sm:$0xff] %v8140_v49  ;;  %v6766_v10 = vmul.f32 0.5, %v9205_v3  ;;  %v6069_v59 = vadd.f32 %v6068_v17, %v12376_v50  ;;  %v6070_v63 = vpop.f32.mrf.mxu0 }
 0x4d9   : > { %v9207_v47 = vpop.eup %9206  ;;  %v6872_v38 = vadd.f32 0.5, %v6760_v7  ;;  %9218 = vtanh.f32 %v6454_v34  ;;  %v6071_v4 = vadd.f32 %v6070_v63, %v12372_v25  ;;  %v6183_v60 = vpop.f32.mrf.mxu1  ;;  %v6460_v21 = vmul.f32 0.5, %v6180_v41 }
 0x4da   : > { %v6767_v45 = vmul.f32 0.5, %v9207_v47  ;;  %v6182_v51 = vadd.f32 %v6181_v55, %v6069_v59  ;;  %v6072_v16 = vpop.f32.mrf.mxu0  ;;  %v6878_v8 = vadd.f32 0.5, %v6766_v10 }
 0x4db   : > { %v8144_v29 = vpack.c.bf16 %v6872_v38, %v6871_v39  ;;  %v6184_v57 = vadd.f32 %v6183_v60, %v6071_v4  ;;  %v6073_v56 = vadd.f32 %v6072_v16, %v12376_v50  ;;  %v6185_v6 = vpop.f32.mrf.mxu1  ;;  %v9209_v52 = vpop.eup %9208  ;;  %9220 = vtanh.f32 %v6460_v21 }
 0x4dc   : > { %v6879_v2 = vadd.f32 0.5, %v6767_v45  ;;  %v6461_v20 = vmul.f32 0.5, %v6182_v51  ;;  %v6076_v27 = vpop.f32.mrf.mxu0  ;;  %v6773_v5 = vmul.f32 0.5, %v9209_v52 }
 0x4dd   : > { %7296 = vst [vmem:[%s12262_s25 + $0x174] sm:$0xff] %v8144_v29  ;;  %v6467_v1 = vmul.f32 0.5, %v6184_v57  ;;  %v6186_v30 = vadd.f32 %v6185_v6, %v6073_v56  ;;  %v6077_v35 = vadd.f32 %v6076_v27, %v12372_v25  ;;  %v6189_v22 = vpop.f32.mrf.mxu1 }
 0x4de   : > { %v9211_v46 = vpop.eup %9210  ;;  %v8148_v23 = vpack.c.bf16 %v6879_v2, %v6878_v8  ;;  %9222 = vtanh.f32 %v6461_v20  ;;  %v6078_v54 = vpop.f32.mrf.mxu0  ;;  %v6885_v40 = vadd.f32 0.5, %v6773_v5 }
 0x4df   : > { %v6774_v26 = vmul.f32 0.5, %v9211_v46  ;;  %9224 = vtanh.f32 %v6467_v1  ;;  %v6468_v62 = vmul.f32 0.5, %v6186_v30  ;;  %v6191_v53 = vpop.f32.mrf.mxu1  ;;  %v6190_v48 = vadd.f32 %v6189_v22, %v6077_v35 }
 0x4e0   : > { %7300 = vst [vmem:[%s12262_s25 + $0x190] sm:$0xff] %v8148_v23  ;;  %v6079_v42 = vadd.f32 %v6078_v54, %v12376_v50  ;;  %v6080_v15 = vpop.f32.mrf.mxu0  ;;  %v9213_v13 = vpop.eup %9212 }
 0x4e1   : > { %v6886_v12 = vadd.f32 0.5, %v6774_v26  ;;  %9226 = vtanh.f32 %v6468_v62  ;;  %v6081_v44 = vadd.f32 %v6080_v15, %v12372_v25  ;;  %v6193_v58 = vpop.f32.mrf.mxu1  ;;  %v6670_v43 = vmul.f32 0.5, %v9213_v13 }
 0x4e2   : > { %v6474_v37 = vmul.f32 0.5, %v6190_v48  ;;  %v6192_v28 = vadd.f32 %v6191_v53, %v6079_v42  ;;  %v6082_v32 = vpop.f32.mrf.mxu0 }
 0x4e3   : > { %v9215_v9 = vpop.eup %9214  ;;  %v8152_v36 = vpack.c.bf16 %v6886_v12, %v6885_v40  ;;  %v6194_v14 = vadd.f32 %v6193_v58, %v6081_v44  ;;  %v6083_v0 = vadd.f32 %v6082_v32, %v12376_v50  ;;  %v6195_v61 = vpop.f32.mrf.mxu1  ;;  %v6782_v10 = vadd.f32 0.5, %v6670_v43 }
 0x4e4   : > { %v9217_v11 = vpop.eup %9216  ;;  %v6671_v31 = vmul.f32 0.5, %v9215_v9  ;;  %9228 = vtanh.f32 %v6474_v37  ;;  %v6475_v19 = vmul.f32 0.5, %v6192_v28  ;;  %v6086_v33 = vpop.f32.mrf.mxu0 }
 0x4e5   : > { %7304 = vst [vmem:[%s12262_s25 + $0x1ac] sm:$0xff] %v8152_v36  ;;  %v6677_v49 = vmul.f32 0.5, %v9217_v11  ;;  %v6481_v17 = vmul.f32 0.5, %v6194_v14  ;;  %v6196_v3 = vadd.f32 %v6195_v61, %v6083_v0  ;;  %v6087_v7 = vadd.f32 %v6086_v33, %v12372_v25  ;;  %v6199_v34 = vpop.f32.mrf.mxu1 }
 0x4e6   : > { %v9219_v55 = vpop.eup %9218  ;;  %v6783_v41 = vadd.f32 0.5, %v6671_v31  ;;  %9230 = vtanh.f32 %v6475_v19  ;;  %v6088_v59 = vpop.f32.mrf.mxu0 }
 0x4e7   : > { %v6678_v63 = vmul.f32 0.5, %v9219_v55  ;;  %9232 = vtanh.f32 %v6481_v17  ;;  %v6482_v47 = vmul.f32 0.5, %v6196_v3  ;;  %v6201_v39 = vpop.f32.mrf.mxu1  ;;  %v6200_v4 = vadd.f32 %v6199_v34, %v6087_v7 }
 0x4e8   : > { %v8093_v38 = vpack.c.bf16 %v6783_v41, %v6782_v10  ;;  %v6089_v60 = vadd.f32 %v6088_v59, %v12376_v50  ;;  %v6090_v45 = vpop.f32.mrf.mxu0  ;;  %v9221_v21 = vpop.eup %9220  ;;  %v6789_v51 = vadd.f32 0.5, %v6677_v49 }
 0x4e9   : > { %v6790_v16 = vadd.f32 0.5, %v6678_v63  ;;  %9234 = vtanh.f32 %v6482_v47  ;;  %v6091_v29 = vadd.f32 %v6090_v45, %v12372_v25  ;;  %v6203_v57 = vpop.f32.mrf.mxu1  ;;  %v6684_v56 = vmul.f32 0.5, %v9221_v21 }
 0x4ea   : > { %7244 = vst [vmem:[%s12262_s25 + $0x10] sm:$0xff] %v8093_v38  ;;  %v6488_v6 = vmul.f32 0.5, %v6200_v4  ;;  %v6202_v52 = vadd.f32 %v6201_v39, %v6089_v60  ;;  %v6092_v8 = vpop.f32.mrf.mxu0 }
 0x4eb   : > { %v9223_v2 = vpop.eup %9222  ;;  %v8097_v20 = vpack.c.bf16 %v6790_v16, %v6789_v51  ;;  %v6204_v27 = vadd.f32 %v6203_v57, %v6091_v29  ;;  %v6093_v5 = vadd.f32 %v6092_v8, %v12376_v50  ;;  %v6205_v1 = vpop.f32.mrf.mxu1  ;;  %v6796_v42 = vadd.f32 0.5, %v6684_v56 }
 0x4ec   : > { %v9225_v30 = vpop.eup %9224  ;;  %v6685_v35 = vmul.f32 0.5, %v9223_v2  ;;  %9236 = vtanh.f32 %v6488_v6  ;;  %v6489_v22 = vmul.f32 0.5, %v6202_v52  ;;  %v6096_v46 = vpop.f32.mrf.mxu0 }
 0x4ed   : > { %7249 = vst [vmem:[%s12262_s25 + $0x2c] sm:$0xff] %v8097_v20  ;;  %v6691_v23 = vmul.f32 0.5, %v9225_v30  ;;  %v6495_v54 = vmul.f32 0.5, %v6204_v27  ;;  %v6206_v26 = vadd.f32 %v6205_v1, %v6093_v5  ;;  %v6097_v62 = vadd.f32 %v6096_v46, %v12372_v25  ;;  %v6209_v53 = vpop.f32.mrf.mxu1 }
 0x4ee   : > { %v9227_v48 = vpop.eup %9226  ;;  %v6797_v15 = vadd.f32 0.5, %v6685_v35  ;;  %9238 = vtanh.f32 %v6489_v22  ;;  %v6098_v13 = vpop.f32.mrf.mxu0 }
 0x4ef   : > { %v6692_v40 = vmul.f32 0.5, %v9227_v48  ;;  %9240 = vtanh.f32 %v6495_v54  ;;  %v6496_v12 = vmul.f32 0.5, %v6206_v26  ;;  %v6211_v44 = vpop.f32.mrf.mxu1  ;;  %v6210_v43 = vadd.f32 %v6209_v53, %v6097_v62 }
 0x4f0   : > { %v8101_v58 = vpack.c.bf16 %v6797_v15, %v6796_v42  ;;  %v6099_v37 = vadd.f32 %v6098_v13, %v12376_v50  ;;  %v6100_v28 = vpop.f32.mrf.mxu0  ;;  %v6803_v9 = vadd.f32 0.5, %v6691_v23 }
 0x4f1   : > { %v9229_v32 = vpop.eup %9228  ;;  %v6804_v36 = vadd.f32 0.5, %v6692_v40  ;;  %9242 = vtanh.f32 %v6496_v12  ;;  %v6101_v14 = vadd.f32 %v6100_v28, %v12372_v25  ;;  %v6213_v0 = vpop.f32.mrf.mxu1  ;;  %v6502_v11 = vmul.f32 0.5, %v6210_v43 }
 0x4f2   : > { %7253 = vst [vmem:[%s12262_s25 + $0x48] sm:$0xff] %v8101_v58  ;;  %v6698_v61 = vmul.f32 0.5, %v9229_v32  ;;  %v6212_v31 = vadd.f32 %v6211_v44, %v6099_v37  ;;  %v6102_v19 = vpop.f32.mrf.mxu0 }
 0x4f3   : > { %v9231_v33 = vpop.eup %9230  ;;  %v8105_v49 = vpack.c.bf16 %v6804_v36, %v6803_v9  ;;  %v6214_v17 = vadd.f32 %v6213_v0, %v6101_v14  ;;  %v6103_v3 = vadd.f32 %v6102_v19, %v12376_v50  ;;  %v6215_v7 = vpop.f32.mrf.mxu1  ;;  %9244 = vtanh.f32 %v6502_v11 }
 0x4f4   : > { %v9233_v34 = vpop.eup %9232  ;;  %v6699_v55 = vmul.f32 0.5, %v9231_v33  ;;  %v6503_v10 = vmul.f32 0.5, %v6212_v31  ;;  %v6106_v41 = vpop.f32.mrf.mxu0  ;;  %v6810_v60 = vadd.f32 0.5, %v6698_v61 }
 0x4f5   : > { %7257 = vst [vmem:[%s12262_s25 + $0x64] sm:$0xff] %v8105_v49  ;;  %v6705_v59 = vmul.f32 0.5, %v9233_v34  ;;  %v6509_v63 = vmul.f32 0.5, %v6214_v17  ;;  %v6216_v47 = vadd.f32 %v6215_v7, %v6103_v3  ;;  %v6107_v39 = vadd.f32 %v6106_v41, %v12372_v25  ;;  %v6219_v38 = vpop.f32.mrf.mxu1 }
 0x4f6   : > { %v9235_v4 = vpop.eup %9234  ;;  %v6811_v45 = vadd.f32 0.5, %v6699_v55  ;;  %9246 = vtanh.f32 %v6503_v10  ;;  %v6108_v21 = vpop.f32.mrf.mxu0 }
 0x4f7   : > { %v6706_v51 = vmul.f32 0.5, %v9235_v4  ;;  %9248 = vtanh.f32 %v6509_v63  ;;  %v6510_v16 = vmul.f32 0.5, %v6216_v47  ;;  %v6221_v29 = vpop.f32.mrf.mxu1  ;;  %v6220_v56 = vadd.f32 %v6219_v38, %v6107_v39 }
 0x4f8   : > { %v8109_v57 = vpack.c.bf16 %v6811_v45, %v6810_v60  ;;  %v6109_v6 = vadd.f32 %v6108_v21, %v12376_v50  ;;  %v6110_v52 = vpop.f32.mrf.mxu0  ;;  %v6817_v2 = vadd.f32 0.5, %v6705_v59 }
 0x4f9   : > { %v9237_v8 = vpop.eup %9236  ;;  %v6818_v20 = vadd.f32 0.5, %v6706_v51  ;;  %9250 = vtanh.f32 %v6510_v16  ;;  %v6111_v27 = vadd.f32 %v6110_v52, %v12372_v25  ;;  %v6223_v5 = vpop.f32.mrf.mxu1  ;;  %v6516_v30 = vmul.f32 0.5, %v6220_v56 }
 0x4fa   : > { %7261 = vst [vmem:[%s12262_s25 + $0x80] sm:$0xff] %v8109_v57  ;;  %v6712_v1 = vmul.f32 0.5, %v9237_v8  ;;  %v6222_v35 = vadd.f32 %v6221_v29, %v6109_v6  ;;  %v6112_v22 = vpop.f32.mrf.mxu0 }
 0x4fb   : > { %v9239_v46 = vpop.eup %9238  ;;  %v8113_v23 = vpack.c.bf16 %v6818_v20, %v6817_v2  ;;  %v6224_v54 = vadd.f32 %v6223_v5, %v6111_v27  ;;  %v6113_v26 = vadd.f32 %v6112_v22, %v12376_v50  ;;  %v6225_v62 = vpop.f32.mrf.mxu1  ;;  %9252 = vtanh.f32 %v6516_v30 }
 0x4fc   : > { %v9241_v53 = vpop.eup %9240  ;;  %v6713_v48 = vmul.f32 0.5, %v9239_v46  ;;  %v6517_v42 = vmul.f32 0.5, %v6222_v35  ;;  %v6116_v15 = vpop.f32.mrf.mxu0  ;;  %v6824_v37 = vadd.f32 0.5, %v6712_v1 }
 0x4fd   : > { %7265 = vst [vmem:[%s12262_s25 + $0x9c] sm:$0xff] %v8113_v23  ;;  %v6719_v13 = vmul.f32 0.5, %v9241_v53  ;;  %v6523_v40 = vmul.f32 0.5, %v6224_v54  ;;  %v6226_v12 = vadd.f32 %v6225_v62, %v6113_v26  ;;  %v6117_v44 = vadd.f32 %v6116_v15, %v12372_v25  ;;  %v6229_v58 = vpop.f32.mrf.mxu1 }
 0x4fe   : > { %v9243_v43 = vpop.eup %9242  ;;  %v6825_v28 = vadd.f32 0.5, %v6713_v48  ;;  %9254 = vtanh.f32 %v6517_v42  ;;  %v6118_v32 = vpop.f32.mrf.mxu0  ;;  %v4409_v15 = vsub.s32 6, %v12564_v18 }
 0x4ff   : > { %v6720_v9 = vmul.f32 0.5, %v9243_v43  ;;  %9256 = vtanh.f32 %v6523_v40  ;;  %v6524_v36 = vmul.f32 0.5, %v6226_v12  ;;  %v6231_v14 = vpop.f32.mrf.mxu1  ;;  %v6230_v61 = vadd.f32 %v6229_v58, %v6117_v44 }
 0x500   : > { %v8117_v0 = vpack.c.bf16 %v6825_v28, %v6824_v37  ;;  %v6119_v11 = vadd.f32 %v6118_v32, %v12376_v50  ;;  %v6120_v31 = vpop.f32.mrf.mxu0  ;;  %v9245_v19 = vpop.eup %9244  ;;  %v6831_v33 = vadd.f32 0.5, %v6719_v13  ;;  %v12429_v18 = vrot.slane %v12369_v24, %v4409_v15 }
 0x501   : > { %v6832_v49 = vadd.f32 0.5, %v6720_v9  ;;  %9258 = vtanh.f32 %v6524_v36  ;;  %v6121_v17 = vadd.f32 %v6120_v31, %v12372_v25  ;;  %v6233_v3 = vpop.f32.mrf.mxu1  ;;  %v6726_v7 = vmul.f32 0.5, %v9245_v19 }
 0x502   : > { %7269 = vst [vmem:[%s12262_s25 + $0xb8] sm:$0xff] %v8117_v0  ;;  %v6530_v34 = vmul.f32 0.5, %v6230_v61  ;;  %v6232_v55 = vadd.f32 %v6231_v14, %v6119_v11  ;;  %v6122_v10 = vpop.f32.mrf.mxu0 }
 0x503   : > { %v9247_v41 = vpop.eup %9246  ;;  %v8121_v59 = vpack.c.bf16 %v6832_v49, %v6831_v33  ;;  %v6234_v63 = vadd.f32 %v6233_v3, %v6121_v17  ;;  %v6123_v47 = vadd.f32 %v6122_v10, %v12376_v50  ;;  %v6235_v39 = vpop.f32.mrf.mxu1  ;;  %v6838_v6 = vadd.f32 0.5, %v6726_v7 }
 0x504   : > { %v9249_v38 = vpop.eup %9248  ;;  %v6727_v4 = vmul.f32 0.5, %v9247_v41  ;;  %9260 = vtanh.f32 %v6530_v34  ;;  %v6531_v60 = vmul.f32 0.5, %v6232_v55  ;;  %v6126_v45 = vpop.f32.mrf.mxu0 }
 0x505   : > { %7273 = vst [vmem:[%s12262_s25 + $0xd4] sm:$0xff] %v8121_v59  ;;  %v6733_v21 = vmul.f32 0.5, %v9249_v38  ;;  %v6537_v51 = vmul.f32 0.5, %v6234_v63  ;;  %v6236_v16 = vadd.f32 %v6235_v39, %v6123_v47  ;;  %v6127_v29 = vadd.f32 %v6126_v45, %v12372_v25  ;;  %v6239_v57 = vpop.f32.mrf.mxu1 }
 0x506   : > { %v9251_v56 = vpop.eup %9250  ;;  %v6839_v52 = vadd.f32 0.5, %v6727_v4  ;;  %9262 = vtanh.f32 %v6531_v60  ;;  %v6128_v8 = vpop.f32.mrf.mxu0 }
 0x507   : > { %v6734_v2 = vmul.f32 0.5, %v9251_v56  ;;  %9264 = vtanh.f32 %v6537_v51  ;;  %v6538_v20 = vmul.f32 0.5, %v6236_v16  ;;  %v6241_v27 = vpop.f32.mrf.mxu1  ;;  %v6240_v1 = vadd.f32 %v6239_v57, %v6127_v29 }
 0x508   : > { %v8125_v5 = vpack.c.bf16 %v6839_v52, %v6838_v6  ;;  %v6129_v30 = vadd.f32 %v6128_v8, %v12376_v50  ;;  %v6130_v35 = vpop.f32.mrf.mxu0  ;;  %v9253_v22 = vpop.eup %9252  ;;  %v6845_v46 = vadd.f32 0.5, %v6733_v21 }
 0x509   : > { %v6846_v23 = vadd.f32 0.5, %v6734_v2  ;;  %9266 = vtanh.f32 %v6538_v20  ;;  %v6131_v54 = vadd.f32 %v6130_v35, %v12372_v25  ;;  %v6243_v26 = vpop.f32.mrf.mxu1  ;;  %v6740_v62 = vmul.f32 0.5, %v9253_v22 }
 0x50a   : > { %7277 = vst [vmem:[%s12262_s25 + $0xf0] sm:$0xff] %v8125_v5  ;;  %v6544_v53 = vmul.f32 0.5, %v6240_v1  ;;  %v6242_v48 = vadd.f32 %v6241_v27, %v6129_v30  ;;  %v6132_v42 = vpop.f32.mrf.mxu0 }
 0x50b   : > { %v9255_v13 = vpop.eup %9254  ;;  %v8129_v40 = vpack.c.bf16 %v6846_v23, %v6845_v46  ;;  %v6244_v12 = vadd.f32 %v6243_v26, %v6131_v54  ;;  %v6133_v44 = vadd.f32 %v6132_v42, %v12376_v50  ;;  %v6245_v58 = vpop.f32.mrf.mxu1  ;;  %v6852_v61 = vadd.f32 0.5, %v6740_v62 }
 0x50c   : > { %v9257_v43 = vpop.eup %9256  ;;  %v6741_v37 = vmul.f32 0.5, %v9255_v13  ;;  %9268 = vtanh.f32 %v6544_v53  ;;  %v6545_v28 = vmul.f32 0.5, %v6242_v48  ;;  %v8171_v25 = vpop.f32.mrf.mxu0 }
 0x50d   : > { %7281 = vst [vmem:[%s12262_s25 + $0x10c] sm:$0xff] %v8129_v40  ;;  %v6747_v32 = vmul.f32 0.5, %v9257_v43  ;;  %v6551_v9 = vmul.f32 0.5, %v6244_v12  ;;  %v6246_v36 = vadd.f32 %v6245_v58, %v6133_v44  ;;  %v8235_v14 = vpop.f32.mrf.mxu1 }
 0x50e   : > { %v9259_v0 = vpop.eup %9258  ;;  %v6853_v11 = vadd.f32 0.5, %v6741_v37  ;;  %9270 = vtanh.f32 %v6545_v28  ;;  %v8172_v50 = vpop.f32.mrf.mxu0 }
 0x50f   : > { %v6748_v31 = vmul.f32 0.5, %v9259_v0  ;;  %9272 = vtanh.f32 %v6551_v9  ;;  %v6552_v19 = vmul.f32 0.5, %v6246_v36  ;;  %v8236_v33 = vpop.f32.mrf.mxu1  ;;  %v8173_v17 = vadd.f32 %v8172_v50, %v8171_v25 }
 0x510   : > { %v8133_v49 = vpack.c.bf16 %v6853_v11, %v6852_v61  ;;  %v8174_v3 = vpop.f32.mrf.mxu0  ;;  %v6859_v34 = vadd.f32 0.5, %v6747_v32  ;;  %v8237_v24 = vadd.f32 %v8236_v33, %v8235_v14 }
 0x511   : > { %v9261_v7 = vpop.eup %9260  ;;  %v6860_v55 = vadd.f32 0.5, %v6748_v31  ;;  %9274 = vtanh.f32 %v6552_v19  ;;  %v8238_v10 = vpop.f32.mrf.mxu1  ;;  %v6283_v59 = vadd.f32 %v8173_v17, %v12429_v18 }
 0x512   : > { %7285 = vst [vmem:[%s12262_s25 + $0x128] sm:$0xff] %v8133_v49  ;;  %v6754_v41 = vmul.f32 0.5, %v9261_v7  ;;  %v8175_v63 = vpop.f32.mrf.mxu0 }
 0x513   : > { %v9263_v47 = vpop.eup %9262  ;;  %v8137_v39 = vpack.c.bf16 %v6860_v55, %v6859_v34  ;;  %v8176_v38 = vadd.f32 %v8175_v63, %v8174_v3  ;;  %v8239_v4 = vpop.f32.mrf.mxu1  ;;  %v6380_v21 = vadd.f32 %v8237_v24, %v6283_v59 }
 0x514   : > { %v9265_v60 = vpop.eup %9264  ;;  %v6755_v45 = vmul.f32 0.5, %v9263_v47  ;;  %v8177_v51 = vpop.f32.mrf.mxu0  ;;  %v8240_v57 = vadd.f32 %v8239_v4, %v8238_v10  ;;  %v6866_v52 = vadd.f32 0.5, %v6754_v41 }
 0x515   : > { %7289 = vst [vmem:[%s12262_s25 + $0x144] sm:$0xff] %v8137_v39  ;;  %v6761_v16 = vmul.f32 0.5, %v9265_v60  ;;  %v6286_v29 = vadd.f32 %v8176_v38, %v12429_v18  ;;  %v8241_v56 = vpop.f32.mrf.mxu1  ;;  %v6448_v2 = vmul.f32 0.5, %v6380_v21 }
 0x516   : > { %v9267_v6 = vpop.eup %9266  ;;  %v6867_v8 = vadd.f32 0.5, %v6755_v45  ;;  %v8178_v20 = vpop.f32.mrf.mxu0 }
 0x517   : > { %v6762_v27 = vmul.f32 0.5, %v9267_v6  ;;  %v6383_v5 = vadd.f32 %v8240_v57, %v6286_v29  ;;  %v8179_v1 = vadd.f32 %v8178_v20, %v8177_v51  ;;  %v8242_v30 = vpop.f32.mrf.mxu1  ;;  %v6873_v22 = vadd.f32 0.5, %v6761_v16 }
 0x518   : > { %v8141_v35 = vpack.c.bf16 %v6867_v8, %v6866_v52  ;;  %9276 = vtanh.f32 %v6448_v2  ;;  %v8180_v46 = vpop.f32.mrf.mxu0  ;;  %v8243_v53 = vadd.f32 %v8242_v30, %v8241_v56 }
 0x519   : > { %v9269_v23 = vpop.eup %9268  ;;  %v6874_v54 = vadd.f32 0.5, %v6762_v27  ;;  %v6455_v26 = vmul.f32 0.5, %v6383_v5  ;;  %v6291_v62 = vadd.f32 %v8179_v1, %v12429_v18  ;;  %v8244_v48 = vpop.f32.mrf.mxu1 }
 0x51a   : > { %7293 = vst [vmem:[%s12262_s25 + $0x160] sm:$0xff] %v8141_v35  ;;  %v6768_v42 = vmul.f32 0.5, %v9269_v23  ;;  %v8181_v15 = vpop.f32.mrf.mxu0 }
 0x51b   : > { %v9271_v13 = vpop.eup %9270  ;;  %v8145_v40 = vpack.c.bf16 %v6874_v54, %v6873_v22  ;;  %9278 = vtanh.f32 %v6455_v26  ;;  %v6388_v12 = vadd.f32 %v8243_v53, %v6291_v62  ;;  %v8182_v44 = vadd.f32 %v8181_v15, %v8180_v46  ;;  %v8245_v58 = vpop.f32.mrf.mxu1 }
 0x51c   : > { %v9273_v43 = vpop.eup %9272  ;;  %v6769_v37 = vmul.f32 0.5, %v9271_v13  ;;  %v8183_v28 = vpop.f32.mrf.mxu0  ;;  %v8246_v36 = vadd.f32 %v8245_v58, %v8244_v48  ;;  %v6880_v61 = vadd.f32 0.5, %v6768_v42 }
 0x51d   : > { %7297 = vst [vmem:[%s12262_s25 + $0x17c] sm:$0xff] %v8145_v40  ;;  %v6775_v25 = vmul.f32 0.5, %v9273_v43  ;;  %v6462_v32 = vmul.f32 0.5, %v6388_v12  ;;  %v6294_v9 = vadd.f32 %v8182_v44, %v12429_v18  ;;  %v8247_v14 = vpop.f32.mrf.mxu1 }
 0x51e   : > { %v9275_v0 = vpop.eup %9274  ;;  %v6881_v11 = vadd.f32 0.5, %v6769_v37  ;;  %v8184_v50 = vpop.f32.mrf.mxu0 }
 0x51f   : > { %v6776_v31 = vmul.f32 0.5, %v9275_v0  ;;  %9280 = vtanh.f32 %v6462_v32  ;;  %v6391_v19 = vadd.f32 %v8246_v36, %v6294_v9  ;;  %v8248_v33 = vpop.f32.mrf.mxu1  ;;  %v8185_v17 = vadd.f32 %v8184_v50, %v8183_v28 }
 0x520   : > { %v8149_v49 = vpack.c.bf16 %v6881_v11, %v6880_v61  ;;  %v8186_v3 = vpop.f32.mrf.mxu0  ;;  %v6887_v7 = vadd.f32 0.5, %v6775_v25  ;;  %v8249_v59 = vadd.f32 %v8248_v33, %v8247_v14 }
 0x521   : > { %v6888_v34 = vadd.f32 0.5, %v6776_v31  ;;  %v6469_v55 = vmul.f32 0.5, %v6391_v19  ;;  %v8250_v10 = vpop.f32.mrf.mxu1  ;;  %v6299_v41 = vadd.f32 %v8185_v17, %v12429_v18 }
 0x522   : > { %7301 = vst [vmem:[%s12262_s25 + $0x198] sm:$0xff] %v8149_v49  ;;  %v8187_v24 = vpop.f32.mrf.mxu0 }
 0x523   : > { %v8153_v63 = vpack.c.bf16 %v6888_v34, %v6887_v7  ;;  %9282 = vtanh.f32 %v6469_v55  ;;  %v8188_v47 = vadd.f32 %v8187_v24, %v8186_v3  ;;  %v8251_v39 = vpop.f32.mrf.mxu1  ;;  %v6396_v38 = vadd.f32 %v8249_v59, %v6299_v41 }
 0x524   : > { %v8189_v4 = vpop.f32.mrf.mxu0  ;;  %v8252_v21 = vadd.f32 %v8251_v39, %v8250_v10 }
 0x525   : > { %v9277_v60 = vpop.eup %9276  ;;  %7305 = vst [vmem:[%s12262_s25 + $0x1b4] sm:$0xff] %v8153_v63  ;;  %v6302_v45 = vadd.f32 %v8188_v47, %v12429_v18  ;;  %v8253_v51 = vpop.f32.mrf.mxu1  ;;  %v6476_v29 = vmul.f32 0.5, %v6396_v38 }
 0x526   : > { %v6672_v16 = vmul.f32 0.5, %v9277_v60  ;;  %v8190_v57 = vpop.f32.mrf.mxu0 }
 0x527   : > { %v6399_v56 = vadd.f32 %v8252_v21, %v6302_v45  ;;  %v8191_v6 = vadd.f32 %v8190_v57, %v8189_v4  ;;  %v8254_v52 = vpop.f32.mrf.mxu1  ;;  %9284 = vtanh.f32 %v6476_v29 }
 0x528   : > { %v9279_v8 = vpop.eup %9278  ;;  %v6784_v2 = vadd.f32 0.5, %v6672_v16  ;;  %v8192_v20 = vpop.f32.mrf.mxu0  ;;  %v8255_v30 = vadd.f32 %v8254_v52, %v8253_v51 }
 0x529   : > { %v6679_v27 = vmul.f32 0.5, %v9279_v8  ;;  %v6483_v5 = vmul.f32 0.5, %v6399_v56  ;;  %v6307_v1 = vadd.f32 %v8191_v6, %v12429_v18  ;;  %v8256_v35 = vpop.f32.mrf.mxu1 }
 0x52a   : > { %v8094_v22 = vpack.c.bf16 %v6784_v2, %v6784_v2  ;;  %v8193_v46 = vpop.f32.mrf.mxu0 }
 0x52b   : > { %v6791_v23 = vadd.f32 0.5, %v6679_v27  ;;  %9286 = vtanh.f32 %v6483_v5  ;;  %v6404_v54 = vadd.f32 %v8255_v30, %v6307_v1  ;;  %v8194_v26 = vadd.f32 %v8193_v46, %v8192_v20  ;;  %v8257_v62 = vpop.f32.mrf.mxu1 }
 0x52c   : > { %v9281_v53 = vpop.eup %9280  ;;  %7246 = vst.msk [vmem:[%s12262_s25 + $0x18] sm:$0xf] %vm7245_vm2, %v8094_v22  ;;  %v8258_v48 = vadd.f32 %v8257_v62, %v8256_v35  ;;  %v8195_v42 = vpop.f32.mrf.mxu0 }
 0x52d   : > { %v8098_v15 = vpack.c.bf16 %v6791_v23, %v6791_v23  ;;  %v6686_v13 = vmul.f32 0.5, %v9281_v53  ;;  %v6490_v40 = vmul.f32 0.5, %v6404_v54  ;;  %v6310_v12 = vadd.f32 %v8194_v26, %v12429_v18  ;;  %v8259_v44 = vpop.f32.mrf.mxu1 }
 0x52e   : > { %v8196_v58 = vpop.f32.mrf.mxu0 }
 0x52f   : > { %7250 = vst.msk [vmem:[%s12262_s25 + $0x34] sm:$0xf] %vm7245_vm2, %v8098_v15  ;;  %v6798_v43 = vadd.f32 0.5, %v6686_v13  ;;  %9288 = vtanh.f32 %v6490_v40  ;;  %v6407_v37 = vadd.f32 %v8258_v48, %v6310_v12  ;;  %v8197_v28 = vadd.f32 %v8196_v58, %v8195_v42  ;;  %v8260_v25 = vpop.f32.mrf.mxu1 }
 0x530   : > { %v9283_v32 = vpop.eup %9282  ;;  %v8261_v9 = vadd.f32 %v8260_v25, %v8259_v44  ;;  %v8198_v36 = vpop.f32.mrf.mxu0 }
 0x531   : > { %v8102_v14 = vpack.c.bf16 %v6798_v43, %v6798_v43  ;;  %v6693_v0 = vmul.f32 0.5, %v9283_v32  ;;  %v6497_v61 = vmul.f32 0.5, %v6407_v37  ;;  %v6315_v11 = vadd.f32 %v8197_v28, %v12429_v18  ;;  %v8262_v50 = vpop.f32.mrf.mxu1 }
 0x532   : > { %v8199_v31 = vpop.f32.mrf.mxu0 }
 0x533   : > { %7254 = vst.msk [vmem:[%s12262_s25 + $0x50] sm:$0xf] %vm7245_vm2, %v8102_v14  ;;  %v6805_v19 = vadd.f32 0.5, %v6693_v0  ;;  %9290 = vtanh.f32 %v6497_v61  ;;  %v6412_v33 = vadd.f32 %v8261_v9, %v6315_v11  ;;  %v8200_v49 = vadd.f32 %v8199_v31, %v8198_v36  ;;  %v8263_v17 = vpop.f32.mrf.mxu1 }
 0x534   : > { %v8201_v3 = vpop.f32.mrf.mxu0  ;;  %v9285_v7 = vpop.eup %9284  ;;  %v8264_v41 = vadd.f32 %v8263_v17, %v8262_v50 }
 0x535   : > { %v8106_v34 = vpack.c.bf16 %v6805_v19, %v6805_v19  ;;  %v6504_v55 = vmul.f32 0.5, %v6412_v33  ;;  %v6318_v10 = vadd.f32 %v8200_v49, %v12429_v18  ;;  %v8265_v59 = vpop.f32.mrf.mxu1  ;;  %v6700_v24 = vmul.f32 0.5, %v9285_v7 }
 0x536   : > { %v8202_v63 = vpop.f32.mrf.mxu0 }
 0x537   : > { %7258 = vst.msk [vmem:[%s12262_s25 + $0x6c] sm:$0xf] %vm7245_vm2, %v8106_v34  ;;  %9292 = vtanh.f32 %v6504_v55  ;;  %v6415_v47 = vadd.f32 %v8264_v41, %v6318_v10  ;;  %v8203_v39 = vadd.f32 %v8202_v63, %v8201_v3  ;;  %v8266_v38 = vpop.f32.mrf.mxu1  ;;  %v6812_v60 = vadd.f32 0.5, %v6700_v24 }
 0x538   : > { %v9287_v4 = vpop.eup %9286  ;;  %v8204_v45 = vpop.f32.mrf.mxu0  ;;  %v8267_v29 = vadd.f32 %v8266_v38, %v8265_v59 }
 0x539   : > { %v6707_v21 = vmul.f32 0.5, %v9287_v4  ;;  %v6511_v51 = vmul.f32 0.5, %v6415_v47  ;;  %v6323_v16 = vadd.f32 %v8203_v39, %v12429_v18  ;;  %v8268_v57 = vpop.f32.mrf.mxu1  ;;  %v8110_v56 = vpack.c.bf16 %v6812_v60, %v6812_v60 }
 0x53a   : > { %v8205_v6 = vpop.f32.mrf.mxu0 }
 0x53b   : > { %v6819_v52 = vadd.f32 0.5, %v6707_v21  ;;  %9294 = vtanh.f32 %v6511_v51  ;;  %v6420_v8 = vadd.f32 %v8267_v29, %v6323_v16  ;;  %v8206_v2 = vadd.f32 %v8205_v6, %v8204_v45  ;;  %v8269_v20 = vpop.f32.mrf.mxu1  ;;  %7262 = vst.msk [vmem:[%s12262_s25 + $0x88] sm:$0xf] %vm7245_vm2, %v8110_v56 }
 0x53c   : > { %v9289_v27 = vpop.eup %9288  ;;  %v8270_v5 = vadd.f32 %v8269_v20, %v8268_v57  ;;  %v8207_v1 = vpop.f32.mrf.mxu0 }
 0x53d   : > { %v8114_v30 = vpack.c.bf16 %v6819_v52, %v6819_v52  ;;  %v6714_v35 = vmul.f32 0.5, %v9289_v27  ;;  %v6518_v22 = vmul.f32 0.5, %v6420_v8  ;;  %v6326_v46 = vadd.f32 %v8206_v2, %v12429_v18  ;;  %v8271_v23 = vpop.f32.mrf.mxu1 }
 0x53e   : > { %v8208_v54 = vpop.f32.mrf.mxu0 }
 0x53f   : > { %7266 = vst.msk [vmem:[%s12262_s25 + $0xa4] sm:$0xf] %vm7245_vm2, %v8114_v30  ;;  %v6826_v26 = vadd.f32 0.5, %v6714_v35  ;;  %9296 = vtanh.f32 %v6518_v22  ;;  %v6423_v62 = vadd.f32 %v8270_v5, %v6326_v46  ;;  %v8209_v53 = vadd.f32 %v8208_v54, %v8207_v1  ;;  %v8272_v48 = vpop.f32.mrf.mxu1 }
 0x540   : > { %v9291_v42 = vpop.eup %9290  ;;  %v8273_v15 = vadd.f32 %v8272_v48, %v8271_v23  ;;  %v8210_v13 = vpop.f32.mrf.mxu0 }
 0x541   : > { %v8118_v40 = vpack.c.bf16 %v6826_v26, %v6826_v26  ;;  %v6721_v12 = vmul.f32 0.5, %v9291_v42  ;;  %v6525_v44 = vmul.f32 0.5, %v6423_v62  ;;  %v6331_v58 = vadd.f32 %v8209_v53, %v12429_v18  ;;  %v8274_v43 = vpop.f32.mrf.mxu1 }
 0x542   : > { %v8211_v37 = vpop.f32.mrf.mxu0 }
 0x543   : > { %7270 = vst.msk [vmem:[%s12262_s25 + $0xc0] sm:$0xf] %vm7245_vm2, %v8118_v40  ;;  %v6833_v28 = vadd.f32 0.5, %v6721_v12  ;;  %9298 = vtanh.f32 %v6525_v44  ;;  %v6428_v25 = vadd.f32 %v8273_v15, %v6331_v58  ;;  %v8212_v32 = vadd.f32 %v8211_v37, %v8210_v13  ;;  %v8275_v9 = vpop.f32.mrf.mxu1 }
 0x544   : > { %v9293_v36 = vpop.eup %9292  ;;  %v8276_v14 = vadd.f32 %v8275_v9, %v8274_v43  ;;  %v8213_v0 = vpop.f32.mrf.mxu0 }
 0x545   : > { %v8122_v61 = vpack.c.bf16 %v6833_v28, %v6833_v28  ;;  %v6728_v11 = vmul.f32 0.5, %v9293_v36  ;;  %v6532_v50 = vmul.f32 0.5, %v6428_v25  ;;  %v6334_v31 = vadd.f32 %v8212_v32, %v12429_v18  ;;  %v8277_v19 = vpop.f32.mrf.mxu1 }
 0x546   : > { %v8214_v33 = vpop.f32.mrf.mxu0 }
 0x547   : > { %7274 = vst.msk [vmem:[%s12262_s25 + $0xdc] sm:$0xf] %vm7245_vm2, %v8122_v61  ;;  %v6840_v49 = vadd.f32 0.5, %v6728_v11  ;;  %9300 = vtanh.f32 %v6532_v50  ;;  %v6431_v17 = vadd.f32 %v8276_v14, %v6334_v31  ;;  %v8215_v3 = vadd.f32 %v8214_v33, %v8213_v0  ;;  %v8278_v7 = vpop.f32.mrf.mxu1 }
 0x548   : > { %v9295_v34 = vpop.eup %9294  ;;  %v8279_v55 = vadd.f32 %v8278_v7, %v8277_v19  ;;  %v8216_v10 = vpop.f32.mrf.mxu0 }
 0x549   : > { %v8126_v41 = vpack.c.bf16 %v6840_v49, %v6840_v49  ;;  %v6735_v59 = vmul.f32 0.5, %v9295_v34  ;;  %v6539_v24 = vmul.f32 0.5, %v6431_v17  ;;  %v6339_v63 = vadd.f32 %v8215_v3, %v12429_v18  ;;  %v8280_v47 = vpop.f32.mrf.mxu1 }
 0x54a   : > { %v8217_v39 = vpop.f32.mrf.mxu0 }
 0x54b   : > { %7278 = vst.msk [vmem:[%s12262_s25 + $0xf8] sm:$0xf] %vm7245_vm2, %v8126_v41  ;;  %v6847_v38 = vadd.f32 0.5, %v6735_v59  ;;  %9302 = vtanh.f32 %v6539_v24  ;;  %v6436_v4 = vadd.f32 %v8279_v55, %v6339_v63  ;;  %v8218_v60 = vadd.f32 %v8217_v39, %v8216_v10  ;;  %v8281_v45 = vpop.f32.mrf.mxu1 }
 0x54c   : > { %v9297_v21 = vpop.eup %9296  ;;  %v8282_v51 = vadd.f32 %v8281_v45, %v8280_v47 }
 0x54d   : > { %v8130_v16 = vpack.c.bf16 %v6847_v38, %v6847_v38  ;;  %v6742_v29 = vmul.f32 0.5, %v9297_v21  ;;  %v6546_v57 = vmul.f32 0.5, %v6436_v4  ;;  %v6342_v56 = vadd.f32 %v8218_v60, %v12429_v18 }
 0x54f   : > { %7282 = vst.msk [vmem:[%s12262_s25 + $0x114] sm:$0xf] %vm7245_vm2, %v8130_v16  ;;  %v6854_v6 = vadd.f32 0.5, %v6742_v29  ;;  %9304 = vtanh.f32 %v6546_v57  ;;  %v6439_v52 = vadd.f32 %v8282_v51, %v6342_v56 }
 0x550   : > { %v9299_v8 = vpop.eup %9298 }
 0x551   : > { %v8134_v2 = vpack.c.bf16 %v6854_v6, %v6854_v6  ;;  %v6749_v20 = vmul.f32 0.5, %v9299_v8  ;;  %v6553_v27 = vmul.f32 0.5, %v6439_v52 }
 0x553   : > { %7286 = vst.msk [vmem:[%s12262_s25 + $0x130] sm:$0xf] %vm7245_vm2, %v8134_v2  ;;  %v6861_v5 = vadd.f32 0.5, %v6749_v20  ;;  %9306 = vtanh.f32 %v6553_v27 }
 0x554   : > { %v9301_v1 = vpop.eup %9300 }
 0x555   : > { %v8138_v30 = vpack.c.bf16 %v6861_v5, %v6861_v5  ;;  %v6756_v35 = vmul.f32 0.5, %v9301_v1 }
 0x557   : > { %7290 = vst.msk [vmem:[%s12262_s25 + $0x14c] sm:$0xf] %vm7245_vm2, %v8138_v30  ;;  %v6868_v18 = vadd.f32 0.5, %v6756_v35 }
 0x558   : > { %v9303_v22 = vpop.eup %9302 }
 0x559   : > { %v8142_v46 = vpack.c.bf16 %v6868_v18, %v6868_v18  ;;  %v6763_v23 = vmul.f32 0.5, %v9303_v22 }
 0x55b   : > { %7294 = vst.msk [vmem:[%s12262_s25 + $0x168] sm:$0xf] %vm7245_vm2, %v8142_v46  ;;  %v6875_v54 = vadd.f32 0.5, %v6763_v23 }
 0x55c   : > { %v9305_v26 = vpop.eup %9304 }
 0x55d   : > { %v8146_v62 = vpack.c.bf16 %v6875_v54, %v6875_v54  ;;  %v6770_v53 = vmul.f32 0.5, %v9305_v26 }
 0x55f   : > { %7298 = vst.msk [vmem:[%s12262_s25 + $0x184] sm:$0xf] %vm7245_vm2, %v8146_v62  ;;  %v6882_v48 = vadd.f32 0.5, %v6770_v53 }
 0x560   : > { %v9307_v42 = vpop.eup %9306 }
 0x561   : > { %v8150_v15 = vpack.c.bf16 %v6882_v48, %v6882_v48  ;;  %v6777_v13 = vmul.f32 0.5, %v9307_v42 }
 0x563   : > { %7302 = vst.msk [vmem:[%s12262_s25 + $0x1a0] sm:$0xf] %vm7245_vm2, %v8150_v15  ;;  %v6889_v40 = vadd.f32 0.5, %v6777_v13 }
 0x565   : > { %v8154_v12 = vpack.c.bf16 %v6889_v40, %v6889_v40 }
 0x567   : > { %7306 = vst.msk [vmem:[%s12262_s25 + $0x1bc] sm:$0xf] %vm7245_vm2, %v8154_v12 }
 0x568 PF: > { %s23_s21 = sadd.s32 1, %s9316_s21  }
 0x569   : > { %p20_p4 = scmp.ge.s32.totalorder %s23_s21, 4  }
 0x56b   :  { %22 = sbr.rel (!%p20_p4) target bundleno = 1 (0x1), region = 117 }

</bundles_post_ra>
